<compile_context>
chip_gen: v7x
topology: tpu7x:2x2x1
jax: 0.10.0
libtpu: 0.0.40
codegen_flags: <defaults>
</compile_context>

<pallas_src>
import jax
import jax.numpy as jnp
from jax.experimental import pallas as pl
from jax.experimental.pallas import tpu as pltpu

BETA = 1e-6      # same beta as MatrixLog / M_Log
LANE = 128       # TPU lane width; the batch axis is padded / blocked in multiples of this


def matrix_log_kernel(s_ref, u_ref, o_ref):
    # s_ref: (D, B)     eigenvalues,   s_ref[k, b]    = eigval_k of matrix b
    # u_ref: (D, D, B)  eigenvectors,  u_ref[k, i, b] = U_b[i, k]
    # o_ref: (D, D, B)  output,        o_ref[i, j, b] = (U_b diag(log s_b) U_b^T)[i, j]
    d = u_ref.shape[0]
    b = u_ref.shape[2]

    # TODO(synk): for dim >= ~64 an MXU dot_general path (transpose folded into the contraction)
    # would be preferable; this VPU path targets the small-dim SPD-descriptor regime.

    # Process 128 matrices (one full lane group) at a time so the (D, D, 128) f32
    # accumulator stays register-resident; everything below is pure VPU/EUP work.
    for c0 in range(0, b, LANE):
        s = s_ref[:, c0:c0 + LANE]                        # (D, 128)
        # M_Log on the diagonal: clamp to beta, then log.  Off-diagonals of
        # log(S_clamped + 1 - I) are log(1) = 0 and drop out of U S_log U^T.
        s = jnp.where(s - BETA < 0.0, BETA, s)
        s_log = jnp.log(s)                                # EUP (free bundle slot)

        # out[i, j, b] = sum_k s_log[k, b] * U[b, i, k] * U[b, j, k]
        # -> sum over k of rank-1 broadcast products, all 128 lanes busy, no MXU.
        u0 = u_ref[0, :, c0:c0 + LANE]                    # (D, 128): coords of eigenvector 0
        a0 = u0 * s_log[0:1, :]
        acc = a0[:, None, :] * u0[None, :, :]             # (D, D, 128), k = 0 term
        for k in range(1, d):
            uk = u_ref[k, :, c0:c0 + LANE]
            ak = uk * s_log[k:k + 1, :]
            acc = acc + ak[:, None, :] * uk[None, :, :]

        o_ref[:, :, c0:c0 + LANE] = acc                   # aligned, unmasked, lane-dense stores


def _pick_batch_block(n_pad, max_blk):
    """Multiple of LANE that divides n_pad, <= max_blk, preferring >= 2 grid steps."""
    if n_pad <= LANE:
        return n_pad
    cap = min(max_blk, n_pad // 2)            # >= 2 grid steps when possible (v7x has 2 TCs)
    cap = max(LANE, (cap // LANE) * LANE)
    blk = cap
    while n_pad % blk:
        blk -= LANE
    return blk


def matrix_log(spd, *, max_batch_block=1024):
    """spd: (n, dim, dim) batch of SPD matrices -> (n, dim, dim) matrix logarithms."""
    n, dim, _ = spd.shape

    # TODO(synk): the per-matrix torch.eig loop (EigLayer) has no Pallas equivalent; the symmetric
    # eigendecomposition is done with jnp.linalg.eigh (inputs are SPD and U diag(.) U^T is
    # invariant to eigen-ordering); everything downstream runs in the kernel.
    eigvals, eigvecs = jnp.linalg.eigh(spd)
    eigvals = eigvals.astype(jnp.float32)                 # (n, dim)
    eigvecs = eigvecs.astype(jnp.float32)                 # (n, dim, dim), columns = eigenvectors

    # Pad the batch to a multiple of 128 so the lane axis is always dense.
    n_pad = ((n + LANE - 1) // LANE) * LANE
    if n_pad != n:
        eigvals = jnp.pad(eigvals, ((0, n_pad - n), (0, 0)), constant_values=1.0)
        eigvecs = jnp.pad(eigvecs, ((0, n_pad - n), (0, 0), (0, 0)))

    # Batch-in-lanes layout (layout plumbing done by XLA outside the kernel):
    #   s_t[k, b] = eigval_k(b),   u_t[k, i, b] = U_b[i, k]
    s_t = jnp.transpose(eigvals, (1, 0))                  # (dim, n_pad)
    u_t = jnp.transpose(eigvecs, (2, 1, 0))               # (dim, dim, n_pad)

    b_blk = _pick_batch_block(n_pad, max_batch_block)
    grid = (n_pad // b_blk,)

    # VMEM budget: double-buffered eigvec + output blocks (+ eigenvalues) with headroom;
    # capped well below v7x's smaller VMEM (64 MiB physical / 32 MiB scoped).
    blk_bytes = 4 * b_blk * (2 * dim * dim + dim)
    vmem_limit = min(2 * blk_bytes + (4 << 20), 32 * 1024 * 1024)

    cost = pl.CostEstimate(
        flops=2 * n_pad * dim ** 3 + n_pad * dim ** 2,
        transcendentals=n_pad * dim,
        bytes_accessed=4 * n_pad * (2 * dim * dim + dim),
    )

    out_t = pl.pallas_call(
        matrix_log_kernel,
        out_shape=jax.ShapeDtypeStruct((dim, dim, n_pad), jnp.float32),
        grid_spec=pltpu.PrefetchScalarGridSpec(
            num_scalar_prefetch=0,
            grid=grid,
            in_specs=[
                pl.BlockSpec((dim, b_blk), lambda g: (0, g)),           # eigenvalues  [k, b]
                pl.BlockSpec((dim, dim, b_blk), lambda g: (0, 0, g)),   # eigenvectors [k, i, b]
            ],
            out_specs=pl.BlockSpec((dim, dim, b_blk), lambda g: (0, 0, g)),
        ),
        compiler_params=pltpu.CompilerParams(
            dimension_semantics=("parallel",),   # batch blocks independent -> v7x megacore
            vmem_limit_bytes=vmem_limit,
        ),
        cost_estimate=cost,
    )(s_t, u_t)

    # Back to the module's (n, dim, dim) layout; drop the batch padding.
    return jnp.transpose(out_t, (2, 0, 1))[:n]


if __name__ == "__main__":
    key = jax.random.PRNGKey(0)
    n, dim = 256, 16                       # 256 matrices -> two lane-dense grid steps of 128

    # Deterministic SPD inputs: A A^T + 0.1 I
    a = jax.random.normal(key, (n, dim, dim), dtype=jnp.float32)
    spd = jnp.einsum("nij,nkj->nik", a, a) + 0.1 * jnp.eye(dim, dtype=jnp.float32)[None]

    out = jax.block_until_ready(matrix_log(spd))

    # Pure-JAX reference of the same forward semantics.
    s_v, u_v = jnp.linalg.eigh(spd)
    s_log_v = jnp.log(jnp.where(s_v - BETA < 0, BETA, s_v))
    ref = jnp.einsum("nik,nk,njk->nij", u_v, s_log_v, u_v)

    assert out.shape == (n, dim, dim)
    assert jnp.allclose(out, ref, atol=1e-4, rtol=1e-4), "mismatch vs reference"
    print("KERNEL_OK")
</pallas_src>

<mosaic_0001>
module attributes {stable_mosaic.version = 11 : i64} {
  func.func @matrix_log_kernel(%arg0: i32, %arg1: memref<16x128xf32, #tpu.memory_space<vmem>>, %arg2: memref<16x16x128xf32, #tpu.memory_space<vmem>>, %arg3: memref<16x16x128xf32, #tpu.memory_space<vmem>>) attributes {dimension_semantics = [#tpu.dimension_semantics<parallel>], iteration_bounds = array<i64: 2>, scalar_prefetch = 0 : i64, scratch_operands = 0 : i64, tpu.core_type = #tpu.core_type<tc>, window_params = [{transform_indices = @transform_0, window_bounds = array<i64: 16, 128>}, {transform_indices = @transform_1, window_bounds = array<i64: 16, 16, 128>}, {transform_indices = @transform_2, window_bounds = array<i64: 16, 16, 128>}]} {
    %c0 = arith.constant 0 : index
    %c0_0 = arith.constant 0 : index
    %0 = vector.load %arg1[%c0, %c0_0] : memref<16x128xf32, #tpu.memory_space<vmem>>, vector<16x128xf32>
    %cst = arith.constant 9.99999997E-7 : f32
    %1 = vector.broadcast %cst : f32 to vector<16x128xf32>
    %2 = arith.subf %0, %1 : vector<16x128xf32>
    %cst_1 = arith.constant 0.000000e+00 : f32
    %3 = vector.broadcast %cst_1 : f32 to vector<16x128xf32>
    %4 = arith.cmpf olt, %2, %3 : vector<16x128xf32>
    %cst_2 = arith.constant 9.99999997E-7 : f32
    %5 = vector.broadcast %cst_2 : f32 to vector<16x128xf32>
    %6 = arith.select %4, %5, %0 : vector<16x128xi1>, vector<16x128xf32>
    %7 = math.log %6 : vector<16x128xf32>
    %c0_3 = arith.constant 0 : index
    %c0_4 = arith.constant 0 : index
    %c0_5 = arith.constant 0 : index
    %8 = vector.load %arg2[%c0_3, %c0_4, %c0_5] : memref<16x16x128xf32, #tpu.memory_space<vmem>>, vector<1x16x128xf32>
    %9 = vector.shape_cast %8 : vector<1x16x128xf32> to vector<16x128xf32>
    %10 = vector.extract_strided_slice %7 {offsets = [0, 0], sizes = [1, 128], strides = [1, 1]} : vector<16x128xf32> to vector<1x128xf32>
    %11 = vector.broadcast %10 : vector<1x128xf32> to vector<16x128xf32>
    %12 = arith.mulf %9, %11 : vector<16x128xf32>
    %13 = vector.shape_cast %12 : vector<16x128xf32> to vector<16x1x128xf32>
    %14 = vector.shape_cast %9 : vector<16x128xf32> to vector<1x16x128xf32>
    %15 = vector.broadcast %13 : vector<16x1x128xf32> to vector<16x16x128xf32>
    %16 = vector.broadcast %14 : vector<1x16x128xf32> to vector<16x16x128xf32>
    %17 = arith.mulf %15, %16 : vector<16x16x128xf32>
    %c1 = arith.constant 1 : index
    %c0_6 = arith.constant 0 : index
    %c0_7 = arith.constant 0 : index
    %18 = vector.load %arg2[%c1, %c0_6, %c0_7] : memref<16x16x128xf32, #tpu.memory_space<vmem>>, vector<1x16x128xf32>
    %19 = vector.shape_cast %18 : vector<1x16x128xf32> to vector<16x128xf32>
    %20 = vector.extract_strided_slice %7 {offsets = [1, 0], sizes = [1, 128], strides = [1, 1]} : vector<16x128xf32> to vector<1x128xf32>
    %21 = vector.broadcast %20 : vector<1x128xf32> to vector<16x128xf32>
    %22 = arith.mulf %19, %21 : vector<16x128xf32>
    %23 = vector.shape_cast %22 : vector<16x128xf32> to vector<16x1x128xf32>
    %24 = vector.shape_cast %19 : vector<16x128xf32> to vector<1x16x128xf32>
    %25 = vector.broadcast %23 : vector<16x1x128xf32> to vector<16x16x128xf32>
    %26 = vector.broadcast %24 : vector<1x16x128xf32> to vector<16x16x128xf32>
    %27 = arith.mulf %25, %26 : vector<16x16x128xf32>
    %28 = arith.addf %17, %27 : vector<16x16x128xf32>
    %c2 = arith.constant 2 : index
    %c0_8 = arith.constant 0 : index
    %c0_9 = arith.constant 0 : index
    %29 = vector.load %arg2[%c2, %c0_8, %c0_9] : memref<16x16x128xf32, #tpu.memory_space<vmem>>, vector<1x16x128xf32>
    %30 = vector.shape_cast %29 : vector<1x16x128xf32> to vector<16x128xf32>
    %31 = vector.extract_strided_slice %7 {offsets = [2, 0], sizes = [1, 128], strides = [1, 1]} : vector<16x128xf32> to vector<1x128xf32>
    %32 = vector.broadcast %31 : vector<1x128xf32> to vector<16x128xf32>
    %33 = arith.mulf %30, %32 : vector<16x128xf32>
    %34 = vector.shape_cast %33 : vector<16x128xf32> to vector<16x1x128xf32>
    %35 = vector.shape_cast %30 : vector<16x128xf32> to vector<1x16x128xf32>
    %36 = vector.broadcast %34 : vector<16x1x128xf32> to vector<16x16x128xf32>
    %37 = vector.broadcast %35 : vector<1x16x128xf32> to vector<16x16x128xf32>
    %38 = arith.mulf %36, %37 : vector<16x16x128xf32>
    %39 = arith.addf %28, %38 : vector<16x16x128xf32>
    %c3 = arith.constant 3 : index
    %c0_10 = arith.constant 0 : index
    %c0_11 = arith.constant 0 : index
    %40 = vector.load %arg2[%c3, %c0_10, %c0_11] : memref<16x16x128xf32, #tpu.memory_space<vmem>>, vector<1x16x128xf32>
    %41 = vector.shape_cast %40 : vector<1x16x128xf32> to vector<16x128xf32>
    %42 = vector.extract_strided_slice %7 {offsets = [3, 0], sizes = [1, 128], strides = [1, 1]} : vector<16x128xf32> to vector<1x128xf32>
    %43 = vector.broadcast %42 : vector<1x128xf32> to vector<16x128xf32>
    %44 = arith.mulf %41, %43 : vector<16x128xf32>
    %45 = vector.shape_cast %44 : vector<16x128xf32> to vector<16x1x128xf32>
    %46 = vector.shape_cast %41 : vector<16x128xf32> to vector<1x16x128xf32>
    %47 = vector.broadcast %45 : vector<16x1x128xf32> to vector<16x16x128xf32>
    %48 = vector.broadcast %46 : vector<1x16x128xf32> to vector<16x16x128xf32>
    %49 = arith.mulf %47, %48 : vector<16x16x128xf32>
    %50 = arith.addf %39, %49 : vector<16x16x128xf32>
    %c4 = arith.constant 4 : index
    %c0_12 = arith.constant 0 : index
    %c0_13 = arith.constant 0 : index
    %51 = vector.load %arg2[%c4, %c0_12, %c0_13] : memref<16x16x128xf32, #tpu.memory_space<vmem>>, vector<1x16x128xf32>
    %52 = vector.shape_cast %51 : vector<1x16x128xf32> to vector<16x128xf32>
    %53 = vector.extract_strided_slice %7 {offsets = [4, 0], sizes = [1, 128], strides = [1, 1]} : vector<16x128xf32> to vector<1x128xf32>
    %54 = vector.broadcast %53 : vector<1x128xf32> to vector<16x128xf32>
    %55 = arith.mulf %52, %54 : vector<16x128xf32>
    %56 = vector.shape_cast %55 : vector<16x128xf32> to vector<16x1x128xf32>
    %57 = vector.shape_cast %52 : vector<16x128xf32> to vector<1x16x128xf32>
    %58 = vector.broadcast %56 : vector<16x1x128xf32> to vector<16x16x128xf32>
    %59 = vector.broadcast %57 : vector<1x16x128xf32> to vector<16x16x128xf32>
    %60 = arith.mulf %58, %59 : vector<16x16x128xf32>
    %61 = arith.addf %50, %60 : vector<16x16x128xf32>
    %c5 = arith.constant 5 : index
    %c0_14 = arith.constant 0 : index
    %c0_15 = arith.constant 0 : index
    %62 = vector.load %arg2[%c5, %c0_14, %c0_15] : memref<16x16x128xf32, #tpu.memory_space<vmem>>, vector<1x16x128xf32>
    %63 = vector.shape_cast %62 : vector<1x16x128xf32> to vector<16x128xf32>
    %64 = vector.extract_strided_slice %7 {offsets = [5, 0], sizes = [1, 128], strides = [1, 1]} : vector<16x128xf32> to vector<1x128xf32>
    %65 = vector.broadcast %64 : vector<1x128xf32> to vector<16x128xf32>
    %66 = arith.mulf %63, %65 : vector<16x128xf32>
    %67 = vector.shape_cast %66 : vector<16x128xf32> to vector<16x1x128xf32>
    %68 = vector.shape_cast %63 : vector<16x128xf32> to vector<1x16x128xf32>
    %69 = vector.broadcast %67 : vector<16x1x128xf32> to vector<16x16x128xf32>
    %70 = vector.broadcast %68 : vector<1x16x128xf32> to vector<16x16x128xf32>
    %71 = arith.mulf %69, %70 : vector<16x16x128xf32>
    %72 = arith.addf %61, %71 : vector<16x16x128xf32>
    %c6 = arith.constant 6 : index
    %c0_16 = arith.constant 0 : index
    %c0_17 = arith.constant 0 : index
    %73 = vector.load %arg2[%c6, %c0_16, %c0_17] : memref<16x16x128xf32, #tpu.memory_space<vmem>>, vector<1x16x128xf32>
    %74 = vector.shape_cast %73 : vector<1x16x128xf32> to vector<16x128xf32>
    %75 = vector.extract_strided_slice %7 {offsets = [6, 0], sizes = [1, 128], strides = [1, 1]} : vector<16x128xf32> to vector<1x128xf32>
    %76 = vector.broadcast %75 : vector<1x128xf32> to vector<16x128xf32>
    %77 = arith.mulf %74, %76 : vector<16x128xf32>
    %78 = vector.shape_cast %77 : vector<16x128xf32> to vector<16x1x128xf32>
    %79 = vector.shape_cast %74 : vector<16x128xf32> to vector<1x16x128xf32>
    %80 = vector.broadcast %78 : vector<16x1x128xf32> to vector<16x16x128xf32>
    %81 = vector.broadcast %79 : vector<1x16x128xf32> to vector<16x16x128xf32>
    %82 = arith.mulf %80, %81 : vector<16x16x128xf32>
    %83 = arith.addf %72, %82 : vector<16x16x128xf32>
    %c7 = arith.constant 7 : index
    %c0_18 = arith.constant 0 : index
    %c0_19 = arith.constant 0 : index
    %84 = vector.load %arg2[%c7, %c0_18, %c0_19] : memref<16x16x128xf32, #tpu.memory_space<vmem>>, vector<1x16x128xf32>
    %85 = vector.shape_cast %84 : vector<1x16x128xf32> to vector<16x128xf32>
    %86 = vector.extract_strided_slice %7 {offsets = [7, 0], sizes = [1, 128], strides = [1, 1]} : vector<16x128xf32> to vector<1x128xf32>
    %87 = vector.broadcast %86 : vector<1x128xf32> to vector<16x128xf32>
    %88 = arith.mulf %85, %87 : vector<16x128xf32>
    %89 = vector.shape_cast %88 : vector<16x128xf32> to vector<16x1x128xf32>
    %90 = vector.shape_cast %85 : vector<16x128xf32> to vector<1x16x128xf32>
    %91 = vector.broadcast %89 : vector<16x1x128xf32> to vector<16x16x128xf32>
    %92 = vector.broadcast %90 : vector<1x16x128xf32> to vector<16x16x128xf32>
    %93 = arith.mulf %91, %92 : vector<16x16x128xf32>
    %94 = arith.addf %83, %93 : vector<16x16x128xf32>
    %c8 = arith.constant 8 : index
    %c0_20 = arith.constant 0 : index
    %c0_21 = arith.constant 0 : index
    %95 = vector.load %arg2[%c8, %c0_20, %c0_21] : memref<16x16x128xf32, #tpu.memory_space<vmem>>, vector<1x16x128xf32>
    %96 = vector.shape_cast %95 : vector<1x16x128xf32> to vector<16x128xf32>
    %97 = vector.extract_strided_slice %7 {offsets = [8, 0], sizes = [1, 128], strides = [1, 1]} : vector<16x128xf32> to vector<1x128xf32>
    %98 = vector.broadcast %97 : vector<1x128xf32> to vector<16x128xf32>
    %99 = arith.mulf %96, %98 : vector<16x128xf32>
    %100 = vector.shape_cast %99 : vector<16x128xf32> to vector<16x1x128xf32>
    %101 = vector.shape_cast %96 : vector<16x128xf32> to vector<1x16x128xf32>
    %102 = vector.broadcast %100 : vector<16x1x128xf32> to vector<16x16x128xf32>
    %103 = vector.broadcast %101 : vector<1x16x128xf32> to vector<16x16x128xf32>
    %104 = arith.mulf %102, %103 : vector<16x16x128xf32>
    %105 = arith.addf %94, %104 : vector<16x16x128xf32>
    %c9 = arith.constant 9 : index
    %c0_22 = arith.constant 0 : index
    %c0_23 = arith.constant 0 : index
    %106 = vector.load %arg2[%c9, %c0_22, %c0_23] : memref<16x16x128xf32, #tpu.memory_space<vmem>>, vector<1x16x128xf32>
    %107 = vector.shape_cast %106 : vector<1x16x128xf32> to vector<16x128xf32>
    %108 = vector.extract_strided_slice %7 {offsets = [9, 0], sizes = [1, 128], strides = [1, 1]} : vector<16x128xf32> to vector<1x128xf32>
    %109 = vector.broadcast %108 : vector<1x128xf32> to vector<16x128xf32>
    %110 = arith.mulf %107, %109 : vector<16x128xf32>
    %111 = vector.shape_cast %110 : vector<16x128xf32> to vector<16x1x128xf32>
    %112 = vector.shape_cast %107 : vector<16x128xf32> to vector<1x16x128xf32>
    %113 = vector.broadcast %111 : vector<16x1x128xf32> to vector<16x16x128xf32>
    %114 = vector.broadcast %112 : vector<1x16x128xf32> to vector<16x16x128xf32>
    %115 = arith.mulf %113, %114 : vector<16x16x128xf32>
    %116 = arith.addf %105, %115 : vector<16x16x128xf32>
    %c10 = arith.constant 10 : index
    %c0_24 = arith.constant 0 : index
    %c0_25 = arith.constant 0 : index
    %117 = vector.load %arg2[%c10, %c0_24, %c0_25] : memref<16x16x128xf32, #tpu.memory_space<vmem>>, vector<1x16x128xf32>
    %118 = vector.shape_cast %117 : vector<1x16x128xf32> to vector<16x128xf32>
    %119 = vector.extract_strided_slice %7 {offsets = [10, 0], sizes = [1, 128], strides = [1, 1]} : vector<16x128xf32> to vector<1x128xf32>
    %120 = vector.broadcast %119 : vector<1x128xf32> to vector<16x128xf32>
    %121 = arith.mulf %118, %120 : vector<16x128xf32>
    %122 = vector.shape_cast %121 : vector<16x128xf32> to vector<16x1x128xf32>
    %123 = vector.shape_cast %118 : vector<16x128xf32> to vector<1x16x128xf32>
    %124 = vector.broadcast %122 : vector<16x1x128xf32> to vector<16x16x128xf32>
    %125 = vector.broadcast %123 : vector<1x16x128xf32> to vector<16x16x128xf32>
    %126 = arith.mulf %124, %125 : vector<16x16x128xf32>
    %127 = arith.addf %116, %126 : vector<16x16x128xf32>
    %c11 = arith.constant 11 : index
    %c0_26 = arith.constant 0 : index
    %c0_27 = arith.constant 0 : index
    %128 = vector.load %arg2[%c11, %c0_26, %c0_27] : memref<16x16x128xf32, #tpu.memory_space<vmem>>, vector<1x16x128xf32>
    %129 = vector.shape_cast %128 : vector<1x16x128xf32> to vector<16x128xf32>
    %130 = vector.extract_strided_slice %7 {offsets = [11, 0], sizes = [1, 128], strides = [1, 1]} : vector<16x128xf32> to vector<1x128xf32>
    %131 = vector.broadcast %130 : vector<1x128xf32> to vector<16x128xf32>
    %132 = arith.mulf %129, %131 : vector<16x128xf32>
    %133 = vector.shape_cast %132 : vector<16x128xf32> to vector<16x1x128xf32>
    %134 = vector.shape_cast %129 : vector<16x128xf32> to vector<1x16x128xf32>
    %135 = vector.broadcast %133 : vector<16x1x128xf32> to vector<16x16x128xf32>
    %136 = vector.broadcast %134 : vector<1x16x128xf32> to vector<16x16x128xf32>
    %137 = arith.mulf %135, %136 : vector<16x16x128xf32>
    %138 = arith.addf %127, %137 : vector<16x16x128xf32>
    %c12 = arith.constant 12 : index
    %c0_28 = arith.constant 0 : index
    %c0_29 = arith.constant 0 : index
    %139 = vector.load %arg2[%c12, %c0_28, %c0_29] : memref<16x16x128xf32, #tpu.memory_space<vmem>>, vector<1x16x128xf32>
    %140 = vector.shape_cast %139 : vector<1x16x128xf32> to vector<16x128xf32>
    %141 = vector.extract_strided_slice %7 {offsets = [12, 0], sizes = [1, 128], strides = [1, 1]} : vector<16x128xf32> to vector<1x128xf32>
    %142 = vector.broadcast %141 : vector<1x128xf32> to vector<16x128xf32>
    %143 = arith.mulf %140, %142 : vector<16x128xf32>
    %144 = vector.shape_cast %143 : vector<16x128xf32> to vector<16x1x128xf32>
    %145 = vector.shape_cast %140 : vector<16x128xf32> to vector<1x16x128xf32>
    %146 = vector.broadcast %144 : vector<16x1x128xf32> to vector<16x16x128xf32>
    %147 = vector.broadcast %145 : vector<1x16x128xf32> to vector<16x16x128xf32>
    %148 = arith.mulf %146, %147 : vector<16x16x128xf32>
    %149 = arith.addf %138, %148 : vector<16x16x128xf32>
    %c13 = arith.constant 13 : index
    %c0_30 = arith.constant 0 : index
    %c0_31 = arith.constant 0 : index
    %150 = vector.load %arg2[%c13, %c0_30, %c0_31] : memref<16x16x128xf32, #tpu.memory_space<vmem>>, vector<1x16x128xf32>
    %151 = vector.shape_cast %150 : vector<1x16x128xf32> to vector<16x128xf32>
    %152 = vector.extract_strided_slice %7 {offsets = [13, 0], sizes = [1, 128], strides = [1, 1]} : vector<16x128xf32> to vector<1x128xf32>
    %153 = vector.broadcast %152 : vector<1x128xf32> to vector<16x128xf32>
    %154 = arith.mulf %151, %153 : vector<16x128xf32>
    %155 = vector.shape_cast %154 : vector<16x128xf32> to vector<16x1x128xf32>
    %156 = vector.shape_cast %151 : vector<16x128xf32> to vector<1x16x128xf32>
    %157 = vector.broadcast %155 : vector<16x1x128xf32> to vector<16x16x128xf32>
    %158 = vector.broadcast %156 : vector<1x16x128xf32> to vector<16x16x128xf32>
    %159 = arith.mulf %157, %158 : vector<16x16x128xf32>
    %160 = arith.addf %149, %159 : vector<16x16x128xf32>
    %c14 = arith.constant 14 : index
    %c0_32 = arith.constant 0 : index
    %c0_33 = arith.constant 0 : index
    %161 = vector.load %arg2[%c14, %c0_32, %c0_33] : memref<16x16x128xf32, #tpu.memory_space<vmem>>, vector<1x16x128xf32>
    %162 = vector.shape_cast %161 : vector<1x16x128xf32> to vector<16x128xf32>
    %163 = vector.extract_strided_slice %7 {offsets = [14, 0], sizes = [1, 128], strides = [1, 1]} : vector<16x128xf32> to vector<1x128xf32>
    %164 = vector.broadcast %163 : vector<1x128xf32> to vector<16x128xf32>
    %165 = arith.mulf %162, %164 : vector<16x128xf32>
    %166 = vector.shape_cast %165 : vector<16x128xf32> to vector<16x1x128xf32>
    %167 = vector.shape_cast %162 : vector<16x128xf32> to vector<1x16x128xf32>
    %168 = vector.broadcast %166 : vector<16x1x128xf32> to vector<16x16x128xf32>
    %169 = vector.broadcast %167 : vector<1x16x128xf32> to vector<16x16x128xf32>
    %170 = arith.mulf %168, %169 : vector<16x16x128xf32>
    %171 = arith.addf %160, %170 : vector<16x16x128xf32>
    %c15 = arith.constant 15 : index
    %c0_34 = arith.constant 0 : index
    %c0_35 = arith.constant 0 : index
    %172 = vector.load %arg2[%c15, %c0_34, %c0_35] : memref<16x16x128xf32, #tpu.memory_space<vmem>>, vector<1x16x128xf32>
    %173 = vector.shape_cast %172 : vector<1x16x128xf32> to vector<16x128xf32>
    %174 = vector.extract_strided_slice %7 {offsets = [15, 0], sizes = [1, 128], strides = [1, 1]} : vector<16x128xf32> to vector<1x128xf32>
    %175 = vector.broadcast %174 : vector<1x128xf32> to vector<16x128xf32>
    %176 = arith.mulf %173, %175 : vector<16x128xf32>
    %177 = vector.shape_cast %176 : vector<16x128xf32> to vector<16x1x128xf32>
    %178 = vector.shape_cast %173 : vector<16x128xf32> to vector<1x16x128xf32>
    %179 = vector.broadcast %177 : vector<16x1x128xf32> to vector<16x16x128xf32>
    %180 = vector.broadcast %178 : vector<1x16x128xf32> to vector<16x16x128xf32>
    %181 = arith.mulf %179, %180 : vector<16x16x128xf32>
    %182 = arith.addf %171, %181 : vector<16x16x128xf32>
    %c0_36 = arith.constant 0 : index
    %c0_37 = arith.constant 0 : index
    %c0_38 = arith.constant 0 : index
    %183 = vector.load %arg3[%c0_36, %c0_37, %c0_38] : memref<16x16x128xf32, #tpu.memory_space<vmem>>, vector<16x16x128xf32>
    tpu.vector_store %arg3[%c0_36, %c0_37, %c0_38], %182 {strides = array<i32>} : memref<16x16x128xf32, #tpu.memory_space<vmem>>, vector<16x16x128xf32>,
    return
  }
  func.func @transform_0(%arg0: i32) -> (i32, i32) {
    %c0_i32 = arith.constant 0 : i32
    %c0_i32_0 = arith.constant 0 : i32
    return %c0_i32, %arg0 : i32, i32
  }
  func.func @transform_1(%arg0: i32) -> (i32, i32, i32) {
    %c0_i32 = arith.constant 0 : i32
    %c0_i32_0 = arith.constant 0 : i32
    %c0_i32_1 = arith.constant 0 : i32
    return %c0_i32, %c0_i32_0, %arg0 : i32, i32, i32
  }
  func.func @transform_2(%arg0: i32) -> (i32, i32, i32) {
    %c0_i32 = arith.constant 0 : i32
    %c0_i32_0 = arith.constant 0 : i32
    %c0_i32_1 = arith.constant 0 : i32
    return %c0_i32, %c0_i32_0, %arg0 : i32, i32, i32
  }
}

</mosaic_0001>

<bundles_post_ra>
// kernel: tpu_custom_call.1
= control target key start
LH: loop header
LB: loop body
LE: loop exit
PB: predicated region body
PF: predicated region fallthrough
CT: control target
= control target key end

     0   :  { %7 = vsyncpa [#allocation3], 0  ;;  %s8014_s0 = inlined_call_operand.hbm [shape: f32[16,256], index: 0, kind: input, shape index: {}]   ;;  %s8015_s1 = inlined_call_operand.hbm [shape: f32[16,16,256], index: 1, kind: input, shape index: {}]   ;;  %s8016_s2 = inlined_call_operand.hbm [shape: f32[16,16,256], index: 2, kind: output, shape index: {}]  }
   0x1   :  { %9 = vsyncpa [#allocation3 + $0x1], 0 }
   0x2   :  { %10 = vsyncpa [#allocation6], 0 }
   0x3   :  { %12 = vsyncpa [#allocation6 + $0x1], 0 }
   0x4   :  { %13 = vsyncpa [#allocation4], 0 }
   0x5   :  { %15 = vsyncpa [#allocation4 + $0x1], 0  ;;  %s4710_s9 = smov 0   ;;  %s4712_s10 = smov 0  }
   0x6   :  { %s4714_s11 = smov 0   ;;  %s4716_s12 = smov 0  }
   0x7 LB: > { %s4731_s13 = sadd.s32 4294967295, %s4683_s12   ;;  %s4368_s14 = sadd.s32 4294967294, %s4683_s12   ;;  %s4683_s12 = sphi %s4716_s12, %s8822_s12   ;;  %s4679_s11 = sphi %s4714_s11, %s8821_s11   ;;  %s4675_s10 = sphi %s4712_s10, %s8820_s10   ;;  %s4671_s9 = sphi %s4710_s9, %s8819_s9  }
   0x8   : > { %s4735_s15 = sadd.s32 1, %s4683_s12   ;;  %s28_s16 = sadd.s32 1, %s4679_s11 }
   0x9   : > { %s25_s17 = ssub.s32 %s4683_s12, %s4735_s15  ;;  %p35_p0 = scmp.ne.s32.totalorder %s4679_s11, %s4675_s10 }
   0xa   : > { %p26_p1 = scmp.eq.s32.totalorder %s25_s17, 0  ;;  %p36_p2 = scmp.eq.s32.totalorder %s4683_s12, 0 }
   0xb   : > { %p41_p3 = scmp.ne.s32.totalorder %s4675_s10, %s4671_s9  ;;  %p42_p4 = scmp.eq.s32.totalorder %s4731_s13, 0 }
   0xc   : > { %s4747_s18 = scalar_select %p26_p1, %s4679_s11, %s28_s16  }
   0xd   : > { %p4749_p5 = por %p36_p2, %p35_p0  ;;  %p4753_p6 = por %p42_p4, %p41_p3 }
   0xe   : > { %p91_p7 = scmp.eq.s32.totalorder %s4731_s13, 1  ;;  %p97_p8 = scmp.eq.s32.totalorder %s4368_s14, 1 }
   0xf   : > { %s8306_s20 = scalar_select %p4753_p6, 1, 0 }
  0x10   : > { %p4432_p10 = scmp.lt.s32.totalorder %s4683_s12, 2  ;;  %p4760_p11 = por %p91_p7, %p35_p0 }
  0x11   : > { %p4764_p12 = por %p97_p8, %p41_p3  ;;  %s4769_s23 = sand.u32 1, %s4679_s11  }
  0x12   : > { %s8307_s21 = scalar_select %p4760_p11, 1, 0 }
  0x13   : > { %s8308_s22 = scalar_select %p4764_p12, 1, 0 }
  0x14   : > { %s4372_s24 = sshll.u32 %s4683_s12, 7  ;;  %s4371_s25 = sshll.u32 %s4769_s23, 4 }
  0x15   : > { %s4778_s28 = scalar_lea.hbm %s8014_s0, %s4372_s24  ;;  %s121_s29 = scalar_lea.vmem [#allocation2], %s4371_s25 }
  0x16   : > { %s127_s30 = sshll.u32 %s121_s29, 4  ;;  %p4782_p13 = pnand %p4432_p10, %p4749_p5  ;;  %s4786_s30 = int_to_ptr.vmem [resolvable:$true] %s127_s30 }
  0x17   : > { %s118_s4 = scalar_lea.sflag [#allocation3], %s4769_s23  ;;  %s4553_s5 = scalar_lea.hbm %s4778_s28, 256 }
  0x18   : > { %p4554_p1 = scmp.ne.s32.totalorder %s4778_s28, %s4553_s5  ;;  %p4555_p2 = pneg %p4782_p13 }
  0x19   : > { %s4558_s8 = scalar_lea.hbm %s8014_s0, 512  ;;  %p4559_p5 = scmp.lt.u32.totalorder %s4778_s28, %s8014_s0 }
  0x1a   : > { %p4556_p3 = pnand %p4555_p2, %p4554_p1  ;;  %p4560_p7 = scmp.lt.u32.totalorder %s4558_s8, %s4553_s5 }
  0x1b   : > { %p4562_p10 = scmp.lt.u32.totalorder %s4553_s5, %s4778_s28 }
  0x1c   : > { %p4557_p4 = pneg %p4556_p3  ;;  %p4561_p8 = por %p4560_p7, %p4559_p5 }
  0x1e   : > { %p4563_p9 = por %p4562_p10, %p4561_p8 }
  0x20   : > { %p4564_p0 = pnand %p4563_p9, %p4557_p4 }
  0x22   : > { %4567 = shalt.err (!%p4564_p0)
}
  0x23   : > { %s4568_s17 = scalar_lea.vmem %s4786_s30, 256  ;;  %s4685_s19 = smov [#allocation2]  }
  0x24   : > { %p4569_p1 = scmp.ne.s32.totalorder %s4786_s30, %s4568_s17  ;;  %s4573_s25 = sshll.u32 %s4685_s19, 4  ;;  %s4574_s25 = int_to_ptr.vmem [resolvable:$false] %s4573_s25 }
  0x25   : > { %s4575_s26 = scalar_lea.vmem %s4574_s25, 512  ;;  %p4576_p11 = scmp.lt.s32.totalorder %s4786_s30, %s4574_s25 }
  0x26   : > { %p4571_p3 = pnand %p4569_p1, %p4555_p2  ;;  %p4577_p5 = scmp.lt.s32.totalorder %s4575_s26, %s4568_s17 }
  0x28   : > { %p4572_p12 = pneg %p4571_p3  ;;  %p4578_p7 = por %p4577_p5, %p4576_p11 }
  0x2a   : > { %p4579_p8 = pnand %p4578_p7, %p4572_p12 }
  0x2c   : > { %4582 = shalt.err (!%p4579_p8)
}
  0x2d   : > { %s4686_s27 = smov 256   ;;  %s4687_s29 = smov 128  }
  0x2e   : > { %s4688_s5 = smov 8   ;;  %p155_p9 = scmp.lt.s32.totalorder %s4683_s12, 3 }
  0x2f   : > { %4424 = dma.hbm_to_vmem [thread:$0]  (!%p4782_p13), %s4778_s28, 256, %s4786_s30, %s118_s4, %s4686_s27, %s4687_s29, %s4688_s5  }
  0x30   : > { %s4373_s6 = sshll.u32 %s4769_s23, 8  ;;  %s4827_s14 = scalar_lea.hbm %s8015_s1, %s4372_s24 }
  0x31   : > { %p8310_p11 = scmp.ge.s32.totalorder %s4683_s12, 1  ;;  %s141_s17 = scalar_lea.vmem [#allocation5], %s4373_s6 }
  0x32   : > { %s147_s19 = sshll.u32 %s141_s17, 4  ;;  %s138_s28 = scalar_lea.sflag [#allocation6], %s4769_s23  ;;  %s4835_s19 = int_to_ptr.vmem [resolvable:$true] %s147_s19 }
  0x33   : > { %p4831_p12 = pnand %p8310_p11, %p155_p9  ;;  %s4583_s30 = scalar_lea.hbm %s4827_s14, 4096 }
  0x34   : > { %p4584_p0 = scmp.ne.s32.totalorder %s4827_s14, %s4583_s30  ;;  %s4588_s25 = scalar_lea.hbm %s8015_s1, 8192 }
  0x35   : > { %p4589_p1 = scmp.lt.u32.totalorder %s4827_s14, %s8015_s1  ;;  %p4590_p3 = scmp.lt.u32.totalorder %s4588_s25, %s4583_s30 }
  0x36   : > { %p4586_p4 = pnand %p4584_p0, %p4555_p2  ;;  %p4592_p7 = scmp.lt.u32.totalorder %s4583_s30, %s4827_s14 }
  0x37   : > { %p4591_p5 = por %p4590_p3, %p4589_p1 }
  0x38   : > { %p4587_p10 = pneg %p4586_p4 }
  0x39   : > { %p4593_p8 = por %p4592_p7, %p4591_p5 }
  0x3b   : > { %p4594_p9 = pnand %p4593_p8, %p4587_p10 }
  0x3d   : > { %4597 = shalt.err (!%p4594_p9)
}
  0x3e   : > { %s4598_s6 = scalar_lea.vmem %s4835_s19, 4096  ;;  %s4689_s8 = smov [#allocation5]  }
  0x3f   : > { %p4599_p11 = scmp.ne.s32.totalorder %s4835_s19, %s4598_s6  ;;  %s4603_s17 = sshll.u32 %s4689_s8, 4  ;;  %s4604_s17 = int_to_ptr.vmem [resolvable:$false] %s4603_s17 }
  0x40   : > { %s4605_s24 = scalar_lea.vmem %s4604_s17, 8192  ;;  %p4606_p6 = scmp.lt.s32.totalorder %s4835_s19, %s4604_s17 }
  0x41   : > { %p4601_p0 = pnand %p4599_p11, %p4555_p2  ;;  %p4607_p1 = scmp.lt.s32.totalorder %s4605_s24, %s4598_s6 }
  0x43   : > { %p4602_p4 = pneg %p4601_p0  ;;  %p4608_p3 = por %p4607_p1, %p4606_p6 }
  0x45   : > { %p4609_p5 = pnand %p4608_p3, %p4602_p4 }
  0x47   : > { %4612 = shalt.err (!%p4609_p5)
}
  0x48   : > { %4427 = dma.hbm_to_vmem [thread:$0]  (!%p4782_p13), %s4827_s14, 4096, %s4835_s19, %s138_s28, %s4686_s27, %s4687_s29, %s4688_s5  }
  0x49   : > { %159 = sbr.rel (%p4831_p12) target bundleno = 587 (0x24b), region = 28 }
  0x50   : > { %s4869_s30 = sand.u32 1, %s4675_s10   ;;  %p8312_p6 = scmp.ne.s32.totalorder %s8306_s20, 0 }
  0x51   : > { %s4376_s4 = sshll.u32 %s4869_s30, 4  ;;  %s162_s25 = scalar_lea.sflag [#allocation3], %s4869_s30 }
  0x52   : > { %s165_s3 = scalar_lea.vmem [#allocation2], %s4376_s4 }
  0x53   : > { %4658 = dma.done.wait (%p8312_p6), %s162_s25, 256  }
  0x54   : > { %4660 = vsyncadd (%p8312_p6), %s162_s25, 4294967040  ;;  %s4377_s23 = sshll.u32 %s4869_s30, 8  ;;  %s171_s27 = scalar_lea.sflag [#allocation6], %s4869_s30 }
  0x55   : > { %s4881_s29 = scalar_lea.vmem [#allocation5], %s4377_s23 }
  0x56   : > { %4662 = dma.done.wait (%p8312_p6), %s171_s27, 4096  }
  0x57   : > { %4664 = vsyncadd (%p8312_p6), %s171_s27, 4294963200  ;;  %v200_v0 = vld [vmem:[%s165_s3] sm:$0xff]  ;;  %v201_v1 = vld [vmem:[%s165_s3 + $0x8] sm:$0xff]  ;;  %v214_v6 = vlaneseq  ;;  %v4690_v8 = vmov 1966171168   ;;  %s5500_s20 = scalar_lea.vmem [#allocation7], %s4377_s23 }
  0x58   : > { %v4379_v2 = vadd.f32 -1e-06, %v200_v0  ;;  %v4380_v3 = vadd.f32 -1e-06, %v201_v1  ;;  %v224_v9 = vunpack.c.l.s4 %v4690_v8  ;;  %v4897_v19 = vld [vmem:[%s4881_s29] sm:$0xff]  ;;  %v4900_v20 = vld [vmem:[%s4881_s29 + $0x10] sm:$0xff] }
  0x59   : > { %v4887_v7 = vshrl.u32 %v214_v6, 7  ;;  %v4903_v21 = vld [vmem:[%s4881_s29 + $0x18] sm:$0xff]  ;;  %v4906_v22 = vld [vmem:[%s4881_s29 + $0x20] sm:$0xff]  ;;  %v4920_v29 = vld [vmem:[%s4881_s29 + $0x28] sm:$0xff]  ;;  %s4412_s5 = sshll.u32 %s4731_s13, 7  ;;  %s4272_s14 = sshll.u32 %s5500_s20, 4  ;;  %s7969_s14 = int_to_ptr.vmem [resolvable:$true] %s4272_s14 }
  0x5a   : > { %vm204_vm0 = vcmp.lt.f32.partialorder %v4379_v2, 0.0  ;;  %vm205_vm1 = vcmp.lt.f32.partialorder %v4380_v3, 0.0  ;;  %v225_v11 = vunpack.c.0.s8 %v224_v9  ;;  %8313 = vst [vmem:[#allocation11_spill] sm:$0xff] %v4903_v21  ;;  %8314 = vst [vmem:[#allocation12_spill] sm:$0xff] %v4906_v22  ;;  %v4938_v38 = vld [vmem:[%s4881_s29 + $0x30] sm:$0xff]  ;;  %v4941_v39 = vld [vmem:[%s4881_s29 + $0x38] sm:$0xff]  ;;  %s7967_s28 = scalar_lea.hbm %s8016_s2, %s4412_s5 }
  0x5b   : > { %v206_v4 = vsel %vm204_vm0, 1e-06, %v200_v0  ;;  %v207_v5 = vsel %vm205_vm1, 1e-06, %v201_v1  ;;  %v4890_v10 = vsub.s32 0, %v4887_v7  ;;  %v8025_v12 = vsub.s32 1, %v4887_v7 }
  0x5c   : > { %4473 = vlog2.f32 %v206_v4  ;;  %v8024_v13 = vsub.s32 2, %v4887_v7  ;;  %v8023_v15 = vsub.s32 3, %v4887_v7  ;;  %v8022_v16 = vsub.s32 4, %v4887_v7  ;;  %8317 = vst [vmem:[#allocation15_spill] sm:$0xff] %v4920_v29  ;;  %8319 = vst [vmem:[#allocation17_spill] sm:$0xff] %v4938_v38  ;;  %v4945_v41 = vld [vmem:[%s4881_s29 + $0x40] sm:$0xff] }
  0x5d   : > { %4475 = vlog2.f32 %v207_v5  ;;  %v8021_v23 = vsub.s32 5, %v4887_v7  ;;  %v8020_v24 = vsub.s32 6, %v4887_v7  ;;  %v8019_v25 = vsub.s32 7, %v4887_v7  ;;  %8320 = vst [vmem:[#allocation18_spill] sm:$0xff] %v4941_v39  ;;  %8321 = vst [vmem:[#allocation19_spill] sm:$0xff] %v4945_v41  ;;  %v5013_v5 = vld [vmem:[%s4881_s29 + $0x48] sm:$0xff] }
  0x5e   : > { %v4915_v27 = vsub.s32 %v225_v11, %v4887_v7  ;;  %s4260_s26 = scalar_lea.sflag [#allocation4], %s4869_s30  ;;  %s4613_s7 = scalar_lea.vmem %s7969_s14, 4096 }
  0x5f   : > { %p4614_p13 = scmp.ne.s32.totalorder %s7969_s14, %s4613_s7  ;;  %p8816_p2 = scmp.ne.s32.totalorder %s8307_s21, 0 }
  0x60   : > { %8316 = vst [vmem:[#allocation14_spill] sm:$0xff] %v4915_v27  ;;  %s4691_s13 = smov [#allocation7]  }
  0x61   : > { %p4615_p12 = pnand %p4614_p13, %p8816_p2  ;;  %s4617_s6 = sshll.u32 %s4691_s13, 4  ;;  %s4618_s6 = int_to_ptr.vmem [resolvable:$false] %s4617_s6 }
  0x62   : > { %s4619_s8 = scalar_lea.vmem %s4618_s6, 8192  ;;  %p4620_p7 = scmp.lt.s32.totalorder %s7969_s14, %s4618_s6 }
  0x63   : > { %p4616_p10 = pneg %p4615_p12  ;;  %p4621_p8 = scmp.lt.s32.totalorder %s4619_s8, %s4613_s7 }
  0x65   : > { %p4622_p9 = por %p4621_p8, %p4620_p7 }
  0x66   : > { %v4474_v14 = vpop.eup %4473 }
  0x67   : > { %v4476_v17 = vpop.eup %4475  ;;  %v209_v18 = vmul.f32 0.6931472, %v4474_v14  ;;  %p4623_p11 = pnand %p4622_p9, %p4616_p10 }
  0x68   : > { %v4924_v31 = vmul.f32 0.6931472, %v4476_v17 }
  0x69   : > { %v4912_v26 = vrot.slane %v209_v18, %v4890_v10  ;;  %v438_v28 = vrot.slane %v209_v18, %v8025_v12  ;;  %v691_v30 = vrot.slane %v209_v18, %v8024_v13  ;;  %v944_v32 = vrot.slane %v209_v18, %v8023_v15  ;;  %v5122_v13 = vld [vmem:[%s4881_s29 + $0x78] sm:$0xff] }
  0x6a   : > { %v1197_v33 = vrot.slane %v209_v18, %v8022_v16  ;;  %v1450_v42 = vrot.slane %v209_v18, %v8021_v23  ;;  %v4951_v43 = vrot.slane %v209_v18, %v8020_v24  ;;  %v4955_v44 = vrot.slane %v209_v18, %v8019_v25  ;;  %v5109_v24 = vld [vmem:[%s4881_s29 + $0x70] sm:$0xff] }
  0x6b   : > { %8315 = vst [vmem:[#allocation13_spill] sm:$0xff] %v4912_v26  ;;  %v4932_v34 = vmul.f32 %v4912_v26, %v4897_v19  ;;  %v439_v35 = vmul.f32 %v4900_v20, %v438_v28  ;;  %v440_v36 = vmul.f32 %v4903_v21, %v438_v28  ;;  %v692_v37 = vmul.f32 %v4906_v22, %v691_v30 }
  0x6c   : > { %v693_v40 = vmul.f32 %v4920_v29, %v691_v30  ;;  %v945_v51 = vmul.f32 %v4938_v38, %v944_v32  ;;  %v946_v52 = vmul.f32 %v4941_v39, %v944_v32  ;;  %v1198_v56 = vmul.f32 %v4945_v41, %v1197_v33  ;;  %v5036_v30 = vld [vmem:[%s4881_s29 + $0x50] sm:$0xff]  ;;  %8344 = vst [vmem:[#allocation42_spill] sm:$0xff] %v5109_v24 }
  0x6d   : > { %8318 = vst [vmem:[#allocation16_spill] sm:$0xff] %v4932_v34  ;;  %v4959_v45 = vrot.slane %v4932_v34, %v4915_v27  ;;  %v443_v46 = vcombine.high %v439_v35, %v439_v35  ;;  %v4962_v47 = vrot.slane %v439_v35, %v4915_v27  ;;  %v492_v48 = vcombine.high %v440_v36, %v440_v36 }
  0x6e   : > { %v4965_v49 = vrot.slane %v440_v36, %v4915_v27  ;;  %v696_v50 = vcombine.high %v692_v37, %v692_v37  ;;  %v4978_v55 = vrot.slane %v692_v37, %v4915_v27  ;;  %v745_v60 = vcombine.high %v693_v40, %v693_v40 }
  0x6f   : > { %v4971_v53 = vrot.slane %v4959_v45, %v4915_v27  ;;  %v4975_v54 = vrot.slane %v4962_v47, %v4915_v27  ;;  %v4982_v57 = vrot.slane %v443_v46, %v4915_v27  ;;  %v4987_v59 = vrot.slane %v492_v48, %v4915_v27 }
  0x70   : > { %8322 = vst [vmem:[#allocation20_spill] sm:$0xff] %v4965_v49  ;;  %v4999_v63 = vrot.slane %v4978_v55, %v4915_v27  ;;  %v5002_v0 = vrot.slane %v693_v40, %v4915_v27  ;;  %v5007_v2 = vrot.slane %v696_v50, %v4915_v27  ;;  %v949_v3 = vcombine.high %v945_v51, %v945_v51 }
  0x71   : > { %8323 = vst [vmem:[#allocation21_spill] sm:$0xff] %v4971_v53  ;;  %8324 = vst [vmem:[#allocation22_spill] sm:$0xff] %v4975_v54  ;;  %v4991_v61 = vrot.slane %v4971_v53, %v4890_v10  ;;  %v4995_v62 = vrot.slane %v4975_v54, %v4890_v10  ;;  %v5010_v4 = vrot.slane %v945_v51, %v4915_v27  ;;  %v5054_v51 = vld [vmem:[%s4881_s29 + $0x58] sm:$0xff] }
  0x72   : > { %8325 = vst [vmem:[#allocation23_spill] sm:$0xff] %v4982_v57  ;;  %8326 = vst [vmem:[#allocation24_spill] sm:$0xff] %v4987_v59  ;;  %v5021_v9 = vrot.slane %v4999_v63, %v4890_v10  ;;  %v998_v11 = vcombine.high %v946_v52, %v946_v52  ;;  %v5026_v17 = vrot.slane %v745_v60, %v4915_v27 }
  0x73   : > { %8327 = vst [vmem:[#allocation25_spill] sm:$0xff] %v4999_v63  ;;  %8328 = vst [vmem:[#allocation26_spill] sm:$0xff] %v5002_v0  ;;  %v400_v6 = vmul.f32 %v4991_v61, %v4897_v19  ;;  %v621_v8 = vmul.f32 %v4900_v20, %v4995_v62  ;;  %v5030_v18 = vrot.slane %v5010_v4, %v4915_v27 }
  0x74   : > { %8329 = vst [vmem:[#allocation27_spill] sm:$0xff] %v5007_v2  ;;  %8330 = vst [vmem:[#allocation28_spill] sm:$0xff] %v5026_v17  ;;  %v5033_v28 = vrot.slane %v946_v52, %v4915_v27  ;;  %v874_v36 = vmul.f32 %v4906_v22, %v5021_v9  ;;  %v1199_v37 = vmul.f32 %v5013_v5, %v1197_v33  ;;  %v5252_v2 = vld [vmem:[%s4881_s29 + $0xe0] sm:$0xff] }
  0x75   : > { %8331 = vst [vmem:[#allocation29_spill] sm:$0xff] %v5030_v18  ;;  %v653_v32 = vadd.f32 %v621_v8, %v400_v6  ;;  %v5044_v40 = vrot.slane %v949_v3, %v4915_v27  ;;  %v5048_v46 = vrot.slane %v5030_v18, %v4890_v10  ;;  %v1202_v48 = vcombine.high %v1198_v56, %v1198_v56  ;;  %v5063_v3 = vld [vmem:[%s4881_s29 + $0x60] sm:$0xff] }
  0x76   : > { %8332 = vst [vmem:[#allocation30_spill] sm:$0xff] %v5033_v28  ;;  %v5051_v50 = vrot.slane %v1198_v56, %v4915_v27  ;;  %8334 = vst [vmem:[#allocation32_spill] sm:$0xff] %v5054_v51  ;;  %v5059_v6 = vrot.slane %v998_v11, %v4915_v27  ;;  %v1451_v33 = vmul.f32 %v5036_v30, %v1450_v42 }
  0x77   : > { %8333 = vst [vmem:[#allocation31_spill] sm:$0xff] %v5044_v40  ;;  %v906_v52 = vadd.f32 %v874_v36, %v653_v32  ;;  %8336 = vst [vmem:[#allocation34_spill] sm:$0xff] %v5063_v3  ;;  %v1127_v56 = vmul.f32 %v4938_v38, %v5048_v46  ;;  %v1251_v32 = vcombine.high %v1199_v37, %v1199_v37  ;;  %v5074_v36 = vld [vmem:[%s4881_s29 + $0x68] sm:$0xff] }
  0x78   : > { %8335 = vst [vmem:[#allocation33_spill] sm:$0xff] %v5059_v6  ;;  %v5071_v35 = vrot.slane %v5051_v50, %v4915_v27  ;;  %8338 = vst [vmem:[#allocation36_spill] sm:$0xff] %v5074_v36  ;;  %v5077_v11 = vrot.slane %v1202_v48, %v4915_v27  ;;  %v5080_v1 = vrot.slane %v1199_v37, %v4915_v27 }
  0x79   : > { %v1452_v60 = vmul.f32 %v5054_v51, %v1450_v42  ;;  %v1455_v8 = vcombine.high %v1451_v33, %v1451_v33  ;;  %v1159_v14 = vadd.f32 %v1127_v56, %v906_v52  ;;  %v5088_v25 = vrot.slane %v1451_v33, %v4915_v27  ;;  %8373 = vst [vmem:[#allocation66_spill] sm:$0xff] %v5252_v2 }
  0x7a   : > { %8337 = vst [vmem:[#allocation35_spill] sm:$0xff] %v5071_v35  ;;  %8339 = vst [vmem:[#allocation37_spill] sm:$0xff] %v5077_v11  ;;  %v5085_v58 = vrot.slane %v5071_v35, %v4890_v10  ;;  %v1704_v48 = vmul.f32 %v5063_v3, %v4951_v43  ;;  %v1705_v42 = vmul.f32 %v5074_v36, %v4951_v43 }
  0x7b   : > { %8340 = vst [vmem:[#allocation38_spill] sm:$0xff] %v5080_v1  ;;  %v1504_v37 = vcombine.high %v1452_v60, %v1452_v60  ;;  %v5095_v23 = vrot.slane %v1452_v60, %v4915_v27  ;;  %v5100_v52 = vrot.slane %v1251_v32, %v4915_v27  ;;  %v5106_v56 = vrot.slane %v5088_v25, %v4915_v27 }
  0x7c   : > { %v1380_v33 = vmul.f32 %v4945_v41, %v5085_v58  ;;  %v1708_v16 = vcombine.high %v1704_v48, %v1704_v48  ;;  %v5114_v15 = vrot.slane %v1455_v8, %v4915_v27  ;;  %v5119_v32 = vrot.slane %v1704_v48, %v4915_v27 }
  0x7d   : > { %8341 = vst [vmem:[#allocation39_spill] sm:$0xff] %v5095_v23  ;;  %8342 = vst [vmem:[#allocation40_spill] sm:$0xff] %v5100_v52  ;;  %v5125_v52 = vrot.slane %v1504_v37, %v4915_v27  ;;  %v5129_v6 = vrot.slane %v5106_v56, %v4890_v10  ;;  %v1757_v60 = vcombine.high %v1705_v42, %v1705_v42  ;;  %v5143_v37 = vld [vmem:[%s4881_s29 + $0x80] sm:$0xff]  ;;  %v8353_v1 = vsub.s32 1, %v4887_v7 }
  0x7e   : > { %8343 = vst [vmem:[#allocation41_spill] sm:$0xff] %v5106_v56  ;;  %8345 = vst [vmem:[#allocation43_spill] sm:$0xff] %v5114_v15  ;;  %v1412_v12 = vadd.f32 %v1380_v33, %v1159_v14  ;;  %v5135_v43 = vrot.slane %v5119_v32, %v4915_v27  ;;  %v5138_v48 = vrot.slane %v1705_v42, %v4915_v27  ;;  %v5231_v15 = vld [vmem:[%s4881_s29 + $0xd0] sm:$0xff] }
  0x7f   : > { %8346 = vst [vmem:[#allocation44_spill] sm:$0xff] %v5125_v52  ;;  %v1957_v14 = vmul.f32 %v5109_v24, %v4955_v44  ;;  %8349 = vst [vmem:[#allocation47_spill] sm:$0xff] %v5143_v37  ;;  %v1633_v33 = vmul.f32 %v5036_v30, %v5129_v6  ;;  %v5148_v52 = vrot.slane %v1708_v16, %v4915_v27  ;;  %v5166_v16 = vld [vmem:[%s4881_s29 + $0x90] sm:$0xff] }
  0x80   : > { %8347 = vst [vmem:[#allocation45_spill] sm:$0xff] %v5135_v43  ;;  %8348 = vst [vmem:[#allocation46_spill] sm:$0xff] %v5138_v48  ;;  %v5152_v8 = vmul.f32 %v5122_v13, %v4955_v44  ;;  %v5156_v17 = vrot.slane %v4924_v31, %v4890_v10  ;;  %v5160_v42 = vrot.slane %v5135_v43, %v4890_v10  ;;  %v5211_v48 = vld [vmem:[%s4881_s29 + $0xb0] sm:$0xff] }
  0x81   : > { %8350 = vst [vmem:[#allocation48_spill] sm:$0xff] %v5148_v52  ;;  %v1961_v59 = vcombine.high %v1957_v14, %v1957_v14  ;;  %v5163_v23 = vrot.slane %v1957_v14, %v4915_v27  ;;  %8352 = vst [vmem:[#allocation50_spill] sm:$0xff] %v5166_v16  ;;  %v5171_v44 = vrot.slane %v4924_v31, %v8353_v1 }
  0x82   : > { %8351 = vst [vmem:[#allocation49_spill] sm:$0xff] %v5156_v17  ;;  %v1665_v28 = vadd.f32 %v1633_v33, %v1412_v12  ;;  %v5176_v49 = vrot.slane %v1757_v60, %v4915_v27  ;;  %v5180_v14 = vmul.f32 %v5143_v37, %v5156_v17  ;;  %v1886_v1 = vmul.f32 %v5063_v3, %v5160_v42  ;;  %v5208_v17 = vld [vmem:[%s4881_s29 + $0xa0] sm:$0xff] }
  0x83   : > { %8354 = vst [vmem:[#allocation51_spill] sm:$0xff] %v5171_v44  ;;  %v5188_v12 = vrot.slane %v5163_v23, %v4915_v27  ;;  %v2010_v60 = vcombine.high %v5152_v8, %v5152_v8  ;;  %v5193_v33 = vrot.slane %v1961_v59, %v4915_v27  ;;  %v5197_v0 = vrot.slane %v5152_v8, %v4915_v27 }
  0x84   : > { %8355 = vst [vmem:[#allocation52_spill] sm:$0xff] %v5176_v49  ;;  %8356 = vst [vmem:[#allocation53_spill] sm:$0xff] %v5180_v14  ;;  %v5201_v26 = vrot.slane %v5180_v14, %v4915_v27  ;;  %v5205_v49 = vmul.f32 %v5166_v16, %v5171_v44  ;;  %v1918_v52 = vadd.f32 %v1886_v1, %v1665_v28  ;;  %v8362_v8 = vsub.s32 2, %v4887_v7  ;;  %v5228_v44 = vld [vmem:[%s4881_s29 + $0xc0] sm:$0xff] }
  0x85   : > { %8357 = vst [vmem:[#allocation54_spill] sm:$0xff] %v5188_v12  ;;  %8358 = vst [vmem:[#allocation55_spill] sm:$0xff] %v5193_v33  ;;  %v5215_v59 = vrot.slane %v5188_v12, %v4890_v10  ;;  %v8364_v14 = vsub.s32 3, %v4887_v7 }
  0x86   : > { %8359 = vst [vmem:[#allocation56_spill] sm:$0xff] %v5197_v0  ;;  %8360 = vst [vmem:[#allocation57_spill] sm:$0xff] %v5205_v49  ;;  %v5220_v0 = vrot.slane %v4924_v31, %v8362_v8  ;;  %v5235_v28 = vrot.slane %v5201_v26, %v4915_v27  ;;  %v5239_v1 = vrot.slane %v5205_v49, %v4915_v27  ;;  %v8369_v8 = vsub.s32 4, %v4887_v7 }
  0x87   : > { %8361 = vst [vmem:[#allocation58_spill] sm:$0xff] %v5211_v48  ;;  %v5225_v33 = vrot.slane %v4924_v31, %v8364_v14  ;;  %8366 = vst [vmem:[#allocation61_spill] sm:$0xff] %v5228_v44  ;;  %v8371_v14 = vsub.s32 5, %v4887_v7  ;;  %v2139_v57 = vmul.f32 %v5109_v24, %v5215_v59 }
  0x88   : > { %8363 = vst [vmem:[#allocation59_spill] sm:$0xff] %v5220_v0  ;;  %8367 = vst [vmem:[#allocation62_spill] sm:$0xff] %v5231_v15  ;;  %v5244_v11 = vrot.slane %v4924_v31, %v8369_v8  ;;  %v5258_v49 = vmul.f32 %v5208_v17, %v5220_v0  ;;  %v8376_v8 = vsub.s32 6, %v4887_v7  ;;  %v5273_v43 = vrot.slane %v5239_v1, %v4915_v27 }
  0x89   : > { %8365 = vst [vmem:[#allocation60_spill] sm:$0xff] %v5225_v33  ;;  %8368 = vst [vmem:[#allocation63_spill] sm:$0xff] %v5235_v28  ;;  %v5249_v40 = vrot.slane %v4924_v31, %v8371_v14  ;;  %v5262_v34 = vmul.f32 %v5211_v48, %v5225_v33  ;;  %v2315_v14 = vrot.slane %v5235_v28, %v4890_v10 }
  0x8a   : > { %8370 = vst [vmem:[#allocation64_spill] sm:$0xff] %v5244_v11  ;;  %8374 = vst [vmem:[#allocation67_spill] sm:$0xff] %v5258_v49  ;;  %v5267_v12 = vrot.slane %v4924_v31, %v8376_v8  ;;  %v5277_v0 = vmul.f32 %v5228_v44, %v5244_v11  ;;  %v2171_v56 = vadd.f32 %v2139_v57, %v1918_v52 }
  0x8b   : > { %8372 = vst [vmem:[#allocation65_spill] sm:$0xff] %v5249_v40  ;;  %8375 = vst [vmem:[#allocation68_spill] sm:$0xff] %v5262_v34  ;;  %v5281_v33 = vmul.f32 %v5231_v15, %v5249_v40  ;;  %v5285_v8 = vrot.slane %v5258_v49, %v4915_v27  ;;  %v5289_v28 = vrot.slane %v5262_v34, %v4915_v27  ;;  %v5307_v40 = vld [vmem:[%s4881_s29 + $0xf0] sm:$0xff] }
  0x8c   : > { %8377 = vst [vmem:[#allocation69_spill] sm:$0xff] %v5267_v12  ;;  %8378 = vst [vmem:[#allocation70_spill] sm:$0xff] %v5273_v43  ;;  %v5293_v35 = vmul.f32 %v5252_v2, %v5267_v12  ;;  %v2392_v11 = vmul.f32 %v5143_v37, %v2315_v14  ;;  %v2568_v18 = vrot.slane %v5273_v43, %v4890_v10 }
  0x8d   : > { %8379 = vst [vmem:[#allocation71_spill] sm:$0xff] %v5277_v0  ;;  %8380 = vst [vmem:[#allocation72_spill] sm:$0xff] %v5281_v33  ;;  %v5300_v57 = vrot.slane %v5277_v0, %v4915_v27  ;;  %v5304_v52 = vrot.slane %v5281_v33, %v4915_v27  ;;  %v5311_v12 = vrot.slane %v5285_v8, %v4915_v27  ;;  %v8386_v0 = vsub.s32 7, %v4887_v7 }
  0x8e   : > { %8381 = vst [vmem:[#allocation73_spill] sm:$0xff] %v5293_v35  ;;  %v5315_v34 = vrot.slane %v5289_v28, %v4915_v27  ;;  %v5319_v49 = vrot.slane %v5293_v35, %v4915_v27  ;;  %v2424_v33 = vadd.f32 %v2392_v11, %v2171_v56  ;;  %v2645_v63 = vmul.f32 %v5166_v16, %v2568_v18  ;;  %v5348_v11 = vld [vmem:[%s4881_s29 + $0x8] sm:$0xff] }
  0x8f   : > { %8382 = vst [vmem:[#allocation74_spill] sm:$0xff] %v5304_v52  ;;  %8383 = vst [vmem:[#allocation75_spill] sm:$0xff] %v5311_v12  ;;  %v5324_v43 = vrot.slane %v4924_v31, %v8386_v0  ;;  %v5329_v54 = vrot.slane %v5300_v57, %v4915_v27  ;;  %v5333_v53 = vrot.slane %v5304_v52, %v4915_v27 }
  0x90   : > { %8384 = vst [vmem:[#allocation76_spill] sm:$0xff] %v5315_v34  ;;  %8385 = vst [vmem:[#allocation77_spill] sm:$0xff] %v5319_v49  ;;  %v2821_v35 = vrot.slane %v5311_v12, %v4890_v10  ;;  %v3074_v7 = vrot.slane %v5315_v34, %v4890_v10  ;;  %v5341_v31 = vrot.slane %v5319_v49, %v4915_v27 }
  0x91   : > { %8387 = vst [vmem:[#allocation78_spill] sm:$0xff] %v5324_v43  ;;  %8388 = vst [vmem:[#allocation79_spill] sm:$0xff] %v5329_v54  ;;  %v5345_v0 = vmul.f32 %v5307_v40, %v5324_v43  ;;  %v2677_v56 = vadd.f32 %v2645_v63, %v2424_v33  ;;  %v3327_v16 = vrot.slane %v5329_v54, %v4890_v10 }
  0x92   : > { %8389 = vst [vmem:[#allocation80_spill] sm:$0xff] %v5333_v53  ;;  %8390 = vst [vmem:[#allocation81_spill] sm:$0xff] %v5341_v31  ;;  %v3580_v12 = vrot.slane %v5333_v53, %v4890_v10  ;;  %v401_v34 = vmul.f32 %v4991_v61, %v5348_v11  ;;  %v2898_v37 = vmul.f32 %v5208_v17, %v2821_v35 }
  0x93   : > { %8391 = vst [vmem:[#allocation82_spill] sm:$0xff] %v5345_v0  ;;  %v3151_v49 = vmul.f32 %v5211_v48, %v3074_v7  ;;  %v3833_v43 = vrot.slane %v5341_v31, %v4890_v10  ;;  %v5362_v52 = vrot.slane %v5345_v0, %v4915_v27  ;;  %v5367_v33 = vrot.slane %v2010_v60, %v4915_v27 }
  0x94   : > { %v622_v61 = vmul.f32 %v4903_v21, %v4995_v62  ;;  %v875_v53 = vmul.f32 %v4920_v29, %v5021_v9  ;;  %v2930_v54 = vadd.f32 %v2898_v37, %v2677_v56  ;;  %v3404_v31 = vmul.f32 %v5228_v44, %v3327_v16 }
  0x95   : > { %8392 = vst [vmem:[#allocation83_spill] sm:$0xff] %v5367_v33  ;;  %v3657_v0 = vmul.f32 %v5231_v15, %v3580_v12  ;;  %v5377_v63 = vrot.slane %v5362_v52, %v4915_v27  ;;  %v3910_v60 = vmul.f32 %v5252_v2, %v3833_v43  ;;  %v1128_v62 = vmul.f32 %v4941_v39, %v5048_v46  ;;  %v5391_v2 = vld [vmem:[%s4881_s29 + $0x88] sm:$0xff] }
  0x96   : > { %v654_v33 = vadd.f32 %v622_v61, %v401_v34  ;;  %v1381_v9 = vmul.f32 %v5013_v5, %v5085_v58  ;;  %v3183_v37 = vadd.f32 %v3151_v49, %v2930_v54  ;;  %v1634_v15 = vmul.f32 %v5054_v51, %v5129_v6  ;;  %v5394_v34 = vld [vmem:[%s4881_s29 + $0x98] sm:$0xff]  ;;  %v5401_v61 = vld [vmem:[%s4881_s29 + $0xa8] sm:$0xff] }
  0x97   : > { %8393 = vst [vmem:[#allocation84_spill] sm:$0xff] %v5377_v63  ;;  %v4086_v56 = vrot.slane %v5377_v63, %v4890_v10  ;;  %v1887_v44 = vmul.f32 %v5074_v36, %v5160_v42  ;;  %v2140_v58 = vmul.f32 %v5122_v13, %v5215_v59  ;;  %v2393_v49 = vmul.f32 %v5391_v2, %v2315_v14  ;;  %v5404_v63 = vld [vmem:[%s4881_s29 + $0xb8] sm:$0xff] }
  0x98   : > { %v907_v46 = vadd.f32 %v875_v53, %v654_v33  ;;  %v2646_v54 = vmul.f32 %v5394_v34, %v2568_v18  ;;  %v3436_v6 = vadd.f32 %v3404_v31, %v3183_v37  ;;  %v5408_v42 = vmul.f32 %v5401_v61, %v2821_v35  ;;  %v5414_v53 = vld [vmem:[%s4881_s29 + $0xc8] sm:$0xff]  ;;  %v5417_v59 = vld [vmem:[%s4881_s29 + $0xd8] sm:$0xff] }
  0x99   : > { %v4163_v51 = vmul.f32 %v5307_v40, %v4086_v56  ;;  %v5411_v36 = vmul.f32 %v5404_v63, %v3074_v7  ;;  %v5420_v14 = vmul.f32 %v5414_v53, %v3327_v16  ;;  %v5423_v31 = vmul.f32 %v5417_v59, %v3580_v12 }
  0x9a   : > { %v1160_v18 = vadd.f32 %v1128_v62, %v907_v46  ;;  %v237_v35 = vcombine.high %v4959_v45, %v4959_v45  ;;  %v3689_v33 = vadd.f32 %v3657_v0, %v3436_v6  ;;  %v8394_v7 = vcombine.high %v4962_v47, %v4962_v47 }
  0x9b   : > { %v8396_v62 = vcombine.high %v4978_v55, %v4978_v55  ;;  %v8398_v16 = vcombine.high %v5010_v4, %v5010_v4  ;;  %v8401_v47 = vcombine.high %v5051_v50, %v5051_v50  ;;  %v8403_v55 = vcombine.high %v5088_v25, %v5088_v25  ;;  %v5461_v4 = vld [vmem:[%s4881_s29 + $0xe8] sm:$0xff] }
  0x9c   : > { %v5431_v37 = vrot.slane %v8394_v7, %v4915_v27  ;;  %v1413_v45 = vadd.f32 %v1381_v9, %v1160_v18  ;;  %v5446_v0 = vrot.slane %v237_v35, %v4915_v27  ;;  %8405 = vst [vmem:[#allocation91_spill] sm:$0xff] %v5461_v4  ;;  %v5477_v35 = vmul.f32 %v5461_v4, %v3833_v43 }
  0x9d   : > { %v5437_v46 = vrot.slane %v8396_v62, %v4915_v27  ;;  %v5443_v12 = vrot.slane %v8398_v16, %v4915_v27  ;;  %v5452_v6 = vrot.slane %v8401_v47, %v4915_v27  ;;  %v5458_v7 = vrot.slane %v8403_v55, %v4915_v27  ;;  %v5464_v16 = vld [vmem:[%s4881_s29 + $0xf8] sm:$0xff] }
  0x9e   : > { %8395 = vst [vmem:[#allocation85_spill] sm:$0xff] %v5431_v37  ;;  %8400 = vst [vmem:[#allocation88_spill] sm:$0xff] %v5446_v0  ;;  %v3942_v62 = vadd.f32 %v3910_v60, %v3689_v33  ;;  %v548_v9 = vrot.slane %v5431_v37, %v4890_v10  ;;  %v1666_v25 = vadd.f32 %v1634_v15, %v1413_v45 }
  0x9f   : > { %8397 = vst [vmem:[#allocation86_spill] sm:$0xff] %v5437_v46  ;;  %8399 = vst [vmem:[#allocation87_spill] sm:$0xff] %v5443_v12  ;;  %v5470_v50 = vrot.slane %v5437_v46, %v4890_v10  ;;  %v5474_v18 = vrot.slane %v5443_v12, %v4890_v10  ;;  %v5480_v60 = vmul.f32 %v5464_v16, %v4086_v56 }
  0xa0   : > { %8402 = vst [vmem:[#allocation89_spill] sm:$0xff] %v5452_v6  ;;  %8404 = vst [vmem:[#allocation90_spill] sm:$0xff] %v5458_v7  ;;  %v327_v33 = vrot.slane %v5446_v0, %v4890_v10  ;;  %v4195_v47 = vadd.f32 %v4163_v51, %v3942_v62  ;;  %v623_v55 = vmul.f32 %v4900_v20, %v548_v9 }
  0xa1   : > { %8406 = vst [vmem:[#allocation92_spill] sm:$0xff] %v5464_v16  ;;  %v5487_v46 = vrot.slane %v5452_v6, %v4890_v10  ;;  %v5491_v12 = vrot.slane %v5458_v7, %v4890_v10  ;;  %v1919_v15 = vadd.f32 %v1887_v44, %v1666_v25  ;;  %v876_v56 = vmul.f32 %v4906_v22, %v5470_v50 }
  0xa2   : > { %v402_v43 = vmul.f32 %v327_v33, %v4897_v19  ;;  %v1129_v45 = vmul.f32 %v4938_v38, %v5474_v18  ;;  %4227 = vst [vmem:[%s5500_s20] sm:$0xff] %v4195_v47  ;;  %v8407_v51 = vcombine.high %v5119_v32, %v5119_v32  ;;  %v8409_v44 = vcombine.high %v5163_v23, %v5163_v23 }
  0xa3   : > { %v2229_v7 = vcombine.high %v5201_v26, %v5201_v26  ;;  %v2482_v6 = vcombine.high %v5239_v1, %v5239_v1  ;;  %v2172_v37 = vadd.f32 %v2140_v58, %v1919_v15  ;;  %v2735_v0 = vcombine.high %v5285_v8, %v5285_v8 }
  0xa4   : > { %v5507_v62 = vrot.slane %v8407_v51, %v4915_v27  ;;  %v5513_v25 = vrot.slane %v8409_v44, %v4915_v27  ;;  %v655_v47 = vadd.f32 %v623_v55, %v402_v43  ;;  %v2988_v32 = vcombine.high %v5289_v28, %v5289_v28 }
  0xa5   : > { %v5528_v44 = vrot.slane %v2229_v7, %v4915_v27  ;;  %v5531_v26 = vrot.slane %v2482_v6, %v4915_v27  ;;  %v2425_v1 = vadd.f32 %v2393_v49, %v2172_v37  ;;  %v1382_v8 = vmul.f32 %v4945_v41, %v5487_v46 }
  0xa6   : > { %8408 = vst [vmem:[#allocation93_spill] sm:$0xff] %v5507_v62  ;;  %8410 = vst [vmem:[#allocation94_spill] sm:$0xff] %v5513_v25  ;;  %v1813_v51 = vrot.slane %v5507_v62, %v4890_v10  ;;  %v2066_v23 = vrot.slane %v5513_v25, %v4890_v10  ;;  %v908_v58 = vadd.f32 %v876_v56, %v655_v47 }
  0xa7   : > { %8411 = vst [vmem:[#allocation95_spill] sm:$0xff] %v5528_v44  ;;  %8412 = vst [vmem:[#allocation96_spill] sm:$0xff] %v5531_v26  ;;  %v1635_v28 = vmul.f32 %v5036_v30, %v5491_v12  ;;  %v2319_v55 = vrot.slane %v5528_v44, %v4890_v10  ;;  %v2572_v15 = vrot.slane %v5531_v26, %v4890_v10 }
  0xa8   : > { %v5542_v7 = vrot.slane %v2735_v0, %v4915_v27  ;;  %v5545_v6 = vrot.slane %v2988_v32, %v4915_v27  ;;  %v2678_v49 = vadd.f32 %v2646_v54, %v2425_v1  ;;  %v1161_v37 = vadd.f32 %v1129_v45, %v908_v58  ;;  %v8415_v0 = vld [vmem:[#allocation74_spill] sm:$0xff]  ;;  %v8416_v45 = vld [vmem:[#allocation47_spill] sm:$0xff] }
  0xa9   : > { %v1888_v43 = vmul.f32 %v5063_v3, %v1813_v51  ;;  %v2141_v56 = vmul.f32 %v5109_v24, %v2066_v23  ;;  %v3241_v26 = vcombine.high %v5300_v57, %v5300_v57  ;;  %v3494_v25 = vcombine.high %v8415_v0, %v8415_v0  ;;  %v8417_v58 = vld [vmem:[#allocation50_spill] sm:$0xff] }
  0xaa   : > { %8413 = vst [vmem:[#allocation97_spill] sm:$0xff] %v5542_v7  ;;  %8414 = vst [vmem:[#allocation98_spill] sm:$0xff] %v5545_v6  ;;  %v2825_v47 = vrot.slane %v5542_v7, %v4890_v10  ;;  %v3078_v44 = vrot.slane %v5545_v6, %v4890_v10  ;;  %v2931_v32 = vadd.f32 %v5408_v42, %v2678_v49  ;;  %v8420_v6 = vld [vmem:[#allocation77_spill] sm:$0xff] }
  0xab   : > { %v1414_v54 = vadd.f32 %v1382_v8, %v1161_v37  ;;  %v2394_v1 = vmul.f32 %v8416_v45, %v2319_v55  ;;  %v2647_v62 = vmul.f32 %v8417_v58, %v2572_v15  ;;  %v5561_v24 = vrot.slane %v3241_v26, %v4915_v27 }
  0xac   : > { %v5564_v7 = vrot.slane %v3494_v25, %v4915_v27  ;;  %v3747_v3 = vcombine.high %v8420_v6, %v8420_v6  ;;  %v4000_v57 = vcombine.high %v5362_v52, %v5362_v52  ;;  %v3184_v0 = vadd.f32 %v5411_v36, %v2931_v32 }
  0xad   : > { %8418 = vst [vmem:[#allocation74_spill] sm:$0xff] %v5561_v24  ;;  %v1667_v42 = vadd.f32 %v1635_v28, %v1414_v54  ;;  %v403_v8 = vmul.f32 %v327_v33, %v5348_v11  ;;  %v624_v49 = vmul.f32 %v4903_v21, %v548_v9  ;;  %v3331_v26 = vrot.slane %v5561_v24, %v4890_v10 }
  0xae   : > { %8419 = vst [vmem:[#allocation47_spill] sm:$0xff] %v5564_v7  ;;  %v3584_v25 = vrot.slane %v5564_v7, %v4890_v10  ;;  %v5578_v37 = vrot.slane %v3747_v3, %v4915_v27  ;;  %v5581_v6 = vrot.slane %v4000_v57, %v4915_v27  ;;  %v3437_v52 = vadd.f32 %v5420_v14, %v3184_v0 }
  0xaf   : > { %v1920_v36 = vadd.f32 %v1888_v43, %v1667_v42  ;;  %v656_v28 = vadd.f32 %v624_v49, %v403_v8  ;;  %v877_v33 = vmul.f32 %v4920_v29, %v5470_v50  ;;  %v2900_v9 = vmul.f32 %v5208_v17, %v2825_v47  ;;  %v8423_v43 = vld [vmem:[#allocation61_spill] sm:$0xff]  ;;  %v8424_v50 = vld [vmem:[#allocation62_spill] sm:$0xff] }
  0xb0   : > { %8421 = vst [vmem:[#allocation50_spill] sm:$0xff] %v5578_v37  ;;  %8422 = vst [vmem:[#allocation77_spill] sm:$0xff] %v5581_v6  ;;  %v3153_v32 = vmul.f32 %v5211_v48, %v3078_v44  ;;  %v3837_v54 = vrot.slane %v5578_v37, %v4890_v10  ;;  %v4090_v3 = vrot.slane %v5581_v6, %v4890_v10  ;;  %v8425_v8 = vld [vmem:[#allocation66_spill] sm:$0xff] }
  0xb1   : > { %v3690_v57 = vadd.f32 %v5423_v31, %v3437_v52  ;;  %v2173_v27 = vadd.f32 %v2141_v56, %v1920_v36  ;;  %v909_v7 = vadd.f32 %v877_v33, %v656_v28  ;;  %v1130_v14 = vmul.f32 %v4941_v39, %v5474_v18  ;;  %v8426_v31 = vld [vmem:[#allocation32_spill] sm:$0xff] }
  0xb2   : > { %v3406_v0 = vmul.f32 %v8423_v43, %v3331_v26  ;;  %v3659_v42 = vmul.f32 %v8424_v50, %v3584_v25  ;;  %v3912_v49 = vmul.f32 %v8425_v8, %v3837_v54  ;;  %v1383_v24 = vmul.f32 %v5013_v5, %v5487_v46  ;;  %v8427_v18 = vld [vmem:[#allocation36_spill] sm:$0xff] }
  0xb3   : > { %v3943_v37 = vadd.f32 %v5477_v35, %v3690_v57  ;;  %v2426_v6 = vadd.f32 %v2394_v1, %v2173_v27  ;;  %v1162_v29 = vadd.f32 %v1130_v14, %v909_v7  ;;  %v1636_v56 = vmul.f32 %v8426_v31, %v5491_v12  ;;  %v8428_v57 = vld [vmem:[#allocation21_spill] sm:$0xff] }
  0xb4   : > { %v4165_v52 = vmul.f32 %v5307_v40, %v4090_v3  ;;  %v1889_v36 = vmul.f32 %v8427_v18, %v1813_v51  ;;  %v2142_v28 = vmul.f32 %v5122_v13, %v2066_v23  ;;  %v2395_v33 = vmul.f32 %v5391_v2, %v2319_v55 }
  0xb5   : > { %v4196_v8 = vadd.f32 %v5480_v60, %v3943_v37  ;;  %v2679_v39 = vadd.f32 %v2647_v62, %v2426_v6  ;;  %v1415_v46 = vadd.f32 %v1383_v24, %v1162_v29  ;;  %v2648_v35 = vmul.f32 %v5394_v34, %v2572_v15  ;;  %v8429_v60 = vld [vmem:[#allocation22_spill] sm:$0xff]  ;;  %v8430_v29 = vld [vmem:[#allocation25_spill] sm:$0xff] }
  0xb6   : > { %v2901_v27 = vmul.f32 %v5401_v61, %v2825_v47  ;;  %v3154_v7 = vmul.f32 %v5404_v63, %v3078_v44  ;;  %v3407_v12 = vmul.f32 %v5414_v53, %v3331_v26  ;;  %v5613_v1 = vmul.f32 %v5417_v59, %v3584_v25  ;;  %v8431_v15 = vld [vmem:[#allocation29_spill] sm:$0xff]  ;;  %v8432_v47 = vld [vmem:[#allocation35_spill] sm:$0xff] }
  0xb7   : > { %4228 = vst [vmem:[%s5500_s20 + $0x8] sm:$0xff] %v4196_v8  ;;  %v2932_v51 = vadd.f32 %v2900_v9, %v2679_v39  ;;  %v1668_v23 = vadd.f32 %v1636_v56, %v1415_v46  ;;  %v267_v55 = vcombine.high %v8428_v57, %v8428_v57  ;;  %v488_v24 = vcombine.high %v8429_v60, %v8429_v60  ;;  %v8433_v25 = vld [vmem:[#allocation41_spill] sm:$0xff] }
  0xb8   : > { %v741_v62 = vcombine.high %v8430_v29, %v8430_v29  ;;  %v994_v44 = vcombine.high %v8431_v15, %v8431_v15  ;;  %v1247_v26 = vcombine.high %v8432_v47, %v8432_v47  ;;  %v1500_v37 = vcombine.high %v8433_v25, %v8433_v25 }
  0xb9   : > { %v3185_v39 = vadd.f32 %v3153_v32, %v2932_v51  ;;  %v1921_v6 = vadd.f32 %v1889_v36, %v1668_v23  ;;  %v331_v9 = vrot.slane %v267_v55, %v4890_v10  ;;  %v552_v14 = vrot.slane %v488_v24, %v4890_v10 }
  0xba   : > { %v3913_v8 = vmul.f32 %v5461_v4, %v3837_v54  ;;  %v805_v56 = vrot.slane %v741_v62, %v4890_v10  ;;  %v1058_v46 = vrot.slane %v994_v44, %v4890_v10  ;;  %v5634_v57 = vrot.slane %v1247_v26, %v4890_v10  ;;  %v8434_v44 = vld [vmem:[#allocation45_spill] sm:$0xff]  ;;  %v8436_v26 = vld [vmem:[#allocation63_spill] sm:$0xff] }
  0xbb   : > { %v3438_v60 = vadd.f32 %v3406_v0, %v3185_v39  ;;  %v2174_v29 = vadd.f32 %v2142_v28, %v1921_v6  ;;  %v404_v15 = vmul.f32 %v331_v9, %v4897_v19  ;;  %v625_v32 = vmul.f32 %v4900_v20, %v552_v14  ;;  %v8435_v28 = vld [vmem:[#allocation54_spill] sm:$0xff] }
  0xbc   : > { %v878_v36 = vmul.f32 %v4906_v22, %v805_v56  ;;  %v1131_v51 = vmul.f32 %v4938_v38, %v1058_v46  ;;  %v1384_v54 = vmul.f32 %v4945_v41, %v5634_v57  ;;  %v1564_v23 = vrot.slane %v1500_v37, %v4890_v10  ;;  %v8437_v39 = vld [vmem:[#allocation70_spill] sm:$0xff]  ;;  %v8438_v38 = vld [vmem:[#allocation75_spill] sm:$0xff] }
  0xbd   : > { %v3691_v55 = vadd.f32 %v3659_v42, %v3438_v60  ;;  %v2427_v24 = vadd.f32 %v2395_v33, %v2174_v29  ;;  %v657_v62 = vadd.f32 %v625_v32, %v404_v15  ;;  %v1753_v0 = vcombine.high %v8434_v44, %v8434_v44 }
  0xbe   : > { %v2006_v47 = vcombine.high %v8435_v28, %v8435_v28  ;;  %v2259_v25 = vcombine.high %v8436_v26, %v8436_v26  ;;  %v2512_v6 = vcombine.high %v8437_v39, %v8437_v39  ;;  %v2765_v41 = vcombine.high %v8438_v38, %v8438_v38  ;;  %v8439_v38 = vld [vmem:[#allocation34_spill] sm:$0xff] }
  0xbf   : > { %v3944_v22 = vadd.f32 %v3912_v49, %v3691_v55  ;;  %v2680_v42 = vadd.f32 %v2648_v35, %v2427_v24  ;;  %v910_v33 = vadd.f32 %v878_v36, %v657_v62  ;;  %v1817_v37 = vrot.slane %v1753_v0, %v4890_v10  ;;  %v8440_v55 = vld [vmem:[#allocation42_spill] sm:$0xff]  ;;  %v8441_v0 = vld [vmem:[#allocation76_spill] sm:$0xff] }
  0xc0   : > { %v4166_v60 = vmul.f32 %v5464_v16, %v4090_v3  ;;  %v1637_v29 = vmul.f32 %v5036_v30, %v1564_v23  ;;  %v2070_v15 = vrot.slane %v2006_v47, %v4890_v10  ;;  %v2323_v32 = vrot.slane %v2259_v25, %v4890_v10  ;;  %v8442_v25 = vld [vmem:[#allocation79_spill] sm:$0xff] }
  0xc1   : > { %v4197_v44 = vadd.f32 %v4165_v52, %v3944_v22  ;;  %v2933_v28 = vadd.f32 %v2901_v27, %v2680_v42  ;;  %v1163_v26 = vadd.f32 %v1131_v51, %v910_v33  ;;  %v2576_v39 = vrot.slane %v2512_v6, %v4890_v10  ;;  %v8443_v52 = vld [vmem:[#allocation80_spill] sm:$0xff]  ;;  %v8444_v51 = vld [vmem:[#allocation81_spill] sm:$0xff] }
  0xc2   : > { %v1890_v49 = vmul.f32 %v8439_v38, %v1817_v37  ;;  %v2143_v35 = vmul.f32 %v8440_v55, %v2070_v15  ;;  %v2396_v36 = vmul.f32 %v8416_v45, %v2323_v32  ;;  %v2829_v24 = vrot.slane %v2765_v41, %v4890_v10  ;;  %v8445_v42 = vld [vmem:[#allocation84_spill] sm:$0xff] }
  0xc3   : > { %4229 = vst [vmem:[%s5500_s20 + $0x10] sm:$0xff] %v4197_v44  ;;  %v3186_v3 = vadd.f32 %v3154_v7, %v2933_v28  ;;  %v1416_v62 = vadd.f32 %v1384_v54, %v1163_v26  ;;  %v3018_v47 = vcombine.high %v8441_v0, %v8441_v0  ;;  %v3271_v22 = vcombine.high %v8442_v25, %v8442_v25 }
  0xc4   : > { %v3524_v27 = vcombine.high %v8443_v52, %v8443_v52  ;;  %v3777_v6 = vcombine.high %v8444_v51, %v8444_v51  ;;  %v4030_v33 = vcombine.high %v8445_v42, %v8445_v42  ;;  %v405_v41 = vmul.f32 %v331_v9, %v5348_v11 }
  0xc5   : > { %v3439_v44 = vadd.f32 %v3407_v12, %v3186_v3  ;;  %v1669_v7 = vadd.f32 %v1637_v29, %v1416_v62  ;;  %v3082_v54 = vrot.slane %v3018_v47, %v4890_v10  ;;  %v3335_v28 = vrot.slane %v3271_v22, %v4890_v10 }
  0xc6   : > { %v3588_v26 = vrot.slane %v3524_v27, %v4890_v10  ;;  %v3841_v0 = vrot.slane %v3777_v6, %v4890_v10  ;;  %v5680_v25 = vrot.slane %v4030_v33, %v4890_v10  ;;  %v626_v52 = vmul.f32 %v4903_v21, %v552_v14  ;;  %v8446_v6 = vld [vmem:[#allocation15_spill] sm:$0xff]  ;;  %v8447_v14 = vld [vmem:[#allocation18_spill] sm:$0xff] }
  0xc7   : > { %v3692_v51 = vadd.f32 %v5613_v1, %v3439_v44  ;;  %v1922_v42 = vadd.f32 %v1890_v49, %v1669_v7  ;;  %v2649_v9 = vmul.f32 %v8417_v58, %v2576_v39  ;;  %v2902_v12 = vmul.f32 %v5208_v17, %v2829_v24  ;;  %v8448_v1 = vld [vmem:[#allocation66_spill] sm:$0xff] }
  0xc8   : > { %v3155_v29 = vmul.f32 %v5211_v48, %v3082_v54  ;;  %v3408_v3 = vmul.f32 %v8423_v43, %v3335_v28  ;;  %v3661_v62 = vmul.f32 %v8424_v50, %v3588_v26  ;;  %v658_v47 = vadd.f32 %v626_v52, %v405_v41 }
  0xc9   : > { %v3945_v22 = vadd.f32 %v3913_v8, %v3692_v51  ;;  %v2175_v27 = vadd.f32 %v2143_v35, %v1922_v42  ;;  %v879_v33 = vmul.f32 %v8446_v6, %v805_v56  ;;  %v1132_v21 = vmul.f32 %v8447_v14, %v1058_v46 }
  0xca   : > { %v3914_v49 = vmul.f32 %v8448_v1, %v3841_v0  ;;  %v4167_v44 = vmul.f32 %v5307_v40, %v5680_v25  ;;  %v1385_v7 = vmul.f32 %v5013_v5, %v5634_v57  ;;  %v1638_v43 = vmul.f32 %v8426_v31, %v1564_v23 }
  0xcb   : > { %v4198_v48 = vadd.f32 %v4166_v60, %v3945_v22  ;;  %v2428_v50 = vadd.f32 %v2396_v36, %v2175_v27  ;;  %v911_v41 = vadd.f32 %v879_v33, %v658_v47  ;;  %v1891_v8 = vmul.f32 %v8427_v18, %v1817_v37  ;;  %v8449_v37 = vld [vmem:[#allocation88_spill] sm:$0xff]  ;;  %v8451_v36 = vld [vmem:[#allocation86_spill] sm:$0xff] }
  0xcc   : > { %v2144_v35 = vmul.f32 %v5122_v13, %v2070_v15  ;;  %v2397_v56 = vmul.f32 %v5391_v2, %v2323_v32  ;;  %v2650_v46 = vmul.f32 %v5394_v34, %v2576_v39  ;;  %v2903_v52 = vmul.f32 %v5401_v61, %v2829_v24  ;;  %v8450_v32 = vld [vmem:[#allocation85_spill] sm:$0xff]  ;;  %v8452_v24 = vld [vmem:[#allocation87_spill] sm:$0xff]  ;;  %v8454_v27 = vld [vmem:[#allocation90_spill] sm:$0xff] }
  0xcd   : > { %4230 = vst [vmem:[%s5500_s20 + $0x18] sm:$0xff] %v4198_v48  ;;  %v2681_v51 = vadd.f32 %v2649_v9, %v2428_v50  ;;  %v1164_v42 = vadd.f32 %v1132_v21, %v911_v41  ;;  %v5704_v57 = vmul.f32 %v5404_v63, %v3082_v54  ;;  %v5707_v23 = vmul.f32 %v5414_v53, %v3335_v28  ;;  %v8453_v9 = vld [vmem:[#allocation89_spill] sm:$0xff] }
  0xce   : > { %v5710_v60 = vmul.f32 %v5417_v59, %v3588_v26  ;;  %v269_v15 = vcombine.high %v8449_v37, %v8449_v37  ;;  %v490_v39 = vcombine.high %v8450_v32, %v8450_v32  ;;  %v743_v48 = vcombine.high %v8451_v36, %v8451_v36  ;;  %v8455_v32 = vld [vmem:[#allocation12_spill] sm:$0xff] }
  0xcf   : > { %v2934_v50 = vadd.f32 %v2902_v12, %v2681_v51  ;;  %v1417_v21 = vadd.f32 %v1385_v7, %v1164_v42  ;;  %v996_v54 = vcombine.high %v8452_v24, %v8452_v24  ;;  %v1249_v28 = vcombine.high %v8453_v9, %v8453_v9  ;;  %v8456_v24 = vld [vmem:[#allocation17_spill] sm:$0xff] }
  0xd0   : > { %v335_v26 = vrot.slane %v269_v15, %v4890_v10  ;;  %v556_v47 = vrot.slane %v490_v39, %v4890_v10  ;;  %v5725_v22 = vrot.slane %v743_v48, %v4890_v10  ;;  %v1502_v33 = vcombine.high %v8454_v27, %v8454_v27  ;;  %v8458_v9 = vld [vmem:[#allocation93_spill] sm:$0xff] }
  0xd1   : > { %v3187_v41 = vadd.f32 %v3155_v29, %v2934_v50  ;;  %v1670_v37 = vadd.f32 %v1638_v43, %v1417_v21  ;;  %v1062_v12 = vrot.slane %v996_v54, %v4890_v10  ;;  %v5731_v7 = vrot.slane %v1249_v28, %v4890_v10  ;;  %v8457_v21 = vld [vmem:[#allocation19_spill] sm:$0xff]  ;;  %v8459_v28 = vld [vmem:[#allocation94_spill] sm:$0xff] }
  0xd2   : > { %v5734_v51 = vmul.f32 %v5461_v4, %v3841_v0  ;;  %v406_v42 = vmul.f32 %v335_v26, %v4897_v19  ;;  %v627_v15 = vmul.f32 %v4900_v20, %v556_v47  ;;  %v880_v39 = vmul.f32 %v8455_v32, %v5725_v22  ;;  %v8460_v4 = vld [vmem:[#allocation95_spill] sm:$0xff] }
  0xd3   : > { %v3440_v36 = vadd.f32 %v3408_v3, %v3187_v41  ;;  %v1923_v48 = vadd.f32 %v1891_v8, %v1670_v37  ;;  %v1133_v29 = vmul.f32 %v8456_v24, %v1062_v12  ;;  %v1568_v43 = vrot.slane %v1502_v33, %v4890_v10  ;;  %v8461_v8 = vld [vmem:[#allocation96_spill] sm:$0xff] }
  0xd4   : > { %v659_v50 = vadd.f32 %v627_v15, %v406_v42  ;;  %v1386_v54 = vmul.f32 %v8457_v21, %v5731_v7  ;;  %v1755_v0 = vcombine.high %v8458_v9, %v8458_v9  ;;  %v2008_v19 = vcombine.high %v8459_v28, %v8459_v28  ;;  %v8462_v15 = vld [vmem:[#allocation97_spill] sm:$0xff] }
  0xd5   : > { %v3693_v20 = vadd.f32 %v3661_v62, %v3440_v36  ;;  %v2176_v27 = vadd.f32 %v2144_v35, %v1923_v48  ;;  %v2261_v3 = vcombine.high %v8460_v4, %v8460_v4  ;;  %v2514_v41 = vcombine.high %v8461_v8, %v8461_v8 }
  0xd6   : > { %v912_v37 = vadd.f32 %v880_v39, %v659_v50  ;;  %v1821_v33 = vrot.slane %v1755_v0, %v4890_v10  ;;  %v2074_v42 = vrot.slane %v2008_v19, %v4890_v10  ;;  %v2767_v32 = vcombine.high %v8462_v15, %v8462_v15  ;;  %v8463_v19 = vld [vmem:[#allocation98_spill] sm:$0xff] }
  0xd7   : > { %v3946_v24 = vadd.f32 %v3914_v49, %v3693_v20  ;;  %v2429_v21 = vadd.f32 %v2397_v56, %v2176_v27  ;;  %v4168_v62 = vmul.f32 %v5464_v16, %v5680_v25  ;;  %v2327_v35 = vrot.slane %v2261_v3, %v4890_v10  ;;  %v8464_v20 = vld [vmem:[#allocation74_spill] sm:$0xff]  ;;  %v8465_v3 = vld [vmem:[#allocation47_spill] sm:$0xff] }
  0xd8   : > { %v1165_v4 = vadd.f32 %v1133_v29, %v912_v37  ;;  %v1639_v36 = vmul.f32 %v5036_v30, %v1568_v43  ;;  %v1892_v39 = vmul.f32 %v8439_v38, %v1821_v33  ;;  %v2580_v48 = vrot.slane %v2514_v41, %v4890_v10  ;;  %v8467_v41 = vld [vmem:[#allocation77_spill] sm:$0xff] }
  0xd9   : > { %v4199_v50 = vadd.f32 %v4167_v44, %v3946_v24  ;;  %v2682_v9 = vadd.f32 %v2650_v46, %v2429_v21  ;;  %v2145_v0 = vmul.f32 %v8440_v55, %v2074_v42  ;;  %v2833_v49 = vrot.slane %v2767_v32, %v4890_v10  ;;  %v8466_v44 = vld [vmem:[#allocation50_spill] sm:$0xff] }
  0xda   : > { %v1418_v28 = vadd.f32 %v1386_v54, %v1165_v4  ;;  %v2398_v56 = vmul.f32 %v8416_v45, %v2327_v35  ;;  %v3020_v25 = vcombine.high %v8463_v19, %v8463_v19  ;;  %v3273_v29 = vcombine.high %v8464_v20, %v8464_v20 }
  0xdb   : > { %4231 = vst [vmem:[%s5500_s20 + $0x20] sm:$0xff] %v4199_v50  ;;  %v2935_v27 = vadd.f32 %v2903_v52, %v2682_v9  ;;  %v3526_v8 = vcombine.high %v8465_v3, %v8465_v3  ;;  %v3779_v46 = vcombine.high %v8466_v44, %v8466_v44  ;;  %v4032_v37 = vcombine.high %v8467_v41, %v8467_v41 }
  0xdc   : > { %v1671_v54 = vadd.f32 %v1639_v36, %v1418_v28  ;;  %v3086_v15 = vrot.slane %v3020_v25, %v4890_v10  ;;  %v3339_v32 = vrot.slane %v3273_v29, %v4890_v10  ;;  %v407_v24 = vmul.f32 %v335_v26, %v5348_v11  ;;  %v8468_v36 = vld [vmem:[#allocation11_spill] sm:$0xff]  ;;  %v8469_v29 = vld [vmem:[#allocation58_spill] sm:$0xff]  ;;  %v8470_v26 = vld [vmem:[#allocation61_spill] sm:$0xff] }
  0xdd   : > { %v3188_v21 = vadd.f32 %v5704_v57, %v2935_v27  ;;  %v3592_v52 = vrot.slane %v3526_v8, %v4890_v10  ;;  %v3845_v4 = vrot.slane %v3779_v46, %v4890_v10  ;;  %v4098_v50 = vrot.slane %v4032_v37, %v4890_v10  ;;  %v8471_v57 = vld [vmem:[#allocation62_spill] sm:$0xff] }
  0xde   : > { %v1924_v9 = vadd.f32 %v1892_v39, %v1671_v54  ;;  %v2651_v19 = vmul.f32 %v8417_v58, %v2580_v48  ;;  %v2904_v20 = vmul.f32 %v5208_v17, %v2833_v49  ;;  %v628_v28 = vmul.f32 %v8468_v36, %v556_v47 }
  0xdf   : > { %v3441_v25 = vadd.f32 %v5707_v23, %v3188_v21  ;;  %v3157_v3 = vmul.f32 %v8469_v29, %v3086_v15  ;;  %v3410_v44 = vmul.f32 %v8470_v26, %v3339_v32  ;;  %v3663_v27 = vmul.f32 %v8471_v57, %v3592_v52 }
  0xe0   : > { %v2177_v8 = vadd.f32 %v2145_v0, %v1924_v9  ;;  %v660_v41 = vadd.f32 %v628_v28, %v407_v24  ;;  %v881_v46 = vmul.f32 %v8446_v6, %v5725_v22  ;;  %v1134_v39 = vmul.f32 %v8447_v14, %v1062_v12 }
  0xe1   : > { %v3694_v37 = vadd.f32 %v5710_v60, %v3441_v25  ;;  %v3916_v54 = vmul.f32 %v8448_v1, %v3845_v4  ;;  %v5796_v47 = vmul.f32 %v5307_v40, %v4098_v50  ;;  %v1387_v23 = vmul.f32 %v5013_v5, %v5731_v7 }
  0xe2   : > { %v2430_v21 = vadd.f32 %v2398_v56, %v2177_v8  ;;  %v913_v36 = vadd.f32 %v881_v46, %v660_v41  ;;  %v1640_v0 = vmul.f32 %v8426_v31, %v1568_v43  ;;  %v1893_v24 = vmul.f32 %v8427_v18, %v1821_v33 }
  0xe3   : > { %v3947_v6 = vadd.f32 %v5734_v51, %v3694_v37  ;;  %v2146_v14 = vmul.f32 %v5122_v13, %v2074_v42  ;;  %v2399_v60 = vmul.f32 %v5391_v2, %v2327_v35  ;;  %v2652_v22 = vmul.f32 %v5394_v34, %v2580_v48  ;;  %v8472_v51 = vld [vmem:[#allocation16_spill] sm:$0xff]  ;;  %v8473_v42 = vld [vmem:[#allocation14_spill] sm:$0xff]  ;;  %v8474_v35 = vld [vmem:[#allocation23_spill] sm:$0xff] }
  0xe4   : > { %v2683_v12 = vadd.f32 %v2651_v19, %v2430_v21  ;;  %v1166_v9 = vadd.f32 %v1134_v39, %v913_v36  ;;  %v2905_v28 = vmul.f32 %v5401_v61, %v2833_v49  ;;  %v5808_v5 = vmul.f32 %v5404_v63, %v3086_v15  ;;  %v8476_v49 = vld [vmem:[#allocation27_spill] sm:$0xff] }
  0xe5   : > { %v4200_v7 = vadd.f32 %v4168_v62, %v3947_v6  ;;  %v5811_v31 = vmul.f32 %v5414_v53, %v3339_v32  ;;  %v5814_v18 = vmul.f32 %v5417_v59, %v3592_v52  ;;  %v222_v13 = vcombine.high %v8472_v51, %v8472_v51  ;;  %v8478_v15 = vld [vmem:[#allocation31_spill] sm:$0xff]  ;;  %v8480_v52 = vld [vmem:[#allocation37_spill] sm:$0xff] }
  0xe6   : > { %v2936_v43 = vadd.f32 %v2904_v20, %v2683_v12  ;;  %v1419_v33 = vadd.f32 %v1387_v23, %v1166_v9  ;;  %v5820_v48 = vrot.slane %v8474_v35, %v8473_v42  ;;  %v5824_v56 = vrot.slane %v8476_v49, %v8473_v42  ;;  %v8482_v20 = vld [vmem:[#allocation43_spill] sm:$0xff]  ;;  %v5875_v9 = vld [vmem:[%s4881_s29 + $0x10] sm:$0xff] }
  0xe7   : > { %4232 = vst [vmem:[%s5500_s20 + $0x28] sm:$0xff] %v4200_v7  ;;  %v5828_v62 = vrot.slane %v222_v13, %v8473_v42  ;;  %v5832_v32 = vrot.slane %v8478_v15, %v8473_v42  ;;  %v5836_v19 = vrot.slane %v8480_v52, %v8473_v42  ;;  %v5840_v25 = vrot.slane %v8482_v20, %v8473_v42  ;;  %v8484_v37 = vld [vmem:[#allocation91_spill] sm:$0xff] }
  0xe8   : > { %8475 = vst [vmem:[#allocation32_spill] sm:$0xff] %v5820_v48  ;;  %8477 = vst [vmem:[#allocation36_spill] sm:$0xff] %v5824_v56  ;;  %v3189_v8 = vadd.f32 %v3157_v3, %v2936_v43  ;;  %v1672_v41 = vadd.f32 %v1640_v0, %v1419_v33  ;;  %v5844_v46 = vrot.slane %v5820_v48, %v4890_v10  ;;  %v5880_v51 = vld [vmem:[%s4881_s29 + $0x20] sm:$0xff]  ;;  %v8494_v48 = vld [vmem:[#allocation53_spill] sm:$0xff] }
  0xe9   : > { %8479 = vst [vmem:[#allocation21_spill] sm:$0xff] %v5832_v32  ;;  %8481 = vst [vmem:[#allocation22_spill] sm:$0xff] %v5836_v19  ;;  %v5848_v39 = vrot.slane %v5824_v56, %v4890_v10  ;;  %v5851_v23 = vmul.f32 %v8484_v37, %v3845_v4  ;;  %v5854_v21 = vmul.f32 %v5464_v16, %v4098_v50  ;;  %v8495_v16 = vld [vmem:[#allocation57_spill] sm:$0xff] }
  0xea   : > { %8483 = vst [vmem:[#allocation25_spill] sm:$0xff] %v5840_v25  ;;  %v5858_v36 = vrot.slane %v5828_v62, %v8473_v42  ;;  %v5862_v3 = vrot.slane %v5832_v32, %v4890_v10  ;;  %v3442_v0 = vadd.f32 %v3410_v44, %v3189_v8  ;;  %v1925_v6 = vadd.f32 %v1893_v24, %v1672_v41  ;;  %v5885_v24 = vld [vmem:[%s4881_s29 + $0x30] sm:$0xff]  ;;  %v8489_v8 = vld [vmem:[#allocation48_spill] sm:$0xff]  ;;  %v5898_v32 = vld [vmem:[%s4881_s29] sm:$0xff] }
  0xeb   : > { %v5866_v12 = vrot.slane %v5836_v19, %v4890_v10  ;;  %v5870_v4 = vrot.slane %v5840_v25, %v4890_v10  ;;  %8486 = vst [vmem:[#allocation35_spill] sm:$0xff] %v5875_v9  ;;  %v629_v7 = vmul.f32 %v5875_v9, %v5844_v46  ;;  %8487 = vst [vmem:[#allocation41_spill] sm:$0xff] %v5880_v51  ;;  %v8491_v25 = vld [vmem:[#allocation55_spill] sm:$0xff] }
  0xec   : > { %8485 = vst [vmem:[#allocation29_spill] sm:$0xff] %v5858_v36  ;;  %v339_v50 = vrot.slane %v5858_v36, %v4890_v10  ;;  %v882_v44 = vmul.f32 %v5880_v51, %v5848_v39  ;;  %8488 = vst [vmem:[#allocation45_spill] sm:$0xff] %v5885_v24  ;;  %v1135_v13 = vmul.f32 %v5885_v24, %v5862_v3  ;;  %v5916_v51 = vld [vmem:[%s4881_s29 + $0x40] sm:$0xff] }
  0xed   : > { %v3695_v43 = vadd.f32 %v3663_v27, %v3442_v0  ;;  %v2178_v33 = vadd.f32 %v2146_v14, %v1925_v6  ;;  %v5891_v41 = vrot.slane %v8489_v8, %v8473_v42  ;;  %v5895_v19 = vrot.slane %v8491_v25, %v8473_v42  ;;  %8493 = vst [vmem:[#allocation70_spill] sm:$0xff] %v5898_v32  ;;  %v8496_v27 = vld [vmem:[#allocation67_spill] sm:$0xff] }
  0xee   : > { %v408_v56 = vmul.f32 %v5898_v32, %v339_v50  ;;  %v2214_v36 = vcombine.high %v8494_v48, %v8494_v48  ;;  %v2467_v37 = vcombine.high %v8495_v16, %v8495_v16  ;;  %v2720_v14 = vcombine.high %v8496_v27, %v8496_v27 }
  0xef   : > { %8490 = vst [vmem:[#allocation54_spill] sm:$0xff] %v5891_v41  ;;  %8492 = vst [vmem:[#allocation63_spill] sm:$0xff] %v5895_v19  ;;  %v3948_v0 = vadd.f32 %v3916_v54, %v3695_v43  ;;  %v2431_v6 = vadd.f32 %v2399_v60, %v2178_v33  ;;  %v5909_v25 = vrot.slane %v5891_v41, %v4890_v10 }
  0xf0   : > { %v5913_v8 = vrot.slane %v5895_v19, %v4890_v10  ;;  %v661_v24 = vadd.f32 %v629_v7, %v408_v56  ;;  %v1388_v16 = vmul.f32 %v5916_v51, %v5866_v12  ;;  %v1641_v48 = vmul.f32 %v5036_v30, %v5870_v4 }
  0xf1   : > { %v5923_v54 = vrot.slane %v2214_v36, %v8473_v42  ;;  %v4201_v60 = vadd.f32 %v5796_v47, %v3948_v0  ;;  %v2684_v43 = vadd.f32 %v2652_v22, %v2431_v6  ;;  %v5927_v33 = vrot.slane %v2467_v37, %v8473_v42  ;;  %v8498_v22 = vld [vmem:[#allocation68_spill] sm:$0xff]  ;;  %v8499_v36 = vld [vmem:[#allocation71_spill] sm:$0xff] }
  0xf2   : > { %v5930_v27 = vrot.slane %v2720_v14, %v8473_v42  ;;  %v914_v56 = vadd.f32 %v882_v44, %v661_v24  ;;  %v1894_v7 = vmul.f32 %v8439_v38, %v5909_v25  ;;  %v2147_v19 = vmul.f32 %v8440_v55, %v5913_v8  ;;  %v8500_v0 = vld [vmem:[#allocation72_spill] sm:$0xff] }
  0xf3   : > { %v5938_v30 = vrot.slane %v5923_v54, %v8473_v42  ;;  %4233 = vst [vmem:[%s5500_s20 + $0x30] sm:$0xff] %v4201_v60  ;;  %v2937_v47 = vadd.f32 %v2905_v28, %v2684_v43  ;;  %v2973_v37 = vcombine.high %v8498_v22, %v8498_v22  ;;  %v3226_v14 = vcombine.high %v8499_v36, %v8499_v36 }
  0xf4   : > { %v3479_v44 = vcombine.high %v8500_v0, %v8500_v0  ;;  %v1167_v24 = vadd.f32 %v1135_v13, %v914_v56  ;;  %v5951_v55 = vrot.slane %v5927_v33, %v8473_v42  ;;  %v5955_v28 = vrot.slane %v5930_v27, %v8473_v42 }
  0xf5   : > { %8497 = vst [vmem:[#allocation75_spill] sm:$0xff] %v5938_v30  ;;  %v2331_v38 = vrot.slane %v5938_v30, %v4890_v10  ;;  %v3190_v6 = vadd.f32 %v5808_v5, %v2937_v47  ;;  %v5959_v60 = vrot.slane %v2973_v37, %v8473_v42  ;;  %v5962_v43 = vrot.slane %v3226_v14, %v8473_v42  ;;  %v8505_v14 = vld [vmem:[#allocation73_spill] sm:$0xff] }
  0xf6   : > { %8501 = vst [vmem:[#allocation34_spill] sm:$0xff] %v5951_v55  ;;  %8502 = vst [vmem:[#allocation42_spill] sm:$0xff] %v5955_v28  ;;  %v5965_v13 = vrot.slane %v3479_v44, %v8473_v42  ;;  %v1420_v56 = vadd.f32 %v1388_v16, %v1167_v24  ;;  %v2584_v36 = vrot.slane %v5951_v55, %v4890_v10  ;;  %v8506_v24 = vld [vmem:[#allocation82_spill] sm:$0xff] }
  0xf7   : > { %v2400_v22 = vmul.f32 %v8416_v45, %v2331_v38  ;;  %v2837_v0 = vrot.slane %v5955_v28, %v4890_v10  ;;  %v3443_v5 = vadd.f32 %v5811_v31, %v3190_v6  ;;  %v5975_v47 = vrot.slane %v5959_v60, %v8473_v42 }
  0xf8   : > { %v5979_v37 = vrot.slane %v5962_v43, %v8473_v42  ;;  %v5983_v45 = vrot.slane %v5965_v13, %v8473_v42  ;;  %v1673_v16 = vadd.f32 %v1641_v48, %v1420_v56  ;;  %v3732_v44 = vcombine.high %v8505_v14, %v8505_v14 }
  0xf9   : > { %v3985_v28 = vcombine.high %v8506_v24, %v8506_v24  ;;  %v409_v31 = vmul.f32 %v339_v50, %v5348_v11  ;;  %v3696_v6 = vadd.f32 %v5814_v18, %v3443_v5  ;;  %v3090_v55 = vrot.slane %v5975_v47, %v4890_v10  ;;  %v6004_v11 = vld [vmem:[%s4881_s29 + $0x18] sm:$0xff] }
  0xfa   : > { %8503 = vst [vmem:[#allocation76_spill] sm:$0xff] %v5979_v37  ;;  %8504 = vst [vmem:[#allocation79_spill] sm:$0xff] %v5983_v45  ;;  %v3343_v30 = vrot.slane %v5979_v37, %v4890_v10  ;;  %v3596_v41 = vrot.slane %v5983_v45, %v4890_v10  ;;  %v1926_v48 = vadd.f32 %v1894_v7, %v1673_v16 }
  0xfb   : > { %v5998_v56 = vrot.slane %v3732_v44, %v8473_v42  ;;  %v6001_v14 = vrot.slane %v3985_v28, %v8473_v42  ;;  %v630_v18 = vmul.f32 %v6004_v11, %v5844_v46  ;;  %v3949_v50 = vadd.f32 %v5851_v23, %v3696_v6 }
  0xfc   : > { %v2653_v5 = vmul.f32 %v8417_v58, %v2584_v36  ;;  %v2906_v24 = vmul.f32 %v5208_v17, %v2837_v0  ;;  %v3159_v7 = vmul.f32 %v8469_v29, %v3090_v55  ;;  %v2179_v16 = vadd.f32 %v2147_v19, %v1926_v48  ;;  %v6023_v58 = vld [vmem:[%s4881_s29 + $0x28] sm:$0xff]  ;;  %v6028_v19 = vld [vmem:[%s4881_s29 + $0x38] sm:$0xff] }
  0xfd   : > { %v6014_v28 = vrot.slane %v5998_v56, %v8473_v42  ;;  %v6018_v44 = vrot.slane %v6001_v14, %v8473_v42  ;;  %v662_v46 = vadd.f32 %v630_v18, %v409_v31  ;;  %v4202_v23 = vadd.f32 %v5854_v21, %v3949_v50  ;;  %v6048_v50 = vld [vmem:[%s4881_s29 + $0x58] sm:$0xff] }
  0xfe   : > { %v3412_v17 = vmul.f32 %v8470_v26, %v3343_v30  ;;  %v883_v29 = vmul.f32 %v6023_v58, %v5848_v39  ;;  %v1136_v6 = vmul.f32 %v6028_v19, %v5862_v3  ;;  %v2432_v48 = vadd.f32 %v2400_v22, %v2179_v16  ;;  %v6043_v39 = vld [vmem:[%s4881_s29 + $0x48] sm:$0xff] }
  0xff   : > { %8507 = vst [vmem:[#allocation80_spill] sm:$0xff] %v6014_v28  ;;  %8508 = vst [vmem:[#allocation81_spill] sm:$0xff] %v6018_v44  ;;  %v3665_v45 = vmul.f32 %v8471_v57, %v3596_v41  ;;  %v6035_v21 = vrot.slane %v6014_v28, %v4890_v10  ;;  %v6039_v26 = vrot.slane %v6018_v44, %v4890_v10  ;;  %v6053_v3 = vld [vmem:[%s4881_s29 + $0x68] sm:$0xff] }
 0x100   : > { %4234 = vst [vmem:[%s5500_s20 + $0x38] sm:$0xff] %v4202_v23  ;;  %v915_v31 = vadd.f32 %v883_v29, %v662_v46  ;;  %v1389_v18 = vmul.f32 %v6043_v39, %v5866_v12  ;;  %v1642_v57 = vmul.f32 %v6048_v50, %v5870_v4  ;;  %v1895_v22 = vmul.f32 %v6053_v3, %v5909_v25  ;;  %v6060_v46 = vld [vmem:[%s4881_s29 + $0x78] sm:$0xff] }
 0x101   : > { %v2685_v16 = vadd.f32 %v2653_v5, %v2432_v48  ;;  %v3918_v23 = vmul.f32 %v8448_v1, %v6035_v21  ;;  %v2148_v29 = vmul.f32 %v6060_v46, %v5913_v8  ;;  %v2401_v12 = vmul.f32 %v5391_v2, %v2331_v38 }
 0x102   : > { %v4171_v44 = vmul.f32 %v5307_v40, %v6039_v26  ;;  %v1168_v4 = vadd.f32 %v1136_v6, %v915_v31  ;;  %v2654_v28 = vmul.f32 %v5394_v34, %v2584_v36  ;;  %v2907_v37 = vmul.f32 %v5401_v61, %v2837_v0 }
 0x103   : > { %v2938_v25 = vadd.f32 %v2906_v24, %v2685_v16  ;;  %v3160_v5 = vmul.f32 %v5404_v63, %v3090_v55  ;;  %v6071_v1 = vmul.f32 %v5414_v53, %v3343_v30  ;;  %v6074_v48 = vmul.f32 %v5417_v59, %v3596_v41 }
 0x104   : > { %v1421_v8 = vadd.f32 %v1389_v18, %v1168_v4  ;;  %v238_v2 = vcombine.high %v5828_v62, %v5828_v62  ;;  %v459_v40 = vcombine.high %v8474_v35, %v8474_v35  ;;  %v712_v34 = vcombine.high %v8476_v49, %v8476_v49  ;;  %v8516_v4 = vld [vmem:[#allocation45_spill] sm:$0xff] }
 0x105   : > { %v3191_v61 = vadd.f32 %v3159_v7, %v2938_v25  ;;  %v965_v63 = vcombine.high %v8478_v15, %v8478_v15  ;;  %v1218_v53 = vcombine.high %v8480_v52, %v8480_v52  ;;  %v1471_v59 = vcombine.high %v8482_v20, %v8482_v20 }
 0x106   : > { %v1674_v41 = vadd.f32 %v1642_v57, %v1421_v8  ;;  %v6089_v30 = vrot.slane %v238_v2, %v8473_v42  ;;  %v6092_v62 = vrot.slane %v459_v40, %v8473_v42  ;;  %v6095_v35 = vrot.slane %v712_v34, %v8473_v42  ;;  %v6138_v2 = vld [vmem:[%s4881_s29 + $0x50] sm:$0xff] }
 0x107   : > { %v3444_v49 = vadd.f32 %v3412_v17, %v3191_v61  ;;  %v6098_v38 = vrot.slane %v965_v63, %v8473_v42  ;;  %v6101_v15 = vrot.slane %v1218_v53, %v8473_v42  ;;  %v6104_v52 = vrot.slane %v1471_v59, %v8473_v42  ;;  %v8517_v61 = vld [vmem:[#allocation48_spill] sm:$0xff]  ;;  %v8518_v53 = vld [vmem:[#allocation55_spill] sm:$0xff] }
 0x108   : > { %8509 = vst [vmem:[#allocation84_spill] sm:$0xff] %v6089_v30  ;;  %8510 = vst [vmem:[#allocation15_spill] sm:$0xff] %v6092_v62  ;;  %v1927_v20 = vadd.f32 %v1895_v22, %v1674_v41  ;;  %v343_v55 = vrot.slane %v6089_v30, %v4890_v10  ;;  %v6110_v36 = vrot.slane %v6092_v62, %v4890_v10  ;;  %v8546_v62 = vld [vmem:[#allocation25_spill] sm:$0xff] }
 0x109   : > { %8511 = vst [vmem:[#allocation18_spill] sm:$0xff] %v6095_v35  ;;  %8512 = vst [vmem:[#allocation66_spill] sm:$0xff] %v6098_v38  ;;  %v6114_v0 = vrot.slane %v6095_v35, %v4890_v10  ;;  %v3697_v24 = vadd.f32 %v3665_v45, %v3444_v49  ;;  %v6118_v7 = vrot.slane %v6098_v38, %v4890_v10  ;;  %v8515_v45 = vld [vmem:[#allocation41_spill] sm:$0xff]  ;;  %v8545_v35 = vld [vmem:[#allocation22_spill] sm:$0xff] }
 0x10a   : > { %8513 = vst [vmem:[#allocation88_spill] sm:$0xff] %v6101_v15  ;;  %8514 = vst [vmem:[#allocation85_spill] sm:$0xff] %v6104_v52  ;;  %v6122_v17 = vrot.slane %v6101_v15, %v4890_v10  ;;  %v6126_v6 = vrot.slane %v6104_v52, %v4890_v10  ;;  %v2180_v31 = vadd.f32 %v2148_v29, %v1927_v20 }
 0x10b   : > { %v410_v18 = vmul.f32 %v5898_v32, %v343_v55  ;;  %v631_v57 = vmul.f32 %v5875_v9, %v6110_v36  ;;  %v884_v22 = vmul.f32 %v8515_v45, %v6114_v0  ;;  %v3950_v16 = vadd.f32 %v3918_v23, %v3697_v24 }
 0x10c   : > { %v1137_v25 = vmul.f32 %v8516_v4, %v6118_v7  ;;  %v1390_v8 = vmul.f32 %v5916_v51, %v6122_v17  ;;  %v1643_v29 = vmul.f32 %v6138_v2, %v6126_v6  ;;  %v2433_v40 = vadd.f32 %v2401_v12, %v2180_v31 }
 0x10d   : > { %v663_v34 = vadd.f32 %v631_v57, %v410_v18  ;;  %v1724_v63 = vcombine.high %v8517_v61, %v8517_v61  ;;  %v1977_v23 = vcombine.high %v8518_v53, %v8518_v53  ;;  %v4203_v59 = vadd.f32 %v4171_v44, %v3950_v16  ;;  %v8524_v16 = vld [vmem:[#allocation91_spill] sm:$0xff] }
 0x10e   : > { %v2230_v41 = vcombine.high %v5923_v54, %v5923_v54  ;;  %v2483_v49 = vcombine.high %v5927_v33, %v5927_v33  ;;  %v2736_v20 = vcombine.high %v5930_v27, %v5930_v27  ;;  %v2686_v24 = vadd.f32 %v2654_v28, %v2433_v40 }
 0x10f   : > { %v916_v52 = vadd.f32 %v884_v22, %v663_v34  ;;  %v6153_v12 = vrot.slane %v1724_v63, %v8473_v42  ;;  %v6156_v31 = vrot.slane %v1977_v23, %v8473_v42  ;;  %4235 = vst [vmem:[%s5500_s20 + $0x40] sm:$0xff] %v4203_v59  ;;  %v2989_v27 = vcombine.high %v5959_v60, %v5959_v60  ;;  %v8525_v34 = vld [vmem:[#allocation92_spill] sm:$0xff]  ;;  %v6191_v63 = vld [vmem:[%s4881_s29 + $0x60] sm:$0xff] }
 0x110   : > { %v6160_v44 = vrot.slane %v2230_v41, %v8473_v42  ;;  %v6163_v54 = vrot.slane %v2483_v49, %v8473_v42  ;;  %v6166_v33 = vrot.slane %v2736_v20, %v8473_v42  ;;  %v2939_v28 = vadd.f32 %v2907_v37, %v2686_v24  ;;  %8526 = vst [vmem:[#allocation17_spill] sm:$0xff] %v6191_v63  ;;  %v6203_v59 = vld [vmem:[%s4881_s29 + $0x80] sm:$0xff] }
 0x111   : > { %8519 = vst [vmem:[#allocation86_spill] sm:$0xff] %v6153_v12  ;;  %8520 = vst [vmem:[#allocation87_spill] sm:$0xff] %v6156_v31  ;;  %v1169_v18 = vadd.f32 %v1137_v25, %v916_v52  ;;  %v6172_v57 = vrot.slane %v6153_v12, %v4890_v10  ;;  %v6176_v22 = vrot.slane %v6156_v31, %v4890_v10  ;;  %v8542_v31 = vld [vmem:[#allocation32_spill] sm:$0xff] }
 0x112   : > { %8521 = vst [vmem:[#allocation89_spill] sm:$0xff] %v6160_v44  ;;  %8522 = vst [vmem:[#allocation90_spill] sm:$0xff] %v6163_v54  ;;  %v3919_v40 = vmul.f32 %v8524_v16, %v6035_v21  ;;  %v4172_v61 = vmul.f32 %v8525_v34, %v6039_v26  ;;  %v6184_v60 = vrot.slane %v6160_v44, %v4890_v10  ;;  %v6198_v26 = vld [vmem:[%s4881_s29 + $0x70] sm:$0xff] }
 0x113   : > { %8523 = vst [vmem:[#allocation12_spill] sm:$0xff] %v6166_v33  ;;  %v6188_v37 = vrot.slane %v6163_v54, %v4890_v10  ;;  %v3192_v52 = vadd.f32 %v3160_v5, %v2939_v28  ;;  %v1422_v25 = vadd.f32 %v1390_v8, %v1169_v18  ;;  %v1896_v53 = vmul.f32 %v6191_v63, %v6172_v57  ;;  %v6208_v8 = vld [vmem:[%s4881_s29 + $0x90] sm:$0xff] }
 0x114   : > { %v2841_v21 = vrot.slane %v6166_v33, %v4890_v10  ;;  %v2149_v23 = vmul.f32 %v6198_v26, %v6176_v22  ;;  %8527 = vst [vmem:[#allocation19_spill] sm:$0xff] %v6203_v59  ;;  %v2402_v5 = vmul.f32 %v6203_v59, %v6184_v60  ;;  %8528 = vst [vmem:[#allocation93_spill] sm:$0xff] %v6208_v8 }
 0x115   : > { %v2655_v41 = vmul.f32 %v6208_v8, %v6188_v37  ;;  %v6213_v49 = vrot.slane %v2989_v27, %v8473_v42  ;;  %v3445_v20 = vadd.f32 %v6071_v1, %v3192_v52  ;;  %v1675_v24 = vadd.f32 %v1643_v29, %v1422_v25  ;;  %v6227_v27 = vld [vmem:[%s4881_s29 + $0x8] sm:$0xff] }
 0x116   : > { %v3242_v28 = vcombine.high %v5962_v43, %v5962_v43  ;;  %v3495_v18 = vcombine.high %v5965_v13, %v5965_v13  ;;  %v3748_v34 = vcombine.high %v5998_v56, %v5998_v56  ;;  %v4001_v33 = vcombine.high %v6001_v14, %v6001_v14  ;;  %8530 = vst [vmem:[#allocation95_spill] sm:$0xff] %v6227_v27 }
 0x117   : > { %8529 = vst [vmem:[#allocation94_spill] sm:$0xff] %v6213_v49  ;;  %v3094_v16 = vrot.slane %v6213_v49, %v4890_v10  ;;  %v411_v1 = vmul.f32 %v6227_v27, %v343_v55  ;;  %v3698_v29 = vadd.f32 %v6074_v48, %v3445_v20  ;;  %v1928_v52 = vadd.f32 %v1896_v53, %v1675_v24  ;;  %v6301_v49 = vld [vmem:[%s4881_s29 + $0x98] sm:$0xff] }
 0x118   : > { %v6232_v43 = vrot.slane %v3242_v28, %v8473_v42  ;;  %v6235_v13 = vrot.slane %v3495_v18, %v8473_v42  ;;  %v6238_v25 = vrot.slane %v3748_v34, %v8473_v42  ;;  %v6241_v56 = vrot.slane %v4001_v33, %v8473_v42  ;;  %v6266_v42 = vld [vmem:[%s4881_s29 + $0xb0] sm:$0xff] }
 0x119   : > { %v632_v14 = vmul.f32 %v6004_v11, %v6110_v36  ;;  %v885_v48 = vmul.f32 %v6023_v58, %v6114_v0  ;;  %v3951_v55 = vadd.f32 %v3919_v40, %v3698_v29  ;;  %v2181_v53 = vadd.f32 %v2149_v23, %v1928_v52  ;;  %v6262_v29 = vld [vmem:[%s4881_s29 + $0xa0] sm:$0xff]  ;;  %v6285_v40 = vld [vmem:[%s4881_s29 + $0xf0] sm:$0xff] }
 0x11a   : > { %8531 = vst [vmem:[#allocation96_spill] sm:$0xff] %v6232_v43  ;;  %8532 = vst [vmem:[#allocation97_spill] sm:$0xff] %v6235_v13  ;;  %v3347_v20 = vrot.slane %v6232_v43, %v4890_v10  ;;  %v3600_v24 = vrot.slane %v6235_v13, %v4890_v10  ;;  %v3853_v33 = vrot.slane %v6238_v25, %v4890_v10  ;;  %v6296_v13 = vld [vmem:[%s4881_s29 + $0x88] sm:$0xff] }
 0x11b   : > { %8533 = vst [vmem:[#allocation98_spill] sm:$0xff] %v6238_v25  ;;  %8534 = vst [vmem:[#allocation74_spill] sm:$0xff] %v6241_v56  ;;  %v6255_v28 = vrot.slane %v6241_v56, %v4890_v10  ;;  %v664_v36 = vadd.f32 %v632_v14, %v411_v1  ;;  %v1138_v0 = vmul.f32 %v6028_v19, %v6118_v7  ;;  %v6270_v25 = vld [vmem:[%s4881_s29 + $0xc0] sm:$0xff] }
 0x11c   : > { %v4204_v18 = vadd.f32 %v4172_v61, %v3951_v55  ;;  %v2434_v34 = vadd.f32 %v2402_v5, %v2181_v53  ;;  %8536 = vst [vmem:[#allocation47_spill] sm:$0xff] %v6262_v29  ;;  %v2908_v52 = vmul.f32 %v6262_v29, %v2841_v21  ;;  %v3161_v56 = vmul.f32 %v6266_v42, %v3094_v16  ;;  %v6277_v5 = vld [vmem:[%s4881_s29 + $0xd0] sm:$0xff]  ;;  %v6281_v53 = vld [vmem:[%s4881_s29 + $0xe0] sm:$0xff] }
 0x11d   : > { %v3414_v1 = vmul.f32 %v6270_v25, %v3347_v20  ;;  %v917_v7 = vadd.f32 %v885_v48, %v664_v36  ;;  %v1391_v14 = vmul.f32 %v6043_v39, %v6122_v17  ;;  %v3667_v55 = vmul.f32 %v6277_v5, %v3600_v24  ;;  %8537 = vst [vmem:[#allocation50_spill] sm:$0xff] %v6281_v53 }
 0x11e   : > { %4236 = vst [vmem:[%s5500_s20 + $0x48] sm:$0xff] %v4204_v18  ;;  %v2687_v61 = vadd.f32 %v2655_v41, %v2434_v34  ;;  %v3920_v23 = vmul.f32 %v6281_v53, %v3853_v33  ;;  %8538 = vst [vmem:[#allocation77_spill] sm:$0xff] %v6285_v40  ;;  %v4173_v48 = vmul.f32 %v6285_v40, %v6255_v28 }
 0x11f   : > { %v1170_v17 = vadd.f32 %v1138_v0, %v917_v7  ;;  %v1644_v41 = vmul.f32 %v6048_v50, %v6126_v6  ;;  %v1897_v36 = vmul.f32 %v6053_v3, %v6172_v57  ;;  %v2150_v18 = vmul.f32 %v6060_v46, %v6176_v22  ;;  %v6306_v7 = vld [vmem:[%s4881_s29 + $0xa8] sm:$0xff]  ;;  %v6310_v57 = vld [vmem:[%s4881_s29 + $0xb8] sm:$0xff] }
 0x120   : > { %v2940_v34 = vadd.f32 %v2908_v52, %v2687_v61  ;;  %v2403_v43 = vmul.f32 %v6296_v13, %v6184_v60  ;;  %v2656_v0 = vmul.f32 %v6301_v49, %v6188_v37  ;;  %v2909_v6 = vmul.f32 %v6306_v7, %v2841_v21  ;;  %8539 = vst [vmem:[#allocation11_spill] sm:$0xff] %v6310_v57  ;;  %v6314_v52 = vld [vmem:[%s4881_s29 + $0xc8] sm:$0xff]  ;;  %v8541_v60 = vld [vmem:[#allocation29_spill] sm:$0xff] }
 0x121   : > { %v1423_v54 = vadd.f32 %v1391_v14, %v1170_v17  ;;  %v3162_v22 = vmul.f32 %v6310_v57, %v3094_v16  ;;  %8540 = vst [vmem:[#allocation58_spill] sm:$0xff] %v6314_v52  ;;  %v6317_v61 = vmul.f32 %v6314_v52, %v3347_v20  ;;  %v268_v44 = vcombine.high %v8541_v60, %v8541_v60  ;;  %v8543_v21 = vld [vmem:[#allocation36_spill] sm:$0xff]  ;;  %v8544_v17 = vld [vmem:[#allocation21_spill] sm:$0xff]  ;;  %v6338_v52 = vld [vmem:[%s4881_s29 + $0xd8] sm:$0xff] }
 0x122   : > { %v3193_v37 = vadd.f32 %v3161_v56, %v2940_v34  ;;  %v489_v12 = vcombine.high %v8542_v31, %v8542_v31  ;;  %v742_v14 = vcombine.high %v8543_v21, %v8543_v21  ;;  %v995_v16 = vcombine.high %v8544_v17, %v8544_v17  ;;  %8547 = vst [vmem:[#allocation61_spill] sm:$0xff] %v6338_v52 }
 0x123   : > { %v1676_v15 = vadd.f32 %v1644_v41, %v1423_v54  ;;  %v347_v38 = vrot.slane %v268_v44, %v4890_v10  ;;  %v1248_v20 = vcombine.high %v8545_v35, %v8545_v35  ;;  %v1501_v60 = vcombine.high %v8546_v62, %v8546_v62  ;;  %v6342_v44 = vld [vmem:[%s4881_s29 + $0xe8] sm:$0xff] }
 0x124   : > { %v3446_v30 = vadd.f32 %v3414_v1, %v3193_v37  ;;  %v568_v56 = vrot.slane %v489_v12, %v4890_v10  ;;  %v821_v31 = vrot.slane %v742_v14, %v4890_v10  ;;  %v6335_v34 = vrot.slane %v995_v16, %v4890_v10  ;;  %8548 = vst [vmem:[#allocation62_spill] sm:$0xff] %v6342_v44 }
 0x125   : > { %v1929_v21 = vadd.f32 %v1897_v36, %v1676_v15  ;;  %v3668_v54 = vmul.f32 %v6338_v52, %v3600_v24  ;;  %v6345_v35 = vmul.f32 %v6342_v44, %v3853_v33  ;;  %v412_v62 = vmul.f32 %v5898_v32, %v347_v38  ;;  %v8549_v36 = vld [vmem:[#allocation54_spill] sm:$0xff]  ;;  %v8550_v32 = vld [vmem:[#allocation63_spill] sm:$0xff] }
 0x126   : > { %v3699_v1 = vadd.f32 %v3667_v55, %v3446_v30  ;;  %v633_v12 = vmul.f32 %v5875_v9, %v568_v56  ;;  %v886_v41 = vmul.f32 %v8515_v45, %v821_v31  ;;  %v1327_v37 = vrot.slane %v1248_v20, %v4890_v10  ;;  %v8551_v55 = vld [vmem:[#allocation75_spill] sm:$0xff]  ;;  %v8553_v9 = vld [vmem:[#allocation42_spill] sm:$0xff] }
 0x127   : > { %v2182_v14 = vadd.f32 %v2150_v18, %v1929_v21  ;;  %v1139_v15 = vmul.f32 %v8516_v4, %v6335_v34  ;;  %v1580_v24 = vrot.slane %v1501_v60, %v4890_v10  ;;  %v1754_v33 = vcombine.high %v8549_v36, %v8549_v36  ;;  %v8552_v21 = vld [vmem:[#allocation34_spill] sm:$0xff] }
 0x128   : > { %v3952_v17 = vadd.f32 %v3920_v23, %v3699_v1  ;;  %v665_v16 = vadd.f32 %v633_v12, %v412_v62  ;;  %v2007_v30 = vcombine.high %v8550_v32, %v8550_v32  ;;  %v2260_v45 = vcombine.high %v8551_v55, %v8551_v55  ;;  %v6368_v32 = vld [vmem:[%s4881_s29 + $0xf8] sm:$0xff] }
 0x129   : > { %v2435_v20 = vadd.f32 %v2403_v43, %v2182_v14  ;;  %v1833_v18 = vrot.slane %v1754_v33, %v4890_v10  ;;  %v2513_v4 = vcombine.high %v8552_v21, %v8552_v21  ;;  %v2766_v60 = vcombine.high %v8553_v9, %v8553_v9 }
 0x12a   : > { %v4205_v44 = vadd.f32 %v4173_v48, %v3952_v17  ;;  %v918_v36 = vadd.f32 %v886_v41, %v665_v16  ;;  %v1392_v23 = vmul.f32 %v5916_v51, %v1327_v37  ;;  %v2086_v62 = vrot.slane %v2007_v30, %v4890_v10  ;;  %v8554_v30 = vld [vmem:[#allocation76_spill] sm:$0xff] }
 0x12b   : > { %v2688_v1 = vadd.f32 %v2656_v0, %v2435_v20  ;;  %v4174_v43 = vmul.f32 %v6368_v32, %v6255_v28  ;;  %v1645_v12 = vmul.f32 %v6138_v2, %v1580_v24  ;;  %v2339_v14 = vrot.slane %v2260_v45, %v4890_v10  ;;  %v8556_v20 = vld [vmem:[#allocation80_spill] sm:$0xff] }
 0x12c   : > { %4237 = vst [vmem:[%s5500_s20 + $0x50] sm:$0xff] %v4205_v44  ;;  %v1171_v33 = vadd.f32 %v1139_v15, %v918_v36  ;;  %v1898_v9 = vmul.f32 %v6191_v63, %v1833_v18  ;;  %v2592_v48 = vrot.slane %v2513_v4, %v4890_v10  ;;  %v3019_v41 = vcombine.high %v5975_v47, %v5975_v47  ;;  %v8555_v44 = vld [vmem:[#allocation79_spill] sm:$0xff] }
 0x12d   : > { %v2941_v17 = vadd.f32 %v2909_v6, %v2688_v1  ;;  %v2151_v0 = vmul.f32 %v6198_v26, %v2086_v62  ;;  %v2845_v16 = vrot.slane %v2766_v60, %v4890_v10  ;;  %v3272_v28 = vcombine.high %v8554_v30, %v8554_v30  ;;  %v8557_v6 = vld [vmem:[#allocation81_spill] sm:$0xff] }
 0x12e   : > { %v1424_v55 = vadd.f32 %v1392_v23, %v1171_v33  ;;  %v3098_v45 = vrot.slane %v3019_v41, %v4890_v10  ;;  %v3525_v15 = vcombine.high %v8555_v44, %v8555_v44  ;;  %v3778_v4 = vcombine.high %v8556_v20, %v8556_v20 }
 0x12f   : > { %v3194_v21 = vadd.f32 %v3162_v22, %v2941_v17  ;;  %v3351_v47 = vrot.slane %v3272_v28, %v4890_v10  ;;  %v4031_v36 = vcombine.high %v8557_v6, %v8557_v6  ;;  %v413_v60 = vmul.f32 %v6227_v27, %v347_v38 }
 0x130   : > { %v1677_v1 = vadd.f32 %v1645_v12, %v1424_v55  ;;  %v2404_v30 = vmul.f32 %v6203_v59, %v2339_v14  ;;  %v3604_v23 = vrot.slane %v3525_v15, %v4890_v10  ;;  %v3857_v33 = vrot.slane %v3778_v4, %v4890_v10 }
 0x131   : > { %v3447_v41 = vadd.f32 %v6317_v61, %v3194_v21  ;;  %v2657_v44 = vmul.f32 %v6208_v8, %v2592_v48  ;;  %v6398_v22 = vrot.slane %v4031_v36, %v4890_v10  ;;  %v634_v17 = vmul.f32 %v6004_v11, %v568_v56 }
 0x132   : > { %v1930_v28 = vadd.f32 %v1898_v9, %v1677_v1  ;;  %v2910_v20 = vmul.f32 %v6262_v29, %v2845_v16  ;;  %v3163_v38 = vmul.f32 %v6266_v42, %v3098_v45  ;;  %v887_v12 = vmul.f32 %v6023_v58, %v821_v31 }
 0x133   : > { %v3700_v55 = vadd.f32 %v3668_v54, %v3447_v41  ;;  %v3416_v15 = vmul.f32 %v6270_v25, %v3351_v47  ;;  %v666_v4 = vadd.f32 %v634_v17, %v413_v60  ;;  %v1140_v61 = vmul.f32 %v6028_v19, %v6335_v34 }
 0x134   : > { %v2183_v21 = vadd.f32 %v2151_v0, %v1930_v28  ;;  %v3669_v6 = vmul.f32 %v6277_v5, %v3604_v23  ;;  %v3922_v36 = vmul.f32 %v6281_v53, %v3857_v33  ;;  %v4175_v56 = vmul.f32 %v6285_v40, %v6398_v22 }
 0x135   : > { %v3953_v9 = vadd.f32 %v6345_v35, %v3700_v55  ;;  %v919_v1 = vadd.f32 %v887_v12, %v666_v4  ;;  %v1393_v31 = vmul.f32 %v6043_v39, %v1327_v37  ;;  %v1646_v54 = vmul.f32 %v6048_v50, %v1580_v24  ;;  %v8558_v55 = vld [vmem:[#allocation58_spill] sm:$0xff]  ;;  %v8559_v24 = vld [vmem:[#allocation84_spill] sm:$0xff] }
 0x136   : > { %v2436_v60 = vadd.f32 %v2404_v30, %v2183_v21  ;;  %v1899_v41 = vmul.f32 %v6053_v3, %v1833_v18  ;;  %v2152_v34 = vmul.f32 %v6060_v46, %v2086_v62  ;;  %v2405_v0 = vmul.f32 %v6296_v13, %v2339_v14  ;;  %v8560_v62 = vld [vmem:[#allocation15_spill] sm:$0xff]  ;;  %v8564_v21 = vld [vmem:[#allocation85_spill] sm:$0xff] }
 0x137   : > { %v4206_v17 = vadd.f32 %v4174_v43, %v3953_v9  ;;  %v1172_v28 = vadd.f32 %v1140_v61, %v919_v1  ;;  %v2658_v53 = vmul.f32 %v6301_v49, %v2592_v48  ;;  %v2911_v40 = vmul.f32 %v6306_v7, %v2845_v16  ;;  %v8561_v43 = vld [vmem:[#allocation18_spill] sm:$0xff]  ;;  %v8563_v61 = vld [vmem:[#allocation88_spill] sm:$0xff] }
 0x138   : > { %v2689_v35 = vadd.f32 %v2657_v44, %v2436_v60  ;;  %v3164_v12 = vmul.f32 %v6310_v57, %v3098_v45  ;;  %v6421_v37 = vmul.f32 %v8558_v55, %v3351_v47  ;;  %v270_v30 = vcombine.high %v8559_v24, %v8559_v24  ;;  %v8562_v48 = vld [vmem:[#allocation66_spill] sm:$0xff] }
 0x139   : > { %4238 = vst [vmem:[%s5500_s20 + $0x58] sm:$0xff] %v4206_v17  ;;  %v1425_v18 = vadd.f32 %v1393_v31, %v1172_v28  ;;  %v491_v14 = vcombine.high %v8560_v62, %v8560_v62  ;;  %v744_v4 = vcombine.high %v8561_v43, %v8561_v43  ;;  %v997_v16 = vcombine.high %v8562_v48, %v8562_v48  ;;  %v8567_v48 = vld [vmem:[#allocation35_spill] sm:$0xff] }
 0x13a   : > { %v2942_v44 = vadd.f32 %v2910_v20, %v2689_v35  ;;  %v351_v45 = vrot.slane %v270_v30, %v4890_v10  ;;  %v1250_v47 = vcombine.high %v8563_v61, %v8563_v61  ;;  %v1503_v9 = vcombine.high %v8564_v21, %v8564_v21  ;;  %v8565_v20 = vld [vmem:[#allocation62_spill] sm:$0xff]  ;;  %v8568_v21 = vld [vmem:[#allocation41_spill] sm:$0xff] }
 0x13b   : > { %v1678_v1 = vadd.f32 %v1646_v54, %v1425_v18  ;;  %v572_v31 = vrot.slane %v491_v14, %v4890_v10  ;;  %v825_v60 = vrot.slane %v744_v4, %v4890_v10  ;;  %v6440_v17 = vrot.slane %v997_v16, %v4890_v10  ;;  %v8566_v30 = vld [vmem:[#allocation70_spill] sm:$0xff]  ;;  %v8569_v4 = vld [vmem:[#allocation45_spill] sm:$0xff] }
 0x13c   : > { %v3195_v28 = vadd.f32 %v3163_v38, %v2942_v44  ;;  %v3670_v24 = vmul.f32 %v6338_v52, %v3604_v23  ;;  %v6444_v35 = vmul.f32 %v8565_v20, %v3857_v33  ;;  %v414_v62 = vmul.f32 %v8566_v30, %v351_v45  ;;  %v8570_v44 = vld [vmem:[#allocation86_spill] sm:$0xff]  ;;  %v8571_v52 = vld [vmem:[#allocation87_spill] sm:$0xff] }
 0x13d   : > { %v1931_v43 = vadd.f32 %v1899_v41, %v1678_v1  ;;  %v635_v61 = vmul.f32 %v8567_v48, %v572_v31  ;;  %v888_v54 = vmul.f32 %v8568_v21, %v825_v60  ;;  %v1331_v18 = vrot.slane %v1250_v47, %v4890_v10  ;;  %v8572_v1 = vld [vmem:[#allocation89_spill] sm:$0xff] }
 0x13e   : > { %v3448_v14 = vadd.f32 %v3416_v15, %v3195_v28  ;;  %v1141_v16 = vmul.f32 %v8569_v4, %v6440_v17  ;;  %v1584_v38 = vrot.slane %v1503_v9, %v4890_v10  ;;  %v1756_v23 = vcombine.high %v8570_v44, %v8570_v44  ;;  %v8573_v15 = vld [vmem:[#allocation90_spill] sm:$0xff]  ;;  %v8574_v4 = vld [vmem:[#allocation12_spill] sm:$0xff] }
 0x13f   : > { %v2184_v33 = vadd.f32 %v2152_v34, %v1931_v43  ;;  %v667_v20 = vadd.f32 %v635_v61, %v414_v62  ;;  %v2009_v41 = vcombine.high %v8571_v52, %v8571_v52  ;;  %v2262_v30 = vcombine.high %v8572_v1, %v8572_v1 }
 0x140   : > { %v3701_v21 = vadd.f32 %v3669_v6, %v3448_v14  ;;  %v1837_v47 = vrot.slane %v1756_v23, %v4890_v10  ;;  %v2515_v28 = vcombine.high %v8573_v15, %v8573_v15  ;;  %v2768_v9 = vcombine.high %v8574_v4, %v8574_v4 }
 0x141   : > { %v2437_v48 = vadd.f32 %v2405_v0, %v2184_v33  ;;  %v920_v55 = vadd.f32 %v888_v54, %v667_v20  ;;  %v1394_v34 = vmul.f32 %v5916_v51, %v1331_v18  ;;  %v2090_v62 = vrot.slane %v2009_v41, %v4890_v10  ;;  %v8576_v41 = vld [vmem:[#allocation96_spill] sm:$0xff] }
 0x142   : > { %v3954_v43 = vadd.f32 %v3922_v36, %v3701_v21  ;;  %v4176_v52 = vmul.f32 %v6368_v32, %v6398_v22  ;;  %v1647_v6 = vmul.f32 %v6138_v2, %v1584_v38  ;;  %v2343_v61 = vrot.slane %v2262_v30, %v4890_v10  ;;  %v8575_v36 = vld [vmem:[#allocation94_spill] sm:$0xff]  ;;  %v8577_v30 = vld [vmem:[#allocation97_spill] sm:$0xff] }
 0x143   : > { %v2690_v14 = vadd.f32 %v2658_v53, %v2437_v48  ;;  %v1173_v44 = vadd.f32 %v1141_v16, %v920_v55  ;;  %v1900_v23 = vmul.f32 %v6191_v63, %v1837_v47  ;;  %v2596_v0 = vrot.slane %v2515_v28, %v4890_v10  ;;  %v8578_v48 = vld [vmem:[#allocation98_spill] sm:$0xff] }
 0x144   : > { %v4207_v20 = vadd.f32 %v4175_v56, %v3954_v43  ;;  %v2153_v54 = vmul.f32 %v6198_v26, %v2090_v62  ;;  %v2849_v4 = vrot.slane %v2768_v9, %v4890_v10  ;;  %v3021_v21 = vcombine.high %v8575_v36, %v8575_v36  ;;  %v8579_v16 = vld [vmem:[#allocation74_spill] sm:$0xff] }
 0x145   : > { %v2943_v33 = vadd.f32 %v2911_v40, %v2690_v14  ;;  %v1426_v22 = vadd.f32 %v1394_v34, %v1173_v44  ;;  %v3274_v1 = vcombine.high %v8576_v41, %v8576_v41  ;;  %v3527_v53 = vcombine.high %v8577_v30, %v8577_v30 }
 0x146   : > { %4239 = vst [vmem:[%s5500_s20 + $0x60] sm:$0xff] %v4207_v20  ;;  %v3102_v55 = vrot.slane %v3021_v21, %v4890_v10  ;;  %v3780_v56 = vcombine.high %v8578_v48, %v8578_v48  ;;  %v4033_v15 = vcombine.high %v8579_v16, %v8579_v16  ;;  %v415_v28 = vmul.f32 %v6227_v27, %v351_v45 }
 0x147   : > { %v3196_v9 = vadd.f32 %v3164_v12, %v2943_v33  ;;  %v1679_v40 = vadd.f32 %v1647_v6, %v1426_v22  ;;  %v3355_v34 = vrot.slane %v3274_v1, %v4890_v10  ;;  %v3608_v43 = vrot.slane %v3527_v53, %v4890_v10 }
 0x148   : > { %v2406_v14 = vmul.f32 %v6203_v59, %v2343_v61  ;;  %v3861_v44 = vrot.slane %v3780_v56, %v4890_v10  ;;  %v4114_v20 = vrot.slane %v4033_v15, %v4890_v10  ;;  %v636_v36 = vmul.f32 %v6004_v11, %v572_v31  ;;  %v8581_v56 = vld [vmem:[#allocation77_spill] sm:$0xff] }
 0x149   : > { %v3449_v21 = vadd.f32 %v6421_v37, %v3196_v9  ;;  %v1932_v41 = vadd.f32 %v1900_v23, %v1679_v40  ;;  %v2659_v30 = vmul.f32 %v6208_v8, %v2596_v0  ;;  %v2912_v12 = vmul.f32 %v6262_v29, %v2849_v4  ;;  %v8580_v37 = vld [vmem:[#allocation50_spill] sm:$0xff] }
 0x14a   : > { %v3165_v45 = vmul.f32 %v6266_v42, %v3102_v55  ;;  %v3418_v6 = vmul.f32 %v6270_v25, %v3355_v34  ;;  %v668_v33 = vadd.f32 %v636_v36, %v415_v28  ;;  %v889_v22 = vmul.f32 %v6023_v58, %v825_v60 }
 0x14b   : > { %v3702_v1 = vadd.f32 %v3670_v24, %v3449_v21  ;;  %v2185_v53 = vadd.f32 %v2153_v54, %v1932_v41  ;;  %v3671_v48 = vmul.f32 %v6277_v5, %v3608_v43  ;;  %v1142_v31 = vmul.f32 %v6028_v19, %v6440_v17 }
 0x14c   : > { %v3924_v23 = vmul.f32 %v8580_v37, %v3861_v44  ;;  %v4177_v16 = vmul.f32 %v8581_v56, %v4114_v20  ;;  %v921_v15 = vadd.f32 %v889_v22, %v668_v33  ;;  %v1395_v9 = vmul.f32 %v6043_v39, %v1331_v18  ;;  %v8582_v22 = vld [vmem:[#allocation58_spill] sm:$0xff] }
 0x14d   : > { %v3955_v40 = vadd.f32 %v6444_v35, %v3702_v1  ;;  %v2438_v28 = vadd.f32 %v2406_v14, %v2185_v53  ;;  %v1648_v60 = vmul.f32 %v6048_v50, %v1584_v38  ;;  %v1901_v24 = vmul.f32 %v6053_v3, %v1837_v47  ;;  %v8583_v38 = vld [vmem:[#allocation13_spill] sm:$0xff]  ;;  %v8585_v1 = vld [vmem:[#allocation14_spill] sm:$0xff] }
 0x14e   : > { %v1174_v54 = vadd.f32 %v1142_v31, %v921_v15  ;;  %v2154_v36 = vmul.f32 %v6060_v46, %v2090_v62  ;;  %v2407_v17 = vmul.f32 %v6296_v13, %v2343_v61  ;;  %v2660_v21 = vmul.f32 %v6301_v49, %v2596_v0  ;;  %v8586_v62 = vld [vmem:[#allocation20_spill] sm:$0xff] }
 0x14f   : > { %v4208_v41 = vadd.f32 %v4176_v52, %v3955_v40  ;;  %v2691_v56 = vadd.f32 %v2659_v30, %v2438_v28  ;;  %v2913_v33 = vmul.f32 %v6306_v7, %v2849_v4  ;;  %v3166_v18 = vmul.f32 %v6310_v57, %v3102_v55  ;;  %v8588_v52 = vld [vmem:[#allocation61_spill] sm:$0xff]  ;;  %v8589_v4 = vld [vmem:[#allocation26_spill] sm:$0xff] }
 0x150   : > { %v1427_v35 = vadd.f32 %v1395_v9, %v1174_v54  ;;  %v6514_v14 = vmul.f32 %v8582_v22, %v3355_v34  ;;  %v6518_v47 = vmul.f32 %v6227_v27, %v8583_v38  ;;  %v6522_v53 = vrot.slane %v8586_v62, %v8585_v1  ;;  %v8591_v34 = vld [vmem:[#allocation30_spill] sm:$0xff] }
 0x151   : > { %4240 = vst [vmem:[%s5500_s20 + $0x68] sm:$0xff] %v4208_v41  ;;  %v2944_v61 = vadd.f32 %v2912_v12, %v2691_v56  ;;  %v6526_v0 = vmul.f32 %v8588_v52, %v3608_v43  ;;  %v6530_v55 = vrot.slane %v8589_v4, %v8585_v1  ;;  %v6534_v30 = vrot.slane %v8591_v34, %v8585_v1  ;;  %v8593_v43 = vld [vmem:[#allocation38_spill] sm:$0xff]  ;;  %v8604_v34 = vld [vmem:[#allocation49_spill] sm:$0xff] }
 0x152   : > { %8584 = vst [vmem:[#allocation16_spill] sm:$0xff] %v6518_v47  ;;  %8587 = vst [vmem:[#allocation23_spill] sm:$0xff] %v6522_v53  ;;  %v1680_v31 = vadd.f32 %v1648_v60, %v1427_v35  ;;  %v6538_v15 = vrot.slane %v6518_v47, %v8585_v1  ;;  %v6542_v9 = vrot.slane %v6522_v53, %v4890_v10  ;;  %v8595_v60 = vld [vmem:[#allocation39_spill] sm:$0xff]  ;;  %v8597_v35 = vld [vmem:[#allocation62_spill] sm:$0xff] }
 0x153   : > { %8590 = vst [vmem:[#allocation27_spill] sm:$0xff] %v6530_v55  ;;  %8592 = vst [vmem:[#allocation31_spill] sm:$0xff] %v6534_v30  ;;  %v6546_v12 = vrot.slane %v8593_v43, %v8585_v1  ;;  %v3197_v56 = vadd.f32 %v3165_v45, %v2944_v61  ;;  %v6550_v40 = vrot.slane %v6530_v55, %v4890_v10  ;;  %v8599_v55 = vld [vmem:[#allocation35_spill] sm:$0xff]  ;;  %v8603_v43 = vld [vmem:[#allocation45_spill] sm:$0xff] }
 0x154   : > { %v6554_v28 = vrot.slane %v6534_v30, %v4890_v10  ;;  %v6558_v54 = vrot.slane %v8595_v60, %v8585_v1  ;;  %v1933_v41 = vadd.f32 %v1901_v24, %v1680_v31  ;;  %v6561_v38 = vmul.f32 %v8597_v35, %v3861_v44  ;;  %v8600_v31 = vld [vmem:[#allocation41_spill] sm:$0xff] }
 0x155   : > { %8594 = vst [vmem:[#allocation37_spill] sm:$0xff] %v6546_v12  ;;  %v6564_v47 = vmul.f32 %v6368_v32, %v4114_v20  ;;  %v6568_v45 = vrot.slane %v6538_v15, %v8585_v1  ;;  %v3450_v61 = vadd.f32 %v3418_v6, %v3197_v56  ;;  %v637_v30 = vmul.f32 %v8599_v55, %v6542_v9  ;;  %v8601_v6 = vld [vmem:[#allocation46_spill] sm:$0xff] }
 0x156   : > { %8596 = vst [vmem:[#allocation43_spill] sm:$0xff] %v6558_v54  ;;  %v6574_v53 = vrot.slane %v6546_v12, %v4890_v10  ;;  %v6578_v24 = vrot.slane %v6558_v54, %v4890_v10  ;;  %v2186_v44 = vadd.f32 %v2154_v36, %v1933_v41  ;;  %v890_v60 = vmul.f32 %v8600_v31, %v6550_v40  ;;  %v8606_v54 = vld [vmem:[#allocation51_spill] sm:$0xff] }
 0x157   : > { %8598 = vst [vmem:[#allocation53_spill] sm:$0xff] %v6568_v45  ;;  %v355_v20 = vrot.slane %v6568_v45, %v4890_v10  ;;  %v6586_v56 = vrot.slane %v8601_v6, %v8585_v1  ;;  %v3703_v55 = vadd.f32 %v3671_v48, %v3450_v61  ;;  %v1143_v12 = vmul.f32 %v8603_v43, %v6554_v28  ;;  %v8608_v45 = vld [vmem:[#allocation70_spill] sm:$0xff]  ;;  %v8609_v48 = vld [vmem:[#allocation56_spill] sm:$0xff] }
 0x158   : > { %v6592_v4 = vmul.f32 %v6296_v13, %v8604_v34  ;;  %v6596_v36 = vmul.f32 %v6301_v49, %v8606_v54  ;;  %v2439_v41 = vadd.f32 %v2407_v17, %v2186_v44  ;;  %v6605_v61 = vrot.slane %v8609_v48, %v8585_v1  ;;  %v8611_v17 = vld [vmem:[#allocation59_spill] sm:$0xff] }
 0x159   : > { %8602 = vst [vmem:[#allocation57_spill] sm:$0xff] %v6586_v56  ;;  %v416_v62 = vmul.f32 %v8608_v45, %v355_v20  ;;  %v6601_v31 = vrot.slane %v6586_v56, %v4890_v10  ;;  %v3956_v43 = vadd.f32 %v3924_v23, %v3703_v55  ;;  %v6617_v45 = vmul.f32 %v6306_v7, %v8611_v17 }
 0x15a   : > { %8605 = vst [vmem:[#allocation67_spill] sm:$0xff] %v6592_v4  ;;  %8607 = vst [vmem:[#allocation68_spill] sm:$0xff] %v6596_v36  ;;  %v6609_v34 = vrot.slane %v6592_v4, %v8585_v1  ;;  %v6613_v54 = vrot.slane %v6596_v36, %v8585_v1  ;;  %v2692_v44 = vadd.f32 %v2660_v21, %v2439_v41 }
 0x15b   : > { %8610 = vst [vmem:[#allocation71_spill] sm:$0xff] %v6605_v61  ;;  %8612 = vst [vmem:[#allocation72_spill] sm:$0xff] %v6617_v45  ;;  %v669_v56 = vadd.f32 %v637_v30, %v416_v62  ;;  %v1396_v48 = vmul.f32 %v5916_v51, %v6574_v53  ;;  %v6623_v23 = vrot.slane %v6605_v61, %v4890_v10 }
 0x15c   : > { %v4209_v55 = vadd.f32 %v4177_v16, %v3956_v43  ;;  %v6627_v4 = vrot.slane %v6609_v34, %v8585_v1  ;;  %v6631_v36 = vrot.slane %v6613_v54, %v8585_v1  ;;  %v6635_v21 = vrot.slane %v6617_v45, %v8585_v1  ;;  %v8616_v45 = vld [vmem:[#allocation60_spill] sm:$0xff] }
 0x15d   : > { %v2945_v62 = vadd.f32 %v2913_v33, %v2692_v44  ;;  %v922_v30 = vadd.f32 %v890_v60, %v669_v56  ;;  %v1649_v51 = vmul.f32 %v6138_v2, %v6578_v24  ;;  %v1902_v16 = vmul.f32 %v6191_v63, %v6601_v31 }
 0x15e   : > { %8613 = vst [vmem:[#allocation73_spill] sm:$0xff] %v6627_v4  ;;  %8614 = vst [vmem:[#allocation82_spill] sm:$0xff] %v6631_v36  ;;  %v2347_v41 = vrot.slane %v6627_v4, %v4890_v10  ;;  %v2600_v43 = vrot.slane %v6631_v36, %v4890_v10  ;;  %v6648_v17 = vrot.slane %v6635_v21, %v8585_v1 }
 0x15f   : > { %4241 = vst [vmem:[%s5500_s20 + $0x70] sm:$0xff] %v4209_v55  ;;  %v6652_v33 = vmul.f32 %v6310_v57, %v8616_v45  ;;  %v3198_v60 = vadd.f32 %v3166_v18, %v2945_v62  ;;  %v1175_v56 = vadd.f32 %v1143_v12, %v922_v30  ;;  %v2155_v44 = vmul.f32 %v6198_v26, %v6623_v23  ;;  %v8618_v55 = vld [vmem:[#allocation64_spill] sm:$0xff]  ;;  %v8620_v45 = vld [vmem:[#allocation65_spill] sm:$0xff] }
 0x160   : > { %8615 = vst [vmem:[#allocation48_spill] sm:$0xff] %v6648_v17  ;;  %v6658_v61 = vmul.f32 %v8582_v22, %v8618_v55  ;;  %v2408_v4 = vmul.f32 %v6203_v59, %v2347_v41  ;;  %v2853_v36 = vrot.slane %v6648_v17, %v4890_v10  ;;  %v6669_v18 = vmul.f32 %v8588_v52, %v8620_v45  ;;  %v8623_v59 = vld [vmem:[#allocation69_spill] sm:$0xff] }
 0x161   : > { %8617 = vst [vmem:[#allocation55_spill] sm:$0xff] %v6652_v33  ;;  %v6665_v63 = vrot.slane %v6652_v33, %v8585_v1  ;;  %v3451_v12 = vadd.f32 %v6514_v14, %v3198_v60  ;;  %v1428_v62 = vadd.f32 %v1396_v48, %v1175_v56  ;;  %v2661_v30 = vmul.f32 %v6208_v8, %v2600_v43  ;;  %v8625_v14 = vld [vmem:[#allocation78_spill] sm:$0xff] }
 0x162   : > { %8619 = vst [vmem:[#allocation91_spill] sm:$0xff] %v6658_v61  ;;  %8621 = vst [vmem:[#allocation92_spill] sm:$0xff] %v6669_v18  ;;  %v6675_v55 = vrot.slane %v6658_v61, %v8585_v1  ;;  %v6683_v33 = vrot.slane %v6669_v18, %v8585_v1  ;;  %v6687_v45 = vmul.f32 %v8597_v35, %v8623_v59 }
 0x163   : > { %v6679_v17 = vrot.slane %v6665_v63, %v8585_v1  ;;  %v6691_v48 = vmul.f32 %v6368_v32, %v8625_v14  ;;  %v3704_v60 = vadd.f32 %v6526_v0, %v3451_v12  ;;  %v1681_v56 = vadd.f32 %v1649_v51, %v1428_v62 }
 0x164   : > { %8624 = vst [vmem:[#allocation32_spill] sm:$0xff] %v6687_v45  ;;  %v6696_v61 = vrot.slane %v6675_v55, %v8585_v1  ;;  %v417_v8 = vmul.f32 %v6227_v27, %v355_v20  ;;  %v6703_v59 = vrot.slane %v6683_v33, %v8585_v1  ;;  %v6707_v14 = vrot.slane %v6687_v45, %v8585_v1 }
 0x165   : > { %8622 = vst [vmem:[#allocation29_spill] sm:$0xff] %v6679_v17  ;;  %8626 = vst [vmem:[#allocation36_spill] sm:$0xff] %v6691_v48  ;;  %v3106_v18 = vrot.slane %v6679_v17, %v4890_v10  ;;  %v6711_v0 = vrot.slane %v6691_v48, %v8585_v1  ;;  %v3957_v51 = vadd.f32 %v6561_v38, %v3704_v60 }
 0x166   : > { %8627 = vst [vmem:[#allocation21_spill] sm:$0xff] %v6696_v61  ;;  %8628 = vst [vmem:[#allocation22_spill] sm:$0xff] %v6703_v59  ;;  %v1934_v12 = vadd.f32 %v1902_v16, %v1681_v56  ;;  %v3359_v20 = vrot.slane %v6696_v61, %v4890_v10  ;;  %v638_v62 = vmul.f32 %v6004_v11, %v6542_v9 }
 0x167   : > { %v2914_v17 = vmul.f32 %v6262_v29, %v2853_v36  ;;  %v3612_v45 = vrot.slane %v6703_v59, %v4890_v10  ;;  %v6723_v27 = vrot.slane %v6707_v14, %v8585_v1  ;;  %v6727_v38 = vrot.slane %v6711_v0, %v8585_v1 }
 0x168   : > { %v4210_v16 = vadd.f32 %v6564_v47, %v3957_v51  ;;  %v2187_v60 = vadd.f32 %v2155_v44, %v1934_v12  ;;  %v670_v56 = vadd.f32 %v638_v62, %v417_v8  ;;  %v891_v11 = vmul.f32 %v6023_v58, %v6550_v40 }
 0x169   : > { %8629 = vst [vmem:[#allocation25_spill] sm:$0xff] %v6727_v38  ;;  %v3167_v9 = vmul.f32 %v6266_v42, %v3106_v18  ;;  %v3865_v48 = vrot.slane %v6723_v27, %v4890_v10  ;;  %v4118_v59 = vrot.slane %v6727_v38, %v4890_v10  ;;  %v1144_v61 = vmul.f32 %v6028_v19, %v6554_v28  ;;  %v8630_v19 = vld [vmem:[#allocation77_spill] sm:$0xff]  ;;  %v6863_v38 = vld [vmem:[%s4881_s29 + $0x40] sm:$0xff] }
 0x16a   : > { %4242 = vst [vmem:[%s5500_s20 + $0x78] sm:$0xff] %v4210_v16  ;;  %v2440_v29 = vadd.f32 %v2408_v4, %v2187_v60  ;;  %v3420_v47 = vmul.f32 %v6270_v25, %v3359_v20  ;;  %v923_v44 = vadd.f32 %v891_v11, %v670_v56  ;;  %v1397_v8 = vmul.f32 %v6043_v39, %v6574_v53  ;;  %v8641_v11 = vld [vmem:[#allocation38_spill] sm:$0xff] }
 0x16b   : > { %v3673_v58 = vmul.f32 %v6277_v5, %v3612_v45  ;;  %v3926_v40 = vmul.f32 %v8580_v37, %v3865_v48  ;;  %v1650_v51 = vmul.f32 %v6048_v50, %v6578_v24  ;;  %v1903_v12 = vmul.f32 %v6053_v3, %v6601_v31  ;;  %8656 = vst [vmem:[#allocation66_spill] sm:$0xff] %v6863_v38 }
 0x16c   : > { %v2693_v62 = vadd.f32 %v2661_v30, %v2440_v29  ;;  %v4179_v28 = vmul.f32 %v8630_v19, %v4118_v59  ;;  %v1176_v4 = vadd.f32 %v1144_v61, %v923_v44  ;;  %v2156_v16 = vmul.f32 %v6060_v46, %v6623_v23  ;;  %v8631_v46 = vld [vmem:[#allocation20_spill] sm:$0xff]  ;;  %v8634_v23 = vld [vmem:[#allocation26_spill] sm:$0xff] }
 0x16d   : > { %v2409_v60 = vmul.f32 %v6296_v13, %v2347_v41  ;;  %v2662_v39 = vmul.f32 %v6301_v49, %v2600_v43  ;;  %v2915_v53 = vmul.f32 %v6306_v7, %v2853_v36  ;;  %v6756_v56 = vmul.f32 %v6310_v57, %v3106_v18 }
 0x16e   : > { %v2946_v50 = vadd.f32 %v2914_v17, %v2693_v62  ;;  %v1429_v24 = vadd.f32 %v1397_v8, %v1176_v4  ;;  %v6759_v3 = vmul.f32 %v8582_v22, %v3359_v20  ;;  %v286_v29 = vcombine.high %v6538_v15, %v6538_v15  ;;  %v8637_v17 = vld [vmem:[#allocation30_spill] sm:$0xff] }
 0x16f   : > { %v6764_v31 = vmul.f32 %v8588_v52, %v3612_v45  ;;  %v8632_v61 = vcombine.high %v8631_v46, %v8631_v46  ;;  %v8635_v41 = vcombine.high %v8634_v23, %v8634_v23  ;;  %v8638_v15 = vcombine.high %v8637_v17, %v8637_v17 }
 0x170   : > { %v3199_v30 = vadd.f32 %v3167_v9, %v2946_v50  ;;  %v1682_v45 = vadd.f32 %v1650_v51, %v1429_v24  ;;  %v6785_v20 = vrot.slane %v286_v29, %v8585_v1  ;;  %v8642_v44 = vcombine.high %v8641_v11, %v8641_v11  ;;  %v8644_v51 = vld [vmem:[#allocation39_spill] sm:$0xff] }
 0x171   : > { %v6770_v36 = vrot.slane %v8632_v61, %v8585_v1  ;;  %v6776_v43 = vrot.slane %v8635_v41, %v8585_v1  ;;  %v6782_v18 = vrot.slane %v8638_v15, %v8585_v1  ;;  %v8645_v50 = vcombine.high %v8644_v51, %v8644_v51  ;;  %v6817_v41 = vld [vmem:[%s4881_s29 + $0x10] sm:$0xff]  ;;  %v6822_v15 = vld [vmem:[%s4881_s29 + $0x20] sm:$0xff] }
 0x172   : > { %8640 = vst [vmem:[#allocation34_spill] sm:$0xff] %v6785_v20  ;;  %v6791_v8 = vrot.slane %v8642_v44, %v8585_v1  ;;  %v3452_v29 = vadd.f32 %v3420_v47, %v3199_v30  ;;  %v1935_v46 = vadd.f32 %v1903_v12, %v1682_v45  ;;  %v6812_v61 = vmul.f32 %v8597_v35, %v3865_v48  ;;  %v6835_v45 = vld [vmem:[%s4881_s29] sm:$0xff]  ;;  %v6839_v51 = vld [vmem:[%s4881_s29 + $0x30] sm:$0xff] }
 0x173   : > { %8633 = vst [vmem:[#allocation54_spill] sm:$0xff] %v6770_v36  ;;  %8636 = vst [vmem:[#allocation63_spill] sm:$0xff] %v6776_v43  ;;  %v6795_v62 = vrot.slane %v6770_v36, %v4890_v10  ;;  %v6799_v4 = vrot.slane %v6776_v43, %v4890_v10  ;;  %v6803_v9 = vrot.slane %v6782_v18, %v4890_v10 }
 0x174   : > { %8639 = vst [vmem:[#allocation75_spill] sm:$0xff] %v6782_v18  ;;  %8643 = vst [vmem:[#allocation42_spill] sm:$0xff] %v6791_v8  ;;  %v6809_v24 = vrot.slane %v8645_v50, %v8585_v1  ;;  %v359_v23 = vrot.slane %v6785_v20, %v4890_v10  ;;  %v6828_v47 = vrot.slane %v6791_v8, %v4890_v10 }
 0x175   : > { %8647 = vst [vmem:[#allocation79_spill] sm:$0xff] %v6817_v41  ;;  %v639_v17 = vmul.f32 %v6817_v41, %v6795_v62  ;;  %8648 = vst [vmem:[#allocation80_spill] sm:$0xff] %v6822_v15  ;;  %v892_v11 = vmul.f32 %v6822_v15, %v6799_v4  ;;  %v3705_v12 = vadd.f32 %v3673_v58, %v3452_v29 }
 0x176   : > { %8646 = vst [vmem:[#allocation76_spill] sm:$0xff] %v6809_v24  ;;  %v6832_v48 = vrot.slane %v6809_v24, %v4890_v10  ;;  %v2188_v30 = vadd.f32 %v2156_v16, %v1935_v46  ;;  %8649 = vst [vmem:[#allocation81_spill] sm:$0xff] %v6835_v45  ;;  %v418_v44 = vmul.f32 %v6835_v45, %v359_v23  ;;  %v8653_v24 = vld [vmem:[#allocation56_spill] sm:$0xff] }
 0x177   : > { %8650 = vst [vmem:[#allocation84_spill] sm:$0xff] %v6839_v51  ;;  %v1145_v50 = vmul.f32 %v6839_v51, %v6803_v9  ;;  %v8651_v8 = vcombine.high %v8601_v6, %v8601_v6  ;;  %v8654_v58 = vcombine.high %v8653_v24, %v8653_v24  ;;  %v2278_v29 = vcombine.high %v6609_v34, %v6609_v34 }
 0x178   : > { %v2531_v46 = vcombine.high %v6613_v54, %v6613_v54  ;;  %v3958_v43 = vadd.f32 %v3926_v40, %v3705_v12  ;;  %v2441_v36 = vadd.f32 %v2409_v60, %v2188_v30  ;;  %v671_v20 = vadd.f32 %v639_v17, %v418_v44 }
 0x179   : > { %v6847_v18 = vrot.slane %v8651_v8, %v8585_v1  ;;  %v6853_v16 = vrot.slane %v8654_v58, %v8585_v1  ;;  %v2784_v6 = vcombine.high %v6635_v21, %v6635_v21  ;;  %v4180_v8 = vmul.f32 %v6368_v32, %v4118_v59  ;;  %v8657_v59 = vld [vmem:[#allocation17_spill] sm:$0xff] }
 0x17a   : > { %v1398_v24 = vmul.f32 %v6863_v38, %v6828_v47  ;;  %v4211_v40 = vadd.f32 %v4179_v28, %v3958_v43  ;;  %v2694_v60 = vadd.f32 %v2662_v39, %v2441_v36  ;;  %v924_v17 = vadd.f32 %v892_v11, %v671_v20 }
 0x17b   : > { %8652 = vst [vmem:[#allocation15_spill] sm:$0xff] %v6847_v18  ;;  %8655 = vst [vmem:[#allocation18_spill] sm:$0xff] %v6853_v16  ;;  %v6869_v34 = vrot.slane %v6847_v18, %v4890_v10  ;;  %v6873_v54 = vrot.slane %v6853_v16, %v4890_v10  ;;  %v1651_v21 = vmul.f32 %v6138_v2, %v6832_v48  ;;  %v8674_v18 = vld [vmem:[#allocation31_spill] sm:$0xff] }
 0x17c   : > { %v6880_v30 = vrot.slane %v2278_v29, %v8585_v1  ;;  %v6883_v44 = vrot.slane %v2531_v46, %v8585_v1  ;;  %v6886_v58 = vrot.slane %v2784_v6, %v8585_v1  ;;  %4243 = vst [vmem:[%s5500_s20 + $0x80] sm:$0xff] %v4211_v40  ;;  %v2947_v16 = vadd.f32 %v2915_v53, %v2694_v60  ;;  %v8664_v40 = vld [vmem:[#allocation95_spill] sm:$0xff] }
 0x17d   : > { %v1904_v12 = vmul.f32 %v8657_v59, %v6869_v34  ;;  %v1177_v28 = vadd.f32 %v1145_v50, %v924_v17  ;;  %v2157_v39 = vmul.f32 %v6198_v26, %v6873_v54  ;;  %v3037_v2 = vcombine.high %v6665_v63, %v6665_v63 }
 0x17e   : > { %8658 = vst [vmem:[#allocation88_spill] sm:$0xff] %v6880_v30  ;;  %8659 = vst [vmem:[#allocation85_spill] sm:$0xff] %v6883_v44  ;;  %v2351_v36 = vrot.slane %v6880_v30, %v4890_v10  ;;  %v2604_v43 = vrot.slane %v6883_v44, %v4890_v10  ;;  %v3290_v20 = vcombine.high %v6675_v55, %v6675_v55 }
 0x17f   : > { %8660 = vst [vmem:[#allocation86_spill] sm:$0xff] %v6886_v58  ;;  %v3543_v11 = vcombine.high %v6683_v33, %v6683_v33  ;;  %v3200_v53 = vadd.f32 %v6756_v56, %v2947_v16  ;;  %v1430_v50 = vadd.f32 %v1398_v24, %v1177_v28  ;;  %v2857_v29 = vrot.slane %v6886_v58, %v4890_v10 }
 0x180   : > { %v6905_v63 = vrot.slane %v3037_v2, %v8585_v1  ;;  %v6908_v46 = vrot.slane %v3290_v20, %v8585_v1  ;;  %v3796_v55 = vcombine.high %v6707_v14, %v6707_v14  ;;  %v4049_v33 = vcombine.high %v6711_v0, %v6711_v0  ;;  %v8667_v2 = vld [vmem:[#allocation19_spill] sm:$0xff] }
 0x181   : > { %v6911_v6 = vrot.slane %v3543_v11, %v8585_v1  ;;  %v3453_v56 = vadd.f32 %v6759_v3, %v3200_v53  ;;  %v1683_v16 = vadd.f32 %v1651_v21, %v1430_v50  ;;  %v419_v60 = vmul.f32 %v8664_v40, %v359_v23  ;;  %v6934_v23 = vld [vmem:[%s4881_s29 + $0x18] sm:$0xff]  ;;  %v8669_v53 = vld [vmem:[#allocation93_spill] sm:$0xff] }
 0x182   : > { %8661 = vst [vmem:[#allocation87_spill] sm:$0xff] %v6905_v63  ;;  %8662 = vst [vmem:[#allocation89_spill] sm:$0xff] %v6908_v46  ;;  %v3110_v24 = vrot.slane %v6905_v63, %v4890_v10  ;;  %v3363_v17 = vrot.slane %v6908_v46, %v4890_v10  ;;  %v6926_v14 = vrot.slane %v3796_v55, %v8585_v1  ;;  %v6972_v63 = vld [vmem:[%s4881_s29 + $0x58] sm:$0xff] }
 0x183   : > { %8663 = vst [vmem:[#allocation90_spill] sm:$0xff] %v6911_v6  ;;  %v3616_v28 = vrot.slane %v6911_v6, %v4890_v10  ;;  %v6929_v0 = vrot.slane %v4049_v33, %v8585_v1  ;;  %v3706_v3 = vadd.f32 %v6764_v31, %v3453_v56  ;;  %v1936_v21 = vadd.f32 %v1904_v12, %v1683_v16  ;;  %v8670_v6 = vld [vmem:[#allocation47_spill] sm:$0xff]  ;;  %v6950_v16 = vld [vmem:[%s4881_s29 + $0x28] sm:$0xff] }
 0x184   : > { %8665 = vst [vmem:[#allocation12_spill] sm:$0xff] %v6926_v14  ;;  %v2410_v20 = vmul.f32 %v8667_v2, %v2351_v36  ;;  %8668 = vst [vmem:[#allocation96_spill] sm:$0xff] %v6934_v23  ;;  %v640_v11 = vmul.f32 %v6934_v23, %v6795_v62  ;;  %v2663_v50 = vmul.f32 %v8669_v53, %v2604_v43 }
 0x185   : > { %8666 = vst [vmem:[#allocation94_spill] sm:$0xff] %v6929_v0  ;;  %v2916_v46 = vmul.f32 %v8670_v6, %v2857_v29  ;;  %v6942_v55 = vrot.slane %v6926_v14, %v4890_v10  ;;  %v6946_v31 = vrot.slane %v6929_v0, %v4890_v10  ;;  %v3959_v12 = vadd.f32 %v6812_v61, %v3706_v3  ;;  %v6958_v0 = vld [vmem:[%s4881_s29 + $0x38] sm:$0xff] }
 0x186   : > { %v2189_v33 = vadd.f32 %v2157_v39, %v1936_v21  ;;  %v672_v56 = vadd.f32 %v640_v11, %v419_v60  ;;  %v893_v62 = vmul.f32 %v6950_v16, %v6799_v4  ;;  %v3169_v2 = vmul.f32 %v6266_v42, %v3110_v24  ;;  %v6963_v21 = vld [vmem:[%s4881_s29 + $0x48] sm:$0xff] }
 0x187   : > { %v3422_v53 = vmul.f32 %v6270_v25, %v3363_v17  ;;  %v3675_v1 = vmul.f32 %v6277_v5, %v3616_v28  ;;  %v1146_v61 = vmul.f32 %v6958_v0, %v6803_v9  ;;  %v4212_v39 = vadd.f32 %v4180_v8, %v3959_v12  ;;  %v6977_v9 = vld [vmem:[%s4881_s29 + $0x68] sm:$0xff] }
 0x188   : > { %v2442_v60 = vadd.f32 %v2410_v20, %v2189_v33  ;;  %v925_v3 = vadd.f32 %v893_v62, %v672_v56  ;;  %v1399_v4 = vmul.f32 %v6963_v21, %v6828_v47  ;;  %v3928_v11 = vmul.f32 %v8580_v37, %v6942_v55  ;;  %v6983_v47 = vld [vmem:[%s4881_s29 + $0x78] sm:$0xff] }
 0x189   : > { %v4181_v14 = vmul.f32 %v8630_v19, %v6946_v31  ;;  %v1652_v58 = vmul.f32 %v6972_v63, %v6832_v48  ;;  %v1905_v8 = vmul.f32 %v6977_v9, %v6869_v34  ;;  %4244 = vst [vmem:[%s5500_s20 + $0x88] sm:$0xff] %v4212_v39  ;;  %v2158_v33 = vmul.f32 %v6983_v47, %v6873_v54  ;;  %v8673_v54 = vld [vmem:[#allocation27_spill] sm:$0xff] }
 0x18a   : > { %v2695_v20 = vadd.f32 %v2663_v50, %v2442_v60  ;;  %v1178_v12 = vadd.f32 %v1146_v61, %v925_v3  ;;  %v2411_v56 = vmul.f32 %v6296_v13, %v2351_v36  ;;  %v2664_v62 = vmul.f32 %v6301_v49, %v2604_v43  ;;  %v8671_v50 = vld [vmem:[#allocation53_spill] sm:$0xff]  ;;  %v8672_v60 = vld [vmem:[#allocation23_spill] sm:$0xff] }
 0x18b   : > { %v2917_v44 = vmul.f32 %v6306_v7, %v2857_v29  ;;  %v3170_v48 = vmul.f32 %v6310_v57, %v3110_v24  ;;  %v6992_v30 = vmul.f32 %v8582_v22, %v3363_v17  ;;  %v316_v61 = vcombine.high %v8671_v50, %v8671_v50  ;;  %v8675_v29 = vld [vmem:[#allocation37_spill] sm:$0xff]  ;;  %v8676_v57 = vld [vmem:[#allocation43_spill] sm:$0xff] }
 0x18c   : > { %v2948_v34 = vadd.f32 %v2916_v46, %v2695_v20  ;;  %v1431_v39 = vadd.f32 %v1399_v4, %v1178_v12  ;;  %v537_v3 = vcombine.high %v8672_v60, %v8672_v60  ;;  %v790_v36 = vcombine.high %v8673_v54, %v8673_v54 }
 0x18d   : > { %v1043_v43 = vcombine.high %v8674_v18, %v8674_v18  ;;  %v1296_v24 = vcombine.high %v8675_v29, %v8675_v29  ;;  %v1549_v17 = vcombine.high %v8676_v57, %v8676_v57  ;;  %v363_v20 = vrot.slane %v316_v61, %v4890_v10 }
 0x18e   : > { %v3201_v46 = vadd.f32 %v3169_v2, %v2948_v34  ;;  %v1684_v4 = vadd.f32 %v1652_v58, %v1431_v39  ;;  %v584_v12 = vrot.slane %v537_v3, %v4890_v10  ;;  %v7009_v50 = vmul.f32 %v8588_v52, %v3616_v28 }
 0x18f   : > { %v7012_v60 = vrot.slane %v790_v36, %v4890_v10  ;;  %v7015_v18 = vrot.slane %v1043_v43, %v4890_v10  ;;  %v7018_v54 = vrot.slane %v1296_v24, %v4890_v10  ;;  %v420_v58 = vmul.f32 %v6835_v45, %v363_v20  ;;  %v8677_v36 = vld [vmem:[#allocation57_spill] sm:$0xff]  ;;  %v8678_v24 = vld [vmem:[#allocation71_spill] sm:$0xff] }
 0x190   : > { %v3454_v29 = vadd.f32 %v3422_v53, %v3201_v46  ;;  %v1937_v57 = vadd.f32 %v1905_v8, %v1684_v4  ;;  %v641_v2 = vmul.f32 %v6817_v41, %v584_v12  ;;  %v7029_v61 = vrot.slane %v1549_v17, %v4890_v10  ;;  %v8679_v4 = vld [vmem:[#allocation73_spill] sm:$0xff] }
 0x191   : > { %v894_v34 = vmul.f32 %v6822_v15, %v7012_v60  ;;  %v1147_v28 = vmul.f32 %v6839_v51, %v7015_v18  ;;  %v1400_v39 = vmul.f32 %v6863_v38, %v7018_v54  ;;  %v1802_v43 = vcombine.high %v8677_v36, %v8677_v36  ;;  %v8680_v51 = vld [vmem:[#allocation82_spill] sm:$0xff]  ;;  %v8681_v38 = vld [vmem:[#allocation48_spill] sm:$0xff]  ;;  %v8682_v36 = vld [vmem:[#allocation29_spill] sm:$0xff] }
 0x192   : > { %v3707_v3 = vadd.f32 %v3675_v1, %v3454_v29  ;;  %v2190_v53 = vadd.f32 %v2158_v33, %v1937_v57  ;;  %v673_v8 = vadd.f32 %v641_v2, %v420_v58  ;;  %v2055_v46 = vcombine.high %v8678_v24, %v8678_v24  ;;  %v7047_v58 = vld [vmem:[%s4881_s29 + $0x50] sm:$0xff] }
 0x193   : > { %v2308_v15 = vcombine.high %v8679_v4, %v8679_v4  ;;  %v2561_v41 = vcombine.high %v8680_v51, %v8680_v51  ;;  %v2814_v45 = vcombine.high %v8681_v38, %v8681_v38  ;;  %v1849_v33 = vrot.slane %v1802_v43, %v4890_v10  ;;  %v8683_v24 = vld [vmem:[#allocation21_spill] sm:$0xff] }
 0x194   : > { %v3960_v17 = vadd.f32 %v3928_v11, %v3707_v3  ;;  %v2443_v52 = vadd.f32 %v2411_v56, %v2190_v53  ;;  %v926_v1 = vadd.f32 %v894_v34, %v673_v8  ;;  %v3929_v29 = vmul.f32 %v8597_v35, %v6942_v55 }
 0x195   : > { %v4182_v57 = vmul.f32 %v6368_v32, %v6946_v31  ;;  %v1653_v51 = vmul.f32 %v7047_v58, %v7029_v61  ;;  %v2102_v2 = vrot.slane %v2055_v46, %v4890_v10  ;;  %v2355_v34 = vrot.slane %v2308_v15, %v4890_v10 }
 0x196   : > { %v4213_v38 = vadd.f32 %v4181_v14, %v3960_v17  ;;  %v2696_v11 = vadd.f32 %v2664_v62, %v2443_v52  ;;  %v1179_v56 = vadd.f32 %v1147_v28, %v926_v1  ;;  %v1906_v3 = vmul.f32 %v8657_v59, %v1849_v33  ;;  %v8684_v14 = vld [vmem:[#allocation22_spill] sm:$0xff] }
 0x197   : > { %v2159_v53 = vmul.f32 %v6198_v26, %v2102_v2  ;;  %v2608_v35 = vrot.slane %v2561_v41, %v4890_v10  ;;  %v2861_v55 = vrot.slane %v2814_v45, %v4890_v10  ;;  %v3067_v43 = vcombine.high %v8682_v36, %v8682_v36  ;;  %v8685_v41 = vld [vmem:[#allocation25_spill] sm:$0xff] }
 0x198   : > { %4245 = vst [vmem:[%s5500_s20 + $0x90] sm:$0xff] %v4213_v38  ;;  %v2949_v31 = vadd.f32 %v2917_v44, %v2696_v11  ;;  %v1432_v8 = vadd.f32 %v1400_v39, %v1179_v56  ;;  %v3320_v52 = vcombine.high %v8683_v24, %v8683_v24  ;;  %v3573_v15 = vcombine.high %v8684_v14, %v8684_v14 }
 0x199   : > { %v3826_v26 = vcombine.high %v6723_v27, %v6723_v27  ;;  %v4079_v45 = vcombine.high %v8685_v41, %v8685_v41  ;;  %v421_v59 = vmul.f32 %v8664_v40, %v363_v20  ;;  %v3114_v28 = vrot.slane %v3067_v43, %v4890_v10  ;;  %v7081_v40 = vld [vmem:[%s4881_s29 + $0x80] sm:$0xff]  ;;  %v7085_v20 = vld [vmem:[%s4881_s29 + $0x90] sm:$0xff] }
 0x19a   : > { %v3202_v44 = vadd.f32 %v3170_v48, %v2949_v31  ;;  %v1685_v62 = vadd.f32 %v1653_v51, %v1432_v8  ;;  %v3367_v39 = vrot.slane %v3320_v52, %v4890_v10  ;;  %v3620_v46 = vrot.slane %v3573_v15, %v4890_v10 }
 0x19b   : > { %v7073_v4 = vrot.slane %v3826_v26, %v4890_v10  ;;  %v7076_v17 = vrot.slane %v4079_v45, %v4890_v10  ;;  %v642_v27 = vmul.f32 %v6934_v23, %v584_v12  ;;  %v2412_v48 = vmul.f32 %v7081_v40, %v2355_v34  ;;  %v8688_v45 = vld [vmem:[#allocation54_spill] sm:$0xff] }
 0x19c   : > { %v3455_v1 = vadd.f32 %v6992_v30, %v3202_v44  ;;  %v1938_v38 = vadd.f32 %v1906_v3, %v1685_v62  ;;  %v2665_v51 = vmul.f32 %v7085_v20, %v2608_v35  ;;  %v2918_v11 = vmul.f32 %v8670_v6, %v2861_v55  ;;  %v8692_v62 = vld [vmem:[#allocation76_spill] sm:$0xff] }
 0x19d   : > { %v3171_v56 = vmul.f32 %v6266_v42, %v3114_v28  ;;  %v3424_v31 = vmul.f32 %v6270_v25, %v3367_v39  ;;  %v674_v8 = vadd.f32 %v642_v27, %v421_v59  ;;  %v895_v30 = vmul.f32 %v6950_v16, %v7012_v60  ;;  %v8691_v59 = vld [vmem:[#allocation42_spill] sm:$0xff] }
 0x19e   : > { %v3708_v12 = vadd.f32 %v7009_v50, %v3455_v1  ;;  %v2191_v36 = vadd.f32 %v2159_v53, %v1938_v38  ;;  %v1148_v3 = vmul.f32 %v6958_v0, %v7015_v18  ;;  %v3677_v43 = vmul.f32 %v6277_v5, %v3620_v46 }
 0x19f   : > { %v3930_v24 = vmul.f32 %v8580_v37, %v7073_v4  ;;  %v4183_v42 = vmul.f32 %v8630_v19, %v7076_v17  ;;  %v1401_v25 = vmul.f32 %v6963_v21, %v7018_v54  ;;  %v927_v53 = vadd.f32 %v895_v30, %v674_v8 }
 0x1a0   : > { %v3961_v6 = vadd.f32 %v3929_v29, %v3708_v12  ;;  %v2444_v50 = vadd.f32 %v2412_v48, %v2191_v36  ;;  %v1654_v60 = vmul.f32 %v6972_v63, %v7029_v61  ;;  %v1907_v18 = vmul.f32 %v6977_v9, %v1849_v33  ;;  %v8686_v29 = vld [vmem:[#allocation11_spill] sm:$0xff]  ;;  %v8687_v61 = vld [vmem:[#allocation34_spill] sm:$0xff]  ;;  %v8693_v48 = vld [vmem:[#allocation61_spill] sm:$0xff] }
 0x1a1   : > { %v2160_v5 = vmul.f32 %v6983_v47, %v2102_v2  ;;  %v2413_v52 = vmul.f32 %v6296_v13, %v2355_v34  ;;  %v2666_v37 = vmul.f32 %v6301_v49, %v2608_v35  ;;  %v1180_v15 = vadd.f32 %v1148_v3, %v927_v53  ;;  %v8690_v35 = vld [vmem:[#allocation75_spill] sm:$0xff] }
 0x1a2   : > { %v4214_v14 = vadd.f32 %v4182_v57, %v3961_v6  ;;  %v2697_v19 = vadd.f32 %v2665_v51, %v2444_v50  ;;  %v2919_v54 = vmul.f32 %v6306_v7, %v2861_v55  ;;  %v7111_v26 = vmul.f32 %v8686_v29, %v3114_v28  ;;  %v8689_v57 = vld [vmem:[#allocation63_spill] sm:$0xff] }
 0x1a3   : > { %v7114_v41 = vmul.f32 %v8582_v22, %v3367_v39  ;;  %v318_v33 = vcombine.high %v8687_v61, %v8687_v61  ;;  %v539_v2 = vcombine.high %v8688_v45, %v8688_v45  ;;  %v1433_v49 = vadd.f32 %v1401_v25, %v1180_v15  ;;  %v8695_v12 = vld [vmem:[#allocation79_spill] sm:$0xff]  ;;  %v8696_v25 = vld [vmem:[#allocation80_spill] sm:$0xff] }
 0x1a4   : > { %4246 = vst [vmem:[%s5500_s20 + $0x98] sm:$0xff] %v4214_v14  ;;  %v2950_v13 = vadd.f32 %v2918_v11, %v2697_v19  ;;  %v792_v34 = vcombine.high %v8689_v57, %v8689_v57  ;;  %v1045_v7 = vcombine.high %v8690_v35, %v8690_v35  ;;  %v1298_v44 = vcombine.high %v8691_v59, %v8691_v59  ;;  %v8694_v11 = vld [vmem:[#allocation81_spill] sm:$0xff]  ;;  %v8698_v14 = vld [vmem:[#allocation66_spill] sm:$0xff]  ;;  %v8699_v15 = vld [vmem:[#allocation15_spill] sm:$0xff] }
 0x1a5   : > { %v367_v55 = vrot.slane %v318_v33, %v4890_v10  ;;  %v7127_v22 = vrot.slane %v539_v2, %v4890_v10  ;;  %v1551_v28 = vcombine.high %v8692_v62, %v8692_v62  ;;  %v1686_v27 = vadd.f32 %v1654_v60, %v1433_v49  ;;  %v8701_v45 = vld [vmem:[#allocation88_spill] sm:$0xff]  ;;  %v8702_v57 = vld [vmem:[#allocation85_spill] sm:$0xff]  ;;  %v8703_v35 = vld [vmem:[#allocation86_spill] sm:$0xff] }
 0x1a6   : > { %v3203_v39 = vadd.f32 %v3171_v56, %v2950_v13  ;;  %v7134_v1 = vrot.slane %v792_v34, %v4890_v10  ;;  %v7137_v38 = vrot.slane %v1045_v7, %v4890_v10  ;;  %v7140_v51 = vmul.f32 %v8693_v48, %v3620_v46  ;;  %v8697_v46 = vld [vmem:[#allocation84_spill] sm:$0xff] }
 0x1a7   : > { %v422_v8 = vmul.f32 %v8694_v11, %v367_v55  ;;  %v643_v36 = vmul.f32 %v8695_v12, %v7127_v22  ;;  %v7146_v30 = vrot.slane %v1298_v44, %v4890_v10  ;;  %v1939_v56 = vadd.f32 %v1907_v18, %v1686_v27  ;;  %v8700_v18 = vld [vmem:[#allocation18_spill] sm:$0xff]  ;;  %v7171_v59 = vld [vmem:[%s4881_s29 + $0xe8] sm:$0xff] }
 0x1a8   : > { %v3456_v3 = vadd.f32 %v3424_v31, %v3203_v39  ;;  %v896_v6 = vmul.f32 %v8696_v25, %v7134_v1  ;;  %v7151_v50 = vrot.slane %v1551_v28, %v4890_v10  ;;  %v1149_v60 = vmul.f32 %v8697_v46, %v7137_v38  ;;  %8704 = vst [vmem:[#allocation97_spill] sm:$0xff] %v7171_v59 }
 0x1a9   : > { %v675_v53 = vadd.f32 %v643_v36, %v422_v8  ;;  %v1402_v19 = vmul.f32 %v8698_v14, %v7146_v30  ;;  %v1804_v29 = vcombine.high %v8699_v15, %v8699_v15  ;;  %v2192_v31 = vadd.f32 %v2160_v5, %v1939_v56  ;;  %v7184_v8 = vld [vmem:[%s4881_s29 + $0x60] sm:$0xff]  ;;  %v7190_v56 = vld [vmem:[%s4881_s29 + $0x70] sm:$0xff]  ;;  %v8708_v15 = vld [vmem:[#allocation90_spill] sm:$0xff] }
 0x1aa   : > { %v3709_v61 = vadd.f32 %v3677_v43, %v3456_v3  ;;  %v2057_v33 = vcombine.high %v8700_v18, %v8700_v18  ;;  %v2310_v2 = vcombine.high %v8701_v45, %v8701_v45  ;;  %v2563_v34 = vcombine.high %v8702_v57, %v8702_v57  ;;  %8705 = vst [vmem:[#allocation98_spill] sm:$0xff] %v7184_v8 }
 0x1ab   : > { %v928_v13 = vadd.f32 %v896_v6, %v675_v53  ;;  %v7164_v49 = vrot.slane %v1804_v29, %v4890_v10  ;;  %v2816_v7 = vcombine.high %v8703_v35, %v8703_v35  ;;  %v2445_v5 = vadd.f32 %v2413_v52, %v2192_v31  ;;  %v8706_v6 = vld [vmem:[#allocation87_spill] sm:$0xff] }
 0x1ac   : > { %v3962_v43 = vadd.f32 %v3930_v24, %v3709_v61  ;;  %v3931_v44 = vmul.f32 %v7171_v59, %v7073_v4  ;;  %v2106_v62 = vrot.slane %v2057_v33, %v4890_v10  ;;  %v7178_v28 = vmul.f32 %v6368_v32, %v7076_v17  ;;  %v8709_v61 = vld [vmem:[#allocation12_spill] sm:$0xff]  ;;  %v8710_v33 = vld [vmem:[#allocation94_spill] sm:$0xff] }
 0x1ad   : > { %v1181_v39 = vadd.f32 %v1149_v60, %v928_v13  ;;  %v1655_v27 = vmul.f32 %v7047_v58, %v7151_v50  ;;  %v2359_v48 = vrot.slane %v2310_v2, %v4890_v10  ;;  %v2698_v52 = vadd.f32 %v2666_v37, %v2445_v5  ;;  %v8707_v37 = vld [vmem:[#allocation89_spill] sm:$0xff]  ;;  %v7207_v2 = vld [vmem:[%s4881_s29 + $0x8] sm:$0xff] }
 0x1ae   : > { %v4215_v24 = vadd.f32 %v4183_v42, %v3962_v43  ;;  %v1908_v4 = vmul.f32 %v7184_v8, %v7164_v49  ;;  %v2612_v36 = vrot.slane %v2563_v34, %v4890_v10  ;;  %v2161_v32 = vmul.f32 %v7190_v56, %v2106_v62 }
 0x1af   : > { %v1434_v3 = vadd.f32 %v1402_v19, %v1181_v39  ;;  %v2865_v17 = vrot.slane %v2816_v7, %v4890_v10  ;;  %v3069_v53 = vcombine.high %v8706_v6, %v8706_v6  ;;  %v2951_v42 = vadd.f32 %v2919_v54, %v2698_v52  ;;  %v7225_v52 = vld [vmem:[%s4881_s29 + $0xb0] sm:$0xff]  ;;  %v7229_v6 = vld [vmem:[%s4881_s29 + $0xc0] sm:$0xff] }
 0x1b0   : > { %4247 = vst [vmem:[%s5500_s20 + $0xa0] sm:$0xff] %v4215_v24  ;;  %v3322_v60 = vcombine.high %v8707_v37, %v8707_v37  ;;  %v3575_v29 = vcombine.high %v8708_v15, %v8708_v15  ;;  %v3828_v19 = vcombine.high %v8709_v61, %v8709_v61  ;;  %v4081_v45 = vcombine.high %v8710_v33, %v8710_v33  ;;  %v7236_v37 = vld [vmem:[%s4881_s29 + $0xd0] sm:$0xff]  ;;  %v7240_v15 = vld [vmem:[%s4881_s29 + $0xe0] sm:$0xff] }
 0x1b1   : > { %v1687_v31 = vadd.f32 %v1655_v27, %v1434_v3  ;;  %v3118_v18 = vrot.slane %v3069_v53, %v4890_v10  ;;  %v423_v54 = vmul.f32 %v7207_v2, %v367_v55  ;;  %v3204_v13 = vadd.f32 %v7111_v26, %v2951_v42  ;;  %v7221_v27 = vld [vmem:[%s4881_s29 + $0xa0] sm:$0xff]  ;;  %8711 = vst [vmem:[#allocation74_spill] sm:$0xff] %v7240_v15 }
 0x1b2   : > { %v3371_v57 = vrot.slane %v3322_v60, %v4890_v10  ;;  %v3624_v34 = vrot.slane %v3575_v29, %v4890_v10  ;;  %v3877_v35 = vrot.slane %v3828_v19, %v4890_v10  ;;  %v2414_v43 = vmul.f32 %v7081_v40, %v2359_v48  ;;  %v7246_v19 = vld [vmem:[%s4881_s29 + $0xf0] sm:$0xff] }
 0x1b3   : > { %v1940_v7 = vadd.f32 %v1908_v4, %v1687_v31  ;;  %v4130_v5 = vrot.slane %v4081_v45, %v4890_v10  ;;  %v644_v39 = vmul.f32 %v6934_v23, %v7127_v22  ;;  %v3457_v55 = vadd.f32 %v7114_v41, %v3204_v13  ;;  %8712 = vst [vmem:[#allocation50_spill] sm:$0xff] %v7246_v19 }
 0x1b4   : > { %v2667_v26 = vmul.f32 %v7085_v20, %v2612_v36  ;;  %v2920_v24 = vmul.f32 %v7221_v27, %v2865_v17  ;;  %v3173_v4 = vmul.f32 %v7225_v52, %v3118_v18  ;;  %v3426_v53 = vmul.f32 %v7229_v6, %v3371_v57 }
 0x1b5   : > { %v2193_v3 = vadd.f32 %v2161_v32, %v1940_v7  ;;  %v676_v42 = vadd.f32 %v644_v39, %v423_v54  ;;  %v897_v41 = vmul.f32 %v6950_v16, %v7134_v1  ;;  %v3710_v22 = vadd.f32 %v7140_v51, %v3457_v55  ;;  %v7263_v55 = vld [vmem:[%s4881_s29 + $0x98] sm:$0xff] }
 0x1b6   : > { %v3679_v60 = vmul.f32 %v7236_v37, %v3624_v34  ;;  %v3932_v32 = vmul.f32 %v7240_v15, %v3877_v35  ;;  %v1150_v29 = vmul.f32 %v6958_v0, %v7137_v38  ;;  %v7249_v1 = vmul.f32 %v7246_v19, %v4130_v5 }
 0x1b7   : > { %v2446_v61 = vadd.f32 %v2414_v43, %v2193_v3  ;;  %v929_v51 = vadd.f32 %v897_v41, %v676_v42  ;;  %v1403_v31 = vmul.f32 %v6963_v21, %v7146_v30  ;;  %v3963_v33 = vadd.f32 %v3931_v44, %v3710_v22  ;;  %v7259_v43 = vld [vmem:[%s4881_s29 + $0x88] sm:$0xff]  ;;  %v7272_v3 = vld [vmem:[%s4881_s29 + $0xb8] sm:$0xff] }
 0x1b8   : > { %v1656_v45 = vmul.f32 %v6972_v63, %v7151_v50  ;;  %v1909_v38 = vmul.f32 %v6977_v9, %v7164_v49  ;;  %v2162_v54 = vmul.f32 %v6983_v47, %v2106_v62  ;;  %v2415_v39 = vmul.f32 %v7259_v43, %v2359_v48  ;;  %v7268_v50 = vld [vmem:[%s4881_s29 + $0xa8] sm:$0xff]  ;;  %8713 = vst [vmem:[#allocation58_spill] sm:$0xff] %v7272_v3  ;;  %v8715_v22 = vld [vmem:[#allocation14_spill] sm:$0xff] }
 0x1b9   : > { %v2699_v13 = vadd.f32 %v2667_v26, %v2446_v61  ;;  %v1182_v7 = vadd.f32 %v1150_v29, %v929_v51  ;;  %v2668_v30 = vmul.f32 %v7263_v55, %v2612_v36  ;;  %v4216_v44 = vadd.f32 %v7178_v28, %v3963_v33  ;;  %v7278_v26 = vld [vmem:[%s4881_s29 + $0xc8] sm:$0xff] }
 0x1ba   : > { %v2921_v49 = vmul.f32 %v7268_v50, %v2865_v17  ;;  %v7275_v62 = vmul.f32 %v7272_v3, %v3118_v18  ;;  %v7281_v48 = vmul.f32 %v7278_v26, %v3371_v57  ;;  %v8714_v36 = vld [vmem:[#allocation16_spill] sm:$0xff]  ;;  %v7291_v17 = vld [vmem:[%s4881_s29 + $0xd8] sm:$0xff]  ;;  %v7297_v51 = vmul.f32 %v7171_v59, %v3877_v35 }
 0x1bb   : > { %v2952_v42 = vadd.f32 %v2920_v24, %v2699_v13  ;;  %v1435_v41 = vadd.f32 %v1403_v31, %v1182_v7  ;;  %v271_v28 = vcombine.high %v8714_v36, %v8714_v36  ;;  %v8716_v29 = vld [vmem:[#allocation24_spill] sm:$0xff]  ;;  %4248 = vst [vmem:[%s5500_s20 + $0xa8] sm:$0xff] %v4216_v44  ;;  %8718 = vst [vmem:[#allocation62_spill] sm:$0xff] %v7291_v17  ;;  %v8721_v31 = vld [vmem:[#allocation33_spill] sm:$0xff] }
 0x1bc   : > { %v7287_v61 = vrot.slane %v8716_v29, %v8715_v22  ;;  %v7294_v18 = vmul.f32 %v7291_v17, %v3624_v34  ;;  %v8719_v57 = vld [vmem:[#allocation28_spill] sm:$0xff]  ;;  %v7305_v33 = vrot.slane %v8721_v31, %v8715_v22  ;;  %v7315_v36 = vld [vmem:[%s4881_s29 + $0xf8] sm:$0xff]  ;;  %v8733_v31 = vld [vmem:[#allocation67_spill] sm:$0xff] }
 0x1bd   : > { %v7301_v24 = vrot.slane %v8719_v57, %v8715_v22  ;;  %v3205_v13 = vadd.f32 %v3173_v4, %v2952_v42  ;;  %v1688_v7 = vadd.f32 %v1656_v45, %v1435_v41  ;;  %v7308_v44 = vrot.slane %v271_v28, %v8715_v22  ;;  %8723 = vst [vmem:[#allocation46_spill] sm:$0xff] %v7315_v36  ;;  %v8724_v17 = vld [vmem:[#allocation40_spill] sm:$0xff] }
 0x1be   : > { %8717 = vst [vmem:[#allocation13_spill] sm:$0xff] %v7287_v61  ;;  %8722 = vst [vmem:[#allocation41_spill] sm:$0xff] %v7305_v33  ;;  %v7312_v34 = vrot.slane %v7287_v61, %v4890_v10  ;;  %v7318_v35 = vmul.f32 %v7315_v36, %v4130_v5  ;;  %v7326_v4 = vrot.slane %v8724_v17, %v8715_v22  ;;  %v8726_v45 = vld [vmem:[#allocation44_spill] sm:$0xff] }
 0x1bf   : > { %8720 = vst [vmem:[#allocation35_spill] sm:$0xff] %v7301_v24  ;;  %v7322_v59 = vrot.slane %v7301_v24, %v4890_v10  ;;  %v7330_v42 = vrot.slane %v8726_v45, %v8715_v22  ;;  %v3458_v41 = vadd.f32 %v3426_v53, %v3205_v13  ;;  %v1941_v28 = vadd.f32 %v1909_v38, %v1688_v7  ;;  %v8734_v57 = vld [vmem:[#allocation68_spill] sm:$0xff] }
 0x1c0   : > { %8725 = vst [vmem:[#allocation45_spill] sm:$0xff] %v7326_v4  ;;  %v7334_v61 = vrot.slane %v7308_v44, %v8715_v22  ;;  %v7338_v5 = vrot.slane %v7305_v33, %v4890_v10  ;;  %v645_v24 = vmul.f32 %v8695_v12, %v7312_v34  ;;  %v7346_v45 = vrot.slane %v7326_v4, %v4890_v10  ;;  %v8729_v33 = vld [vmem:[#allocation52_spill] sm:$0xff]  ;;  %v8731_v12 = vld [vmem:[#allocation83_spill] sm:$0xff] }
 0x1c1   : > { %8727 = vst [vmem:[#allocation49_spill] sm:$0xff] %v7330_v42  ;;  %v898_v36 = vmul.f32 %v8696_v25, %v7322_v59  ;;  %v7350_v53 = vrot.slane %v7330_v42, %v4890_v10  ;;  %v3711_v38 = vadd.f32 %v3679_v60, %v3458_v41  ;;  %v2194_v13 = vadd.f32 %v2162_v54, %v1941_v28  ;;  %v8735_v29 = vld [vmem:[#allocation72_spill] sm:$0xff] }
 0x1c2   : > { %8728 = vst [vmem:[#allocation51_spill] sm:$0xff] %v7334_v61  ;;  %v371_v7 = vrot.slane %v7334_v61, %v4890_v10  ;;  %v7356_v17 = vrot.slane %v8729_v33, %v8715_v22  ;;  %v7360_v25 = vrot.slane %v8731_v12, %v8715_v22  ;;  %v2263_v4 = vcombine.high %v8733_v31, %v8733_v31 }
 0x1c3   : > { %v2516_v42 = vcombine.high %v8734_v57, %v8734_v57  ;;  %v2769_v60 = vcombine.high %v8735_v29, %v8735_v29  ;;  %v3964_v54 = vadd.f32 %v3932_v32, %v3711_v38  ;;  %v2447_v41 = vadd.f32 %v2415_v39, %v2194_v13 }
 0x1c4   : > { %8730 = vst [vmem:[#allocation70_spill] sm:$0xff] %v7356_v17  ;;  %8732 = vst [vmem:[#allocation59_spill] sm:$0xff] %v7360_v25  ;;  %v424_v28 = vmul.f32 %v8694_v11, %v371_v7  ;;  %v7371_v61 = vrot.slane %v7356_v17, %v4890_v10  ;;  %v1151_v12 = vmul.f32 %v8697_v46, %v7338_v5 }
 0x1c5   : > { %v1404_v31 = vmul.f32 %v8698_v14, %v7346_v45  ;;  %v1657_v57 = vmul.f32 %v7047_v58, %v7350_v53  ;;  %v7380_v29 = vrot.slane %v2263_v4, %v8715_v22  ;;  %v4217_v32 = vadd.f32 %v7249_v1, %v3964_v54 }
 0x1c6   : > { %v2700_v39 = vadd.f32 %v2668_v30, %v2447_v41  ;;  %v677_v38 = vadd.f32 %v645_v24, %v424_v28  ;;  %v2110_v13 = vrot.slane %v7360_v25, %v4890_v10  ;;  %v1910_v17 = vmul.f32 %v7184_v8, %v7371_v61  ;;  %v8738_v24 = vld [vmem:[#allocation55_spill] sm:$0xff] }
 0x1c7   : > { %v7389_v33 = vrot.slane %v7380_v29, %v8715_v22  ;;  %v7392_v14 = vrot.slane %v2516_v42, %v8715_v22  ;;  %v7395_v4 = vrot.slane %v2769_v60, %v8715_v22  ;;  %4249 = vst [vmem:[%s5500_s20 + $0xb0] sm:$0xff] %v4217_v32  ;;  %v3022_v54 = vcombine.high %v8738_v24, %v8738_v24  ;;  %v8739_v41 = vld [vmem:[#allocation91_spill] sm:$0xff]  ;;  %v8742_v60 = vld [vmem:[#allocation92_spill] sm:$0xff] }
 0x1c8   : > { %v2953_v1 = vadd.f32 %v2921_v49, %v2700_v39  ;;  %v930_v30 = vadd.f32 %v898_v36, %v677_v38  ;;  %v3275_v28 = vcombine.high %v8739_v41, %v8739_v41  ;;  %v3528_v49 = vcombine.high %v8742_v60, %v8742_v60 }
 0x1c9   : > { %8736 = vst [vmem:[#allocation60_spill] sm:$0xff] %v7389_v33  ;;  %8737 = vst [vmem:[#allocation64_spill] sm:$0xff] %v7395_v4  ;;  %v2363_v25 = vrot.slane %v7389_v33, %v4890_v10  ;;  %v7406_v8 = vrot.slane %v7392_v14, %v8715_v22  ;;  %v7410_v42 = vrot.slane %v7395_v4, %v8715_v22 }
 0x1ca   : > { %v3206_v36 = vadd.f32 %v7275_v62, %v2953_v1  ;;  %v1183_v32 = vadd.f32 %v1151_v12, %v930_v30  ;;  %v2163_v39 = vmul.f32 %v7190_v56, %v2110_v13  ;;  %v7417_v38 = vrot.slane %v3022_v54, %v8715_v22  ;;  %v8746_v54 = vld [vmem:[#allocation32_spill] sm:$0xff] }
 0x1cb   : > { %8740 = vst [vmem:[#allocation65_spill] sm:$0xff] %v7406_v8  ;;  %8741 = vst [vmem:[#allocation69_spill] sm:$0xff] %v7410_v42  ;;  %v2416_v24 = vmul.f32 %v7081_v40, %v2363_v25  ;;  %v2616_v41 = vrot.slane %v7406_v8, %v4890_v10  ;;  %v2869_v33 = vrot.slane %v7410_v42, %v4890_v10  ;;  %v8747_v8 = vld [vmem:[#allocation36_spill] sm:$0xff] }
 0x1cc   : > { %v7425_v4 = vrot.slane %v3275_v28, %v8715_v22  ;;  %v3459_v60 = vadd.f32 %v7281_v48, %v3206_v36  ;;  %v1436_v62 = vadd.f32 %v1404_v31, %v1183_v32  ;;  %v7430_v12 = vrot.slane %v7417_v38, %v8715_v22 }
 0x1cd   : > { %v7433_v1 = vrot.slane %v3528_v49, %v8715_v22  ;;  %v3781_v42 = vcombine.high %v8746_v54, %v8746_v54  ;;  %v4034_v28 = vcombine.high %v8747_v8, %v8747_v8  ;;  %v425_v48 = vmul.f32 %v7207_v2, %v371_v7 }
 0x1ce   : > { %8743 = vst [vmem:[#allocation78_spill] sm:$0xff] %v7425_v4  ;;  %8744 = vst [vmem:[#allocation77_spill] sm:$0xff] %v7430_v12  ;;  %v7437_v30 = vrot.slane %v7425_v4, %v8715_v22  ;;  %v3712_v31 = vadd.f32 %v7294_v18, %v3459_v60  ;;  %v1689_v36 = vadd.f32 %v1657_v57, %v1436_v62 }
 0x1cf   : > { %v3122_v32 = vrot.slane %v7430_v12, %v4890_v10  ;;  %v7449_v49 = vrot.slane %v7433_v1, %v8715_v22  ;;  %v7454_v54 = vrot.slane %v3781_v42, %v8715_v22  ;;  %v7457_v8 = vrot.slane %v4034_v28, %v8715_v22 }
 0x1d0   : > { %8745 = vst [vmem:[#allocation20_spill] sm:$0xff] %v7437_v30  ;;  %v3375_v4 = vrot.slane %v7437_v30, %v4890_v10  ;;  %v646_v18 = vmul.f32 %v6934_v23, %v7312_v34  ;;  %v3965_v7 = vadd.f32 %v7297_v51, %v3712_v31  ;;  %v1942_v57 = vadd.f32 %v1910_v17, %v1689_v36 }
 0x1d1   : > { %8748 = vst [vmem:[#allocation26_spill] sm:$0xff] %v7449_v49  ;;  %v2669_v60 = vmul.f32 %v7085_v20, %v2616_v41  ;;  %v7465_v62 = vrot.slane %v7449_v49, %v4890_v10  ;;  %v2922_v30 = vmul.f32 %v7221_v27, %v2869_v33  ;;  %v7470_v42 = vrot.slane %v7454_v54, %v8715_v22 }
 0x1d2   : > { %v7474_v28 = vrot.slane %v7457_v8, %v8715_v22  ;;  %v678_v34 = vadd.f32 %v646_v18, %v425_v48  ;;  %v4218_v51 = vadd.f32 %v7318_v35, %v3965_v7  ;;  %v2195_v17 = vadd.f32 %v2163_v39, %v1942_v57 }
 0x1d3   : > { %8749 = vst [vmem:[#allocation30_spill] sm:$0xff] %v7470_v42  ;;  %v899_v31 = vmul.f32 %v6950_v16, %v7322_v59  ;;  %v1152_v36 = vmul.f32 %v6958_v0, %v7338_v5  ;;  %v3175_v49 = vmul.f32 %v7225_v52, %v3122_v32  ;;  %v3428_v12 = vmul.f32 %v7229_v6, %v3375_v4 }
 0x1d4   : > { %8750 = vst [vmem:[#allocation38_spill] sm:$0xff] %v7474_v28  ;;  %v7485_v23 = vrot.slane %v7470_v42, %v4890_v10  ;;  %v7489_v48 = vrot.slane %v7474_v28, %v4890_v10  ;;  %4250 = vst [vmem:[%s5500_s20 + $0xb8] sm:$0xff] %v4218_v51  ;;  %v2448_v35 = vadd.f32 %v2416_v24, %v2195_v17 }
 0x1d5   : > { %v3681_v59 = vmul.f32 %v7236_v37, %v7465_v62  ;;  %v931_v39 = vadd.f32 %v899_v31, %v678_v34  ;;  %v1405_v5 = vmul.f32 %v6963_v21, %v7346_v45  ;;  %v1658_v7 = vmul.f32 %v6972_v63, %v7350_v53 }
 0x1d6   : > { %v3934_v18 = vmul.f32 %v7240_v15, %v7485_v23  ;;  %v1911_v57 = vmul.f32 %v6977_v9, %v7371_v61  ;;  %v2164_v28 = vmul.f32 %v6983_v47, %v2110_v13  ;;  %v2701_v51 = vadd.f32 %v2669_v60, %v2448_v35  ;;  %v8751_v60 = vld [vmem:[#allocation24_spill] sm:$0xff] }
 0x1d7   : > { %v4187_v24 = vmul.f32 %v7246_v19, %v7489_v48  ;;  %v1184_v17 = vadd.f32 %v1152_v36, %v931_v39  ;;  %v2417_v34 = vmul.f32 %v7259_v43, %v2363_v25  ;;  %v2670_v45 = vmul.f32 %v7263_v55, %v2616_v41  ;;  %v8752_v36 = vld [vmem:[#allocation28_spill] sm:$0xff]  ;;  %v8753_v39 = vld [vmem:[#allocation33_spill] sm:$0xff] }
 0x1d8   : > { %v2923_v31 = vmul.f32 %v7268_v50, %v2869_v33  ;;  %v3176_v42 = vmul.f32 %v7272_v3, %v3122_v32  ;;  %v7510_v53 = vmul.f32 %v7278_v26, %v3375_v4  ;;  %v2954_v15 = vadd.f32 %v2922_v30, %v2701_v51  ;;  %v8754_v33 = vld [vmem:[#allocation40_spill] sm:$0xff] }
 0x1d9   : > { %v1437_v61 = vadd.f32 %v1405_v5, %v1184_v17  ;;  %v287_v13 = vcombine.high %v7308_v44, %v7308_v44  ;;  %v508_v35 = vcombine.high %v8751_v60, %v8751_v60  ;;  %v761_v25 = vcombine.high %v8752_v36, %v8752_v36  ;;  %v8755_v3 = vld [vmem:[#allocation44_spill] sm:$0xff] }
 0x1da   : > { %v1014_v41 = vcombine.high %v8753_v39, %v8753_v39  ;;  %v1267_v32 = vcombine.high %v8754_v33, %v8754_v33  ;;  %v1520_v4 = vcombine.high %v8755_v3, %v8755_v3  ;;  %v3207_v30 = vadd.f32 %v3175_v49, %v2954_v15  ;;  %v8762_v33 = vld [vmem:[#allocation79_spill] sm:$0xff] }
 0x1db   : > { %v1690_v5 = vadd.f32 %v1658_v7, %v1437_v61  ;;  %v7525_v51 = vrot.slane %v287_v13, %v8715_v22  ;;  %v7528_v44 = vrot.slane %v508_v35, %v8715_v22  ;;  %v7531_v17 = vrot.slane %v761_v25, %v8715_v22 }
 0x1dc   : > { %v7534_v60 = vrot.slane %v1014_v41, %v8715_v22  ;;  %v7537_v36 = vrot.slane %v1267_v32, %v8715_v22  ;;  %v7540_v39 = vrot.slane %v1520_v4, %v8715_v22  ;;  %v3460_v15 = vadd.f32 %v3428_v12, %v3207_v30  ;;  %v8763_v4 = vld [vmem:[#allocation80_spill] sm:$0xff] }
 0x1dd   : > { %8756 = vst [vmem:[#allocation39_spill] sm:$0xff] %v7525_v51  ;;  %8757 = vst [vmem:[#allocation56_spill] sm:$0xff] %v7528_v44  ;;  %v1943_v3 = vadd.f32 %v1911_v57, %v1690_v5  ;;  %v375_v49 = vrot.slane %v7525_v51, %v4890_v10  ;;  %v596_v7 = vrot.slane %v7528_v44, %v4890_v10 }
 0x1de   : > { %8758 = vst [vmem:[#allocation17_spill] sm:$0xff] %v7531_v17  ;;  %8759 = vst [vmem:[#allocation95_spill] sm:$0xff] %v7534_v60  ;;  %v7548_v61 = vrot.slane %v7531_v17, %v4890_v10  ;;  %v7552_v13 = vrot.slane %v7534_v60, %v4890_v10  ;;  %v7556_v35 = vrot.slane %v7537_v36, %v4890_v10  ;;  %v8764_v60 = vld [vmem:[#allocation66_spill] sm:$0xff] }
 0x1df   : > { %8760 = vst [vmem:[#allocation19_spill] sm:$0xff] %v7537_v36  ;;  %8761 = vst [vmem:[#allocation93_spill] sm:$0xff] %v7540_v39  ;;  %v7560_v12 = vrot.slane %v7540_v39, %v4890_v10  ;;  %v3713_v57 = vadd.f32 %v3681_v59, %v3460_v15  ;;  %v2196_v25 = vadd.f32 %v2164_v28, %v1943_v3  ;;  %v8765_v15 = vld [vmem:[#allocation52_spill] sm:$0xff]  ;;  %v8766_v3 = vld [vmem:[#allocation83_spill] sm:$0xff] }
 0x1e0   : > { %v426_v41 = vmul.f32 %v8694_v11, %v375_v49  ;;  %v647_v32 = vmul.f32 %v8762_v33, %v596_v7  ;;  %v900_v30 = vmul.f32 %v8763_v4, %v7548_v61  ;;  %v1153_v5 = vmul.f32 %v8697_v46, %v7552_v13 }
 0x1e1   : > { %v1406_v36 = vmul.f32 %v8764_v60, %v7556_v35  ;;  %v1659_v17 = vmul.f32 %v7047_v58, %v7560_v12  ;;  %v3966_v39 = vadd.f32 %v3934_v18, %v3713_v57  ;;  %v2449_v59 = vadd.f32 %v2417_v34, %v2196_v25  ;;  %v8767_v60 = vld [vmem:[#allocation64_spill] sm:$0xff] }
 0x1e2   : > { %v679_v28 = vadd.f32 %v647_v32, %v426_v41  ;;  %v1773_v11 = vcombine.high %v8765_v15, %v8765_v15  ;;  %v2026_v33 = vcombine.high %v8766_v3, %v8766_v3  ;;  %v2279_v4 = vcombine.high %v7380_v29, %v7380_v29 }
 0x1e3   : > { %v2532_v46 = vcombine.high %v7392_v14, %v7392_v14  ;;  %v2785_v44 = vcombine.high %v8767_v60, %v8767_v60  ;;  %v4219_v51 = vadd.f32 %v4187_v24, %v3966_v39  ;;  %v2702_v18 = vadd.f32 %v2670_v45, %v2449_v59 }
 0x1e4   : > { %v932_v57 = vadd.f32 %v900_v30, %v679_v28  ;;  %v7583_v34 = vrot.slane %v1773_v11, %v8715_v22  ;;  %v7586_v25 = vrot.slane %v2026_v33, %v8715_v22  ;;  %v7589_v41 = vrot.slane %v2279_v4, %v8715_v22  ;;  %v8771_v30 = vld [vmem:[#allocation62_spill] sm:$0xff] }
 0x1e5   : > { %v7592_v29 = vrot.slane %v2532_v46, %v8715_v22  ;;  %v7595_v14 = vrot.slane %v2785_v44, %v8715_v22  ;;  %4251 = vst [vmem:[%s5500_s20 + $0xc0] sm:$0xff] %v4219_v51  ;;  %v2955_v32 = vadd.f32 %v2923_v31, %v2702_v18  ;;  %v3038_v39 = vcombine.high %v7417_v38, %v7417_v38  ;;  %v8774_v33 = vld [vmem:[#allocation46_spill] sm:$0xff] }
 0x1e6   : > { %8768 = vst [vmem:[#allocation47_spill] sm:$0xff] %v7589_v41  ;;  %v1185_v24 = vadd.f32 %v1153_v5, %v932_v57  ;;  %v1861_v45 = vrot.slane %v7583_v34, %v4890_v10  ;;  %v3682_v59 = vmul.f32 %v8771_v30, %v7465_v62  ;;  %v2114_v28 = vrot.slane %v7586_v25, %v4890_v10  ;;  %v8772_v5 = vld [vmem:[#allocation98_spill] sm:$0xff]  ;;  %v8773_v62 = vld [vmem:[#allocation97_spill] sm:$0xff] }
 0x1e7   : > { %8769 = vst [vmem:[#allocation53_spill] sm:$0xff] %v7592_v29  ;;  %8770 = vst [vmem:[#allocation23_spill] sm:$0xff] %v7595_v14  ;;  %v7608_v15 = vrot.slane %v7589_v41, %v4890_v10  ;;  %v7612_v31 = vrot.slane %v7592_v29, %v4890_v10  ;;  %v3208_v51 = vadd.f32 %v3176_v42, %v2955_v32  ;;  %v8776_v57 = vld [vmem:[#allocation78_spill] sm:$0xff] }
 0x1e8   : > { %v1438_v44 = vadd.f32 %v1406_v36, %v1185_v24  ;;  %v1912_v11 = vmul.f32 %v8772_v5, %v1861_v45  ;;  %v7617_v38 = vrot.slane %v7595_v14, %v4890_v10  ;;  %v3935_v3 = vmul.f32 %v8773_v62, %v7485_v23 }
 0x1e9   : > { %v4188_v4 = vmul.f32 %v8774_v33, %v7489_v48  ;;  %v2165_v46 = vmul.f32 %v7190_v56, %v2114_v28  ;;  %v7625_v60 = vrot.slane %v3038_v39, %v8715_v22  ;;  %v3461_v42 = vadd.f32 %v7510_v53, %v3208_v51 }
 0x1ea   : > { %v1691_v36 = vadd.f32 %v1659_v17, %v1438_v44  ;;  %v2418_v18 = vmul.f32 %v7081_v40, %v7608_v15  ;;  %v3291_v32 = vcombine.high %v8776_v57, %v8776_v57  ;;  %v3544_v23 = vcombine.high %v7433_v1, %v7433_v1 }
 0x1eb   : > { %8775 = vst [vmem:[#allocation27_spill] sm:$0xff] %v7625_v60  ;;  %v3797_v48 = vcombine.high %v7454_v54, %v7454_v54  ;;  %v4050_v24 = vcombine.high %v7457_v8, %v7457_v8  ;;  %v427_v39 = vmul.f32 %v7207_v2, %v375_v49  ;;  %v3714_v14 = vadd.f32 %v3682_v59, %v3461_v42  ;;  %v8779_v8 = vld [vmem:[#allocation96_spill] sm:$0xff] }
 0x1ec   : > { %v1944_v53 = vadd.f32 %v1912_v11, %v1691_v36  ;;  %v2671_v17 = vmul.f32 %v7085_v20, %v7612_v31  ;;  %v2924_v51 = vmul.f32 %v7221_v27, %v7617_v38  ;;  %v7645_v44 = vrot.slane %v7625_v60, %v4890_v10  ;;  %v8791_v60 = vld [vmem:[#allocation60_spill] sm:$0xff] }
 0x1ed   : > { %v7648_v1 = vrot.slane %v3291_v32, %v8715_v22  ;;  %v7651_v54 = vrot.slane %v3544_v23, %v8715_v22  ;;  %v648_v49 = vmul.f32 %v8779_v8, %v596_v7  ;;  %v3967_v59 = vadd.f32 %v3935_v3, %v3714_v14 }
 0x1ee   : > { %v2197_v11 = vadd.f32 %v2165_v46, %v1944_v53  ;;  %v7655_v42 = vrot.slane %v3797_v48, %v8715_v22  ;;  %v901_v36 = vmul.f32 %v6950_v16, %v7548_v61  ;;  %v7668_v23 = vrot.slane %v4050_v24, %v8715_v22 }
 0x1ef   : > { %8777 = vst [vmem:[#allocation31_spill] sm:$0xff] %v7648_v1  ;;  %8778 = vst [vmem:[#allocation37_spill] sm:$0xff] %v7651_v54  ;;  %v7661_v57 = vrot.slane %v7648_v1, %v4890_v10  ;;  %v7665_v32 = vrot.slane %v7651_v54, %v4890_v10  ;;  %v680_v7 = vadd.f32 %v648_v49, %v427_v39  ;;  %v8790_v1 = vld [vmem:[#allocation59_spill] sm:$0xff] }
 0x1f0   : > { %8780 = vst [vmem:[#allocation43_spill] sm:$0xff] %v7655_v42  ;;  %8781 = vst [vmem:[#allocation57_spill] sm:$0xff] %v7668_v23  ;;  %v4220_v14 = vadd.f32 %v4188_v4, %v3967_v59  ;;  %v2450_v3 = vadd.f32 %v2418_v18, %v2197_v11  ;;  %v7672_v46 = vrot.slane %v7655_v42, %v4890_v10  ;;  %v8782_v59 = vld [vmem:[#allocation74_spill] sm:$0xff] }
 0x1f1   : > { %v1154_v61 = vmul.f32 %v6958_v0, %v7552_v13  ;;  %v7678_v48 = vrot.slane %v7668_v23, %v4890_v10  ;;  %v933_v53 = vadd.f32 %v901_v36, %v680_v7  ;;  %v3177_v22 = vmul.f32 %v7225_v52, %v7645_v44  ;;  %v8786_v23 = vld [vmem:[#allocation41_spill] sm:$0xff] }
 0x1f2   : > { %4252 = vst [vmem:[%s5500_s20 + $0xc8] sm:$0xff] %v4220_v14  ;;  %v2703_v54 = vadd.f32 %v2671_v17, %v2450_v3  ;;  %v1407_v4 = vmul.f32 %v6963_v21, %v7556_v35  ;;  %v1660_v24 = vmul.f32 %v6972_v63, %v7560_v12  ;;  %v3430_v13 = vmul.f32 %v7229_v6, %v7661_v57  ;;  %v8783_v63 = vld [vmem:[#allocation51_spill] sm:$0xff] }
 0x1f3   : > { %v1186_v18 = vadd.f32 %v1154_v61, %v933_v53  ;;  %v3683_v49 = vmul.f32 %v7236_v37, %v7665_v32  ;;  %v3936_v17 = vmul.f32 %v8782_v59, %v7672_v46  ;;  %v4189_v11 = vmul.f32 %v7246_v19, %v7678_v48  ;;  %v8785_v3 = vld [vmem:[#allocation35_spill] sm:$0xff] }
 0x1f4   : > { %v2956_v39 = vadd.f32 %v2924_v51, %v2703_v54  ;;  %v1913_v35 = vmul.f32 %v6977_v9, %v1861_v45  ;;  %v2166_v7 = vmul.f32 %v6983_v47, %v2114_v28  ;;  %v317_v12 = vcombine.high %v8783_v63, %v8783_v63  ;;  %v8784_v51 = vld [vmem:[#allocation13_spill] sm:$0xff] }
 0x1f5   : > { %v1439_v36 = vadd.f32 %v1407_v4, %v1186_v18  ;;  %v538_v54 = vcombine.high %v8784_v51, %v8784_v51  ;;  %v791_v61 = vcombine.high %v8785_v3, %v8785_v3  ;;  %v1044_v4 = vcombine.high %v8786_v23, %v8786_v23  ;;  %v8787_v18 = vld [vmem:[#allocation45_spill] sm:$0xff] }
 0x1f6   : > { %v3209_v14 = vadd.f32 %v3177_v22, %v2956_v39  ;;  %v1297_v9 = vcombine.high %v8787_v18, %v8787_v18  ;;  %v8788_v47 = vld [vmem:[#allocation49_spill] sm:$0xff]  ;;  %v379_v22 = vrot.slane %v317_v12, %v4890_v10  ;;  %v7721_v18 = vld [vmem:[%s4881_s29] sm:$0xff]  ;;  %v2309_v29 = vcombine.high %v8791_v60, %v8791_v60 }
 0x1f7   : > { %v1692_v53 = vadd.f32 %v1660_v24, %v1439_v36  ;;  %v1550_v45 = vcombine.high %v8788_v47, %v8788_v47  ;;  %v600_v39 = vrot.slane %v538_v54, %v4890_v10  ;;  %v853_v63 = vrot.slane %v791_v61, %v4890_v10  ;;  %v7729_v54 = vld [vmem:[%s4881_s29 + $0x20] sm:$0xff] }
 0x1f8   : > { %v3462_v28 = vadd.f32 %v3430_v13, %v3209_v14  ;;  %v2419_v24 = vmul.f32 %v7259_v43, %v7608_v15  ;;  %v7715_v23 = vrot.slane %v1044_v4, %v4890_v10  ;;  %v7718_v36 = vrot.slane %v1297_v9, %v4890_v10  ;;  %v7725_v14 = vld [vmem:[%s4881_s29 + $0x10] sm:$0xff] }
 0x1f9   : > { %v1945_v51 = vadd.f32 %v1913_v35, %v1692_v53  ;;  %v428_v13 = vmul.f32 %v7721_v18, %v379_v22  ;;  %v649_v12 = vmul.f32 %v7725_v14, %v600_v39  ;;  %v902_v15 = vmul.f32 %v7729_v54, %v853_v63  ;;  %v7735_v53 = vld [vmem:[%s4881_s29 + $0x30] sm:$0xff] }
 0x1fa   : > { %v3715_v3 = vadd.f32 %v3683_v49, %v3462_v28  ;;  %v2672_v61 = vmul.f32 %v7263_v55, %v7612_v31  ;;  %v1155_v49 = vmul.f32 %v7735_v53, %v7715_v23  ;;  %v7740_v4 = vrot.slane %v1550_v45, %v4890_v10  ;;  %v8789_v28 = vld [vmem:[#allocation70_spill] sm:$0xff]  ;;  %v7751_v45 = vld [vmem:[%s4881_s29 + $0x40] sm:$0xff] }
 0x1fb   : > { %v2198_v35 = vadd.f32 %v2166_v7, %v1945_v51  ;;  %v681_v47 = vadd.f32 %v649_v12, %v428_v13  ;;  %v1803_v42 = vcombine.high %v8789_v28, %v8789_v28  ;;  %v2056_v7 = vcombine.high %v8790_v1, %v8790_v1  ;;  %v8792_v12 = vld [vmem:[#allocation58_spill] sm:$0xff] }
 0x1fc   : > { %v3968_v9 = vadd.f32 %v3936_v17, %v3715_v3  ;;  %v2925_v31 = vmul.f32 %v7268_v50, %v7617_v38  ;;  %v1408_v17 = vmul.f32 %v7751_v45, %v7718_v36  ;;  %v3178_v1 = vmul.f32 %v8792_v12, %v7645_v44  ;;  %v8793_v38 = vld [vmem:[#allocation65_spill] sm:$0xff] }
 0x1fd   : > { %v2451_v51 = vadd.f32 %v2419_v24, %v2198_v35  ;;  %v934_v19 = vadd.f32 %v902_v15, %v681_v47  ;;  %v1865_v3 = vrot.slane %v1803_v42, %v4890_v10  ;;  %v3431_v24 = vmul.f32 %v7278_v26, %v7661_v57  ;;  %v8795_v57 = vld [vmem:[#allocation77_spill] sm:$0xff] }
 0x1fe   : > { %v4221_v41 = vadd.f32 %v4189_v11, %v3968_v9  ;;  %v2562_v35 = vcombine.high %v8793_v38, %v8793_v38  ;;  %v1661_v11 = vmul.f32 %v7047_v58, %v7740_v4  ;;  %v2118_v15 = vrot.slane %v2056_v7, %v4890_v10  ;;  %v8794_v9 = vld [vmem:[#allocation69_spill] sm:$0xff]  ;;  %v8796_v7 = vld [vmem:[#allocation20_spill] sm:$0xff] }
 0x1ff   : > { %v2704_v13 = vadd.f32 %v2672_v61, %v2451_v51  ;;  %v1187_v60 = vadd.f32 %v1155_v49, %v934_v19  ;;  %v2815_v42 = vcombine.high %v8794_v9, %v8794_v9  ;;  %v3684_v44 = vmul.f32 %v8771_v30, %v7665_v32  ;;  %v8797_v32 = vld [vmem:[#allocation26_spill] sm:$0xff] }
 0x200   : > { %4253 = vst [vmem:[%s5500_s20 + $0xd0] sm:$0xff] %v4221_v41  ;;  %v7771_v47 = vrot.slane %v2309_v29, %v4890_v10  ;;  %v3068_v28 = vcombine.high %v8795_v57, %v8795_v57  ;;  %v3937_v19 = vmul.f32 %v8773_v62, %v7672_v46  ;;  %v1914_v49 = vmul.f32 %v8772_v5, %v1865_v3 }
 0x201   : > { %v2957_v61 = vadd.f32 %v2925_v31, %v2704_v13  ;;  %v1440_v41 = vadd.f32 %v1408_v17, %v1187_v60  ;;  %v3321_v51 = vcombine.high %v8796_v7, %v8796_v7  ;;  %v7781_v31 = vrot.slane %v2562_v35, %v4890_v10  ;;  %v8798_v17 = vld [vmem:[#allocation30_spill] sm:$0xff] }
 0x202   : > { %v3574_v29 = vcombine.high %v8797_v32, %v8797_v32  ;;  %v429_v13 = vmul.f32 %v7207_v2, %v379_v22  ;;  %v2167_v57 = vmul.f32 %v7190_v56, %v2118_v15  ;;  %v7788_v46 = vrot.slane %v2815_v42, %v4890_v10 }
 0x203   : > { %v3210_v38 = vadd.f32 %v3178_v1, %v2957_v61  ;;  %v1693_v9 = vadd.f32 %v1661_v11, %v1440_v41  ;;  %v3827_v60 = vcombine.high %v8798_v17, %v8798_v17  ;;  %v2420_v1 = vmul.f32 %v7081_v40, %v7771_v47  ;;  %v8799_v11 = vld [vmem:[#allocation38_spill] sm:$0xff] }
 0x204   : > { %v7795_v35 = vrot.slane %v3068_v28, %v4890_v10  ;;  %v650_v61 = vmul.f32 %v8779_v8, %v600_v39  ;;  %v7799_v22 = vrot.slane %v3321_v51, %v4890_v10  ;;  %v4080_v42 = vcombine.high %v8799_v11, %v8799_v11 }
 0x205   : > { %v3463_v62 = vadd.f32 %v3431_v24, %v3210_v38  ;;  %v1946_v7 = vadd.f32 %v1914_v49, %v1693_v9  ;;  %v903_v41 = vmul.f32 %v6950_v16, %v853_v63  ;;  %v4190_v24 = vmul.f32 %v8774_v33, %v7678_v48  ;;  %v7830_v9 = vld [vmem:[%s4881_s29 + $0x58] sm:$0xff] }
 0x206   : > { %v7807_v38 = vrot.slane %v3574_v29, %v4890_v10  ;;  %v682_v28 = vadd.f32 %v650_v61, %v429_v13  ;;  %v2673_v8 = vmul.f32 %v7085_v20, %v7781_v31  ;;  %v7812_v39 = vrot.slane %v3827_v60, %v4890_v10  ;;  %v7837_v60 = vld [vmem:[%s4881_s29 + $0x68] sm:$0xff]  ;;  %v7841_v61 = vld [vmem:[%s4881_s29 + $0x78] sm:$0xff] }
 0x207   : > { %v3716_v32 = vadd.f32 %v3684_v44, %v3463_v62  ;;  %v2199_v17 = vadd.f32 %v2167_v57, %v1946_v7  ;;  %v1156_v49 = vmul.f32 %v6958_v0, %v7715_v23  ;;  %v2926_v62 = vmul.f32 %v7221_v27, %v7788_v46 }
 0x208   : > { %v935_v48 = vadd.f32 %v903_v41, %v682_v28  ;;  %v1409_v63 = vmul.f32 %v6963_v21, %v7718_v36  ;;  %v3179_v51 = vmul.f32 %v7225_v52, %v7795_v35  ;;  %v3432_v29 = vmul.f32 %v7229_v6, %v7799_v22 }
 0x209   : > { %v3969_v16 = vadd.f32 %v3937_v19, %v3716_v32  ;;  %v2452_v44 = vadd.f32 %v2420_v1, %v2199_v17  ;;  %v7825_v0 = vrot.slane %v4080_v42, %v4890_v10  ;;  %v3685_v19 = vmul.f32 %v7236_v37, %v7807_v38  ;;  %v8800_v42 = vld [vmem:[#allocation39_spill] sm:$0xff]  ;;  %v8801_v32 = vld [vmem:[#allocation56_spill] sm:$0xff] }
 0x20a   : > { %v1188_v13 = vadd.f32 %v1156_v49, %v935_v48  ;;  %v1662_v21 = vmul.f32 %v7830_v9, %v7740_v4  ;;  %v3938_v57 = vmul.f32 %v8782_v59, %v7812_v39  ;;  %v1915_v1 = vmul.f32 %v7837_v60, %v1865_v3  ;;  %v8804_v3 = vld [vmem:[#allocation19_spill] sm:$0xff]  ;;  %v8805_v48 = vld [vmem:[#allocation93_spill] sm:$0xff] }
 0x20b   : > { %v4222_v23 = vadd.f32 %v4190_v24, %v3969_v16  ;;  %v2705_v36 = vadd.f32 %v2673_v8, %v2452_v44  ;;  %v2168_v7 = vmul.f32 %v7841_v61, %v2118_v15  ;;  %v319_v41 = vcombine.high %v8800_v42, %v8800_v42  ;;  %v8802_v24 = vld [vmem:[#allocation17_spill] sm:$0xff]  ;;  %v8803_v8 = vld [vmem:[#allocation95_spill] sm:$0xff] }
 0x20c   : > { %v1441_v11 = vadd.f32 %v1409_v63, %v1188_v13  ;;  %v540_v4 = vcombine.high %v8801_v32, %v8801_v32  ;;  %v793_v28 = vcombine.high %v8802_v24, %v8802_v24  ;;  %v1046_v49 = vcombine.high %v8803_v8, %v8803_v8 }
 0x20d   : > { %4254 = vst [vmem:[%s5500_s20 + $0xd8] sm:$0xff] %v4222_v23  ;;  %v2958_v17 = vadd.f32 %v2926_v62, %v2705_v36  ;;  %v1299_v16 = vcombine.high %v8804_v3, %v8804_v3  ;;  %v1552_v15 = vcombine.high %v8805_v48, %v8805_v48  ;;  %v383_v44 = vrot.slane %v319_v41, %v4890_v10  ;;  %v8808_v48 = vld [vmem:[#allocation53_spill] sm:$0xff] }
 0x20e   : > { %v1694_v63 = vadd.f32 %v1662_v21, %v1441_v11  ;;  %v604_v23 = vrot.slane %v540_v4, %v4890_v10  ;;  %v7860_v13 = vrot.slane %v793_v28, %v4890_v10  ;;  %v2421_v62 = vmul.f32 %v7259_v43, %v7771_v47 }
 0x20f   : > { %v3211_v42 = vadd.f32 %v3179_v51, %v2958_v17  ;;  %v1110_v36 = vrot.slane %v1046_v49, %v4890_v10  ;;  %v7866_v32 = vrot.slane %v1299_v16, %v4890_v10  ;;  %v430_v8 = vmul.f32 %v7721_v18, %v383_v44  ;;  %v8807_v16 = vld [vmem:[#allocation47_spill] sm:$0xff] }
 0x210   : > { %v1947_v24 = vadd.f32 %v1915_v1, %v1694_v63  ;;  %v651_v21 = vmul.f32 %v7725_v14, %v604_v23  ;;  %v904_v11 = vmul.f32 %v7729_v54, %v7860_v13  ;;  %v2674_v51 = vmul.f32 %v7263_v55, %v7781_v31  ;;  %v8806_v54 = vld [vmem:[#allocation50_spill] sm:$0xff] }
 0x211   : > { %v3464_v41 = vadd.f32 %v3432_v29, %v3211_v42  ;;  %v1157_v4 = vmul.f32 %v7735_v53, %v1110_v36  ;;  %v7876_v47 = vrot.slane %v1552_v15, %v4890_v10  ;;  %v1805_v1 = vcombine.high %v7583_v34, %v7583_v34 }
 0x212   : > { %v2200_v28 = vadd.f32 %v2168_v7, %v1947_v24  ;;  %v683_v17 = vadd.f32 %v651_v21, %v430_v8  ;;  %v2058_v18 = vcombine.high %v7586_v25, %v7586_v25  ;;  %v4191_v29 = vmul.f32 %v8806_v54, %v7825_v0  ;;  %v8809_v8 = vld [vmem:[#allocation23_spill] sm:$0xff] }
 0x213   : > { %v3717_v14 = vadd.f32 %v3685_v19, %v3464_v41  ;;  %v2927_v31 = vmul.f32 %v7268_v50, %v7788_v46  ;;  %v1410_v53 = vmul.f32 %v7751_v45, %v7866_v32  ;;  %v7889_v7 = vrot.slane %v1805_v1, %v4890_v10 }
 0x214   : > { %v2453_v49 = vadd.f32 %v2421_v62, %v2200_v28  ;;  %v936_v3 = vadd.f32 %v904_v11, %v683_v17  ;;  %v2311_v34 = vcombine.high %v8807_v16, %v8807_v16  ;;  %v3180_v19 = vmul.f32 %v8792_v12, %v7795_v35 }
 0x215   : > { %v3970_v25 = vadd.f32 %v3938_v57, %v3717_v14  ;;  %v2564_v15 = vcombine.high %v8808_v48, %v8808_v48  ;;  %v1663_v45 = vmul.f32 %v7047_v58, %v7876_v47  ;;  %v2122_v42 = vrot.slane %v2058_v18, %v4890_v10  ;;  %v8811_v14 = vld [vmem:[#allocation97_spill] sm:$0xff] }
 0x216   : > { %v2706_v46 = vadd.f32 %v2674_v51, %v2453_v49  ;;  %v1189_v63 = vadd.f32 %v1157_v4, %v936_v3  ;;  %v3433_v24 = vmul.f32 %v7278_v26, %v7799_v22  ;;  %v2817_v57 = vcombine.high %v8809_v8, %v8809_v8  ;;  %v8810_v51 = vld [vmem:[#allocation27_spill] sm:$0xff]  ;;  %v4549_v49 = vld [vmem:[%s4881_s29 + $0x18] sm:$0xff] }
 0x217   : > { %v4223_v62 = vadd.f32 %v4191_v29, %v3970_v25  ;;  %v1916_v11 = vmul.f32 %v8772_v5, %v7889_v7  ;;  %v2375_v41 = vrot.slane %v2311_v34, %v4890_v10  ;;  %v2628_v58 = vrot.slane %v2564_v15, %v4890_v10  ;;  %v8813_v34 = vld [vmem:[#allocation37_spill] sm:$0xff] }
 0x218   : > { %v2959_v21 = vadd.f32 %v2927_v31, %v2706_v46  ;;  %v1442_v35 = vadd.f32 %v1410_v53, %v1189_v63  ;;  %v3070_v4 = vcombine.high %v8810_v51, %v8810_v51  ;;  %v431_v28 = vmul.f32 %v7207_v2, %v383_v44  ;;  %v8812_v31 = vld [vmem:[#allocation31_spill] sm:$0xff]  ;;  %v4550_v46 = vld [vmem:[%s4881_s29 + $0x28] sm:$0xff]  ;;  %v4551_v63 = vld [vmem:[%s4881_s29 + $0x38] sm:$0xff] }
 0x219   : > { %4255 = vst [vmem:[%s5500_s20 + $0xe0] sm:$0xff] %v4223_v62  ;;  %v3686_v17 = vmul.f32 %v8771_v30, %v7807_v38  ;;  %v2169_v18 = vmul.f32 %v7190_v56, %v2122_v42  ;;  %v3939_v5 = vmul.f32 %v8811_v14, %v7812_v39  ;;  %v2881_v29 = vrot.slane %v2817_v57, %v4890_v10  ;;  %v8815_v51 = vld [vmem:[#allocation57_spill] sm:$0xff] }
 0x21a   : > { %v3212_v22 = vadd.f32 %v3180_v19, %v2959_v21  ;;  %v1695_v1 = vadd.f32 %v1663_v45, %v1442_v35  ;;  %v3323_v53 = vcombine.high %v8812_v31, %v8812_v31  ;;  %v652_v3 = vmul.f32 %v4549_v49, %v604_v23  ;;  %v4552_v21 = vld [vmem:[%s4881_s29 + $0x48] sm:$0xff] }
 0x21b   : > { %v4192_v44 = vmul.f32 %v8774_v33, %v7825_v0  ;;  %v2422_v16 = vmul.f32 %v7081_v40, %v2375_v41  ;;  %v2675_v56 = vmul.f32 %v7085_v20, %v2628_v58  ;;  %v3134_v39 = vrot.slane %v3070_v4, %v4890_v10  ;;  %v8814_v20 = vld [vmem:[#allocation43_spill] sm:$0xff] }
 0x21c   : > { %v3465_v2 = vadd.f32 %v3433_v24, %v3212_v22  ;;  %v1948_v38 = vadd.f32 %v1916_v11, %v1695_v1  ;;  %v3576_v25 = vcombine.high %v8813_v34, %v8813_v34  ;;  %v684_v19 = vadd.f32 %v652_v3, %v431_v28 }
 0x21d   : > { %v905_v23 = vmul.f32 %v4550_v46, %v7860_v13  ;;  %v1158_v45 = vmul.f32 %v4551_v63, %v1110_v36  ;;  %v2928_v0 = vmul.f32 %v7221_v27, %v2881_v29  ;;  %v3387_v40 = vrot.slane %v3323_v53, %v4890_v10 }
 0x21e   : > { %v3718_v48 = vadd.f32 %v3686_v17, %v3465_v2  ;;  %v2201_v15 = vadd.f32 %v2169_v18, %v1948_v38  ;;  %v3829_v62 = vcombine.high %v8814_v20, %v8814_v20  ;;  %v1411_v35 = vmul.f32 %v4552_v21, %v7866_v32 }
 0x21f   : > { %v937_v57 = vadd.f32 %v905_v23, %v684_v19  ;;  %v3181_v11 = vmul.f32 %v7225_v52, %v3134_v39  ;;  %v3640_v13 = vrot.slane %v3576_v25, %v4890_v10  ;;  %v4082_v36 = vcombine.high %v8815_v51, %v8815_v51 }
 0x220   : > { %v3971_v24 = vadd.f32 %v3939_v5, %v3718_v48  ;;  %v2454_v8 = vadd.f32 %v2422_v16, %v2201_v15  ;;  %v1664_v22 = vmul.f32 %v7830_v9, %v7876_v47  ;;  %v3893_v17 = vrot.slane %v3829_v62, %v4890_v10 }
 0x221   : > { %v1190_v28 = vadd.f32 %v1158_v45, %v937_v57  ;;  %v3434_v18 = vmul.f32 %v7229_v6, %v3387_v40  ;;  %v1917_v52 = vmul.f32 %v7837_v60, %v7889_v7  ;;  %v4146_v5 = vrot.slane %v4082_v36, %v4890_v10 }
 0x222   : > { %v4224_v27 = vadd.f32 %v4192_v44, %v3971_v24  ;;  %v2707_v4 = vadd.f32 %v2675_v56, %v2454_v8  ;;  %v3687_v53 = vmul.f32 %v7236_v37, %v3640_v13  ;;  %v2170_v3 = vmul.f32 %v7841_v61, %v2122_v42 }
 0x223   : > { %v1443_v32 = vadd.f32 %v1411_v35, %v1190_v28  ;;  %v3940_v47 = vmul.f32 %v8782_v59, %v3893_v17  ;;  %v2423_v44 = vmul.f32 %v7259_v43, %v2375_v41  ;;  %v4193_v38 = vmul.f32 %v8806_v54, %v4146_v5 }
 0x224   : > { %4256 = vst [vmem:[%s5500_s20 + $0xe8] sm:$0xff] %v4224_v27  ;;  %v2960_v1 = vadd.f32 %v2928_v0, %v2707_v4  ;;  %v2676_v10 = vmul.f32 %v7263_v55, %v2628_v58  ;;  %v2929_v16 = vmul.f32 %v7268_v50, %v2881_v29  ;;  %v3182_v42 = vmul.f32 %v8792_v12, %v3134_v39 }
 0x225   : > { %v1696_v49 = vadd.f32 %v1664_v22, %v1443_v32  ;;  %v3435_v59 = vmul.f32 %v7278_v26, %v3387_v40  ;;  %v3688_v41 = vmul.f32 %v8771_v30, %v3640_v13  ;;  %v3941_v58 = vmul.f32 %v8811_v14, %v3893_v17 }
 0x226   : > { %v3213_v31 = vadd.f32 %v3181_v11, %v2960_v1  ;;  %v4194_v50 = vmul.f32 %v8774_v33, %v4146_v5 }
 0x227   : > { %v1949_v2 = vadd.f32 %v1917_v52, %v1696_v49 }
 0x228   : > { %v3466_v9 = vadd.f32 %v3434_v18, %v3213_v31 }
 0x229   : > { %v2202_v60 = vadd.f32 %v2170_v3, %v1949_v2 }
 0x22a   : > { %v3719_v6 = vadd.f32 %v3687_v53, %v3466_v9 }
 0x22b   : > { %v2455_v37 = vadd.f32 %v2423_v44, %v2202_v60 }
 0x22c   : > { %v3972_v7 = vadd.f32 %v3940_v47, %v3719_v6 }
 0x22d   : > { %v2708_v61 = vadd.f32 %v2676_v10, %v2455_v37 }
 0x22e   : > { %v4225_v56 = vadd.f32 %v4193_v38, %v3972_v7 }
 0x22f   : > { %v2961_v43 = vadd.f32 %v2929_v16, %v2708_v61 }
 0x230   : > { %4257 = vst [vmem:[%s5500_s20 + $0xf0] sm:$0xff] %v4225_v56 }
 0x231   : > { %v3214_v54 = vadd.f32 %v3182_v42, %v2961_v43 }
 0x233   : > { %v3467_v55 = vadd.f32 %v3435_v59, %v3214_v54 }
 0x235   : > { %v3720_v34 = vadd.f32 %v3688_v41, %v3467_v55 }
 0x237   : > { %v3973_v29 = vadd.f32 %v3941_v58, %v3720_v34 }
 0x239   : > { %v4226_v26 = vadd.f32 %v4194_v50, %v3973_v29 }
 0x23b   : > { %4258 = vst [vmem:[%s5500_s20 + $0xf8] sm:$0xff] %v4226_v26 }
 0x23c   : > { %4626 = shalt.err (!%p4623_p11)
}
 0x23d   : > { %s4627_s17 = scalar_lea.hbm %s7967_s28, 4096  ;;  %s4631_s25 = scalar_lea.hbm %s8016_s2, 8192 }
 0x23e   : > { %p4628_p0 = scmp.ne.s32.totalorder %s7967_s28, %s4627_s17  ;;  %p4632_p3 = scmp.lt.u32.totalorder %s7967_s28, %s8016_s2 }
 0x23f   : > { %p4633_p5 = scmp.lt.u32.totalorder %s4631_s25, %s4627_s17  ;;  %p4635_p13 = scmp.lt.u32.totalorder %s4627_s17, %s7967_s28 }
 0x240   : > { %p4629_p4 = pnand %p4628_p0, %p8816_p2 }
 0x241   : > { %p4634_p6 = por %p4633_p5, %p4632_p3 }
 0x242   : > { %p4630_p1 = pneg %p4629_p4 }
 0x243   : > { %p4636_p12 = por %p4635_p13, %p4634_p6 }
 0x245   : > { %p4637_p10 = pnand %p4636_p12, %p4630_p1 }
 0x247   : > { %4640 = shalt.err (!%p4637_p10)
}
 0x248   : > { %s4692_s27 = smov 128   ;;  %s4693_s29 = smov 256  }
 0x249   : > { %s4694_s20 = smov 8  }
 0x24a   : > { %4419 = dma.vmem_to_hbm [thread:$0]  (%p8816_p2), %s7969_s14, 4096, %s7967_s28, %s4260_s26, %s4692_s27, %s4693_s29, %s4694_s20  }
 0x24b PF: > { %s4287_s5 = sand.u32 1, %s4671_s9   ;;  %p8817_p7 = scmp.ne.s32.totalorder %s8308_s22, 0 }
 0x24c   : > { %p8818_p8 = scmp.ge.s32.totalorder %s4683_s12, 2  ;;  %s4288_s16 = scalar_lea.sflag [#allocation4], %s4287_s5 }
 0x24e   : > { %p4429_p9 = pnand %p8818_p8, %p8817_p7 }
 0x250   : > { %4666 = dma.done.wait (!%p4429_p9), %s4288_s16, 4096  }
 0x251   : > { %4668 = vsyncadd (!%p4429_p9), %s4288_s16, 4294963200  ;;  %p18_p11 = scmp.ge.s32.totalorder %s4735_s15, 4   ;;  %s8819_s9 = smov %s4675_s10 }
 0x252   : > { %s8820_s10 = smov %s4679_s11  ;;  %s8821_s11 = smov %s4747_s18 }
 0x253   : > { %s8822_s12 = smov %s4735_s15  ;;  %20 = sbr.rel (!%p18_p11) target bundleno = 7 (0x7), region = 101 }
 0x25a   :  { %4293 = vsyncpa [#allocation3], 1 }
 0x25b   :  { %4295 = vsyncpa [#allocation3 + $0x1], 1 }
 0x25c   :  { %4296 = vsyncpa [#allocation6], 1 }
 0x25d   :  { %4298 = vsyncpa [#allocation6 + $0x1], 1 }
 0x25e   :  { %4299 = vsyncpa [#allocation4], 1 }
 0x25f   :  { %4301 = vsyncpa [#allocation4 + $0x1], 1 }

</bundles_post_ra>
